<compile_context>
chip_gen: v5e
topology: v5e:2x2
jax: 0.10.0
libtpu: 0.0.40
codegen_flags: <defaults>
</compile_context>

<pallas_src>
import jax
import jax.numpy as jnp
import numpy as np
from jax.experimental import pallas as pl
from jax.experimental.pallas import tpu as pltpu

LANE = 128
SUBLANE = 8
MXU_DTYPE = jnp.bfloat16      # MXU operand dtype; state/activation math is f32
_UNROLL_MAX_S = 32            # fully unroll the time loop up to this length


def _round_up(x, m):
    return ((x + m - 1) // m) * m


# ----------------------------------------------------------------------------
# Fused kernel: all LSTM layers + FC head, single invocation (no grid).
# ----------------------------------------------------------------------------
def _make_fused_kernel(num_layers, S, B_p, H_p, mxu_dtype):
    def kernel(*refs):
        x_ref = refs[0]                                   # (S*B_p, D_p)   bf16
        layer_refs = refs[1:1 + 3 * num_layers]           # (w_ih, w_hh, b) * L
        fc_w_ref = refs[1 + 3 * num_layers]               # (H_p, O_p)     bf16
        fc_b_ref = refs[2 + 3 * num_layers]               # (1, O_p)       f32
        out_ref = refs[3 + 3 * num_layers]                # (B_p, O_p)     f32
        hseq_scr = refs[4 + 3 * num_layers]               # (S*B_p, H_p)   bf16
        gx_scr = refs[5 + 3 * num_layers]                 # (S*B_p, 4H_p)  f32

        h_last = None
        for l in range(num_layers):
            w_ih_ref, w_hh_ref, b_ref = layer_refs[3 * l: 3 * l + 3]
            is_last = (l == num_layers - 1)

            # ---- hoisted input projection + bias for the WHOLE sequence ----
            xin = x_ref[...] if l == 0 else hseq_scr[...]     # already bf16
            gx_scr[...] = (
                jnp.dot(xin, w_ih_ref[...], preferred_element_type=jnp.float32)
                + b_ref[...])                                  # bias added once

            # ---- sequential recurrence: only h @ W_hh per step --------------
            def step(t, h, c, write_seq=not is_last, w_hh_ref=w_hh_ref):
                start = t * B_p
                if not isinstance(start, int):
                    start = pl.multiple_of(start, B_p)
                row = pl.ds(start, B_p)
                g = gx_scr[row, :] + jnp.dot(
                    h.astype(mxu_dtype), w_hh_ref[...],
                    preferred_element_type=jnp.float32)
                # PyTorch gate order [i, f, g, o]; H_p-wide slices are
                # lane-aligned (H_p is a multiple of 128).
                i_g = jax.nn.sigmoid(g[:, 0 * H_p:1 * H_p])
                f_g = jax.nn.sigmoid(g[:, 1 * H_p:2 * H_p])
                g_g = jnp.tanh(g[:, 2 * H_p:3 * H_p])
                o_g = jax.nn.sigmoid(g[:, 3 * H_p:4 * H_p])
                c_new = f_g * c + i_g * g_g
                h_new = o_g * jnp.tanh(c_new)
                if write_seq:                      # non-final layers need the
                    hseq_scr[row, :] = h_new.astype(hseq_scr.dtype)  # full seq
                return h_new, c_new

            h = jnp.zeros((B_p, H_p), jnp.float32)
            c = jnp.zeros((B_p, H_p), jnp.float32)
            if S <= _UNROLL_MAX_S:
                for t in range(S):                 # fully unrolled
                    h, c = step(t, h, c)
            else:
                h, c = jax.lax.fori_loop(
                    0, S, lambda t, hc: step(t, hc[0], hc[1]), (h, c),
                    unroll=4)
            h_last = h

        # ---- fused FC head: lane-dense (B_p, O_p) store -----------------------
        out_ref[...] = (
            jnp.dot(h_last.astype(mxu_dtype), fc_w_ref[...],
                    preferred_element_type=jnp.float32)
            + fc_b_ref[...]).astype(out_ref.dtype)

    return kernel


# ----------------------------------------------------------------------------
# Padding helpers (zero-padding preserves exact numerics; see header notes)
# ----------------------------------------------------------------------------
def _pad_gate_matrix(w, d_in_p, h_p):
    """w: (d_in, 4H), gate-blocked [i,f,g,o] along axis 1 -> (d_in_p, 4*h_p)."""
    d_in, four_h = w.shape
    h = four_h // 4
    w4 = w.reshape(d_in, 4, h)
    w4 = jnp.pad(w4, ((0, d_in_p - d_in), (0, 0), (0, h_p - h)))
    return w4.reshape(d_in_p, 4 * h_p)


def _pad_gate_bias(b, h_p):
    """b: (1, 4H) -> (1, 4*h_p)."""
    h = b.shape[1] // 4
    b4 = b.reshape(1, 4, h)
    b4 = jnp.pad(b4, ((0, 0), (0, 0), (0, h_p - h)))
    return b4.reshape(1, 4 * h_p)


def _full_block_spec(a):
    nd = a.ndim
    return pl.BlockSpec(a.shape, lambda nd=nd: (0,) * nd)


# ----------------------------------------------------------------------------
# Wrapper
# ----------------------------------------------------------------------------
def lstm_forecaster_forward(x_bsd, params):
    """Full LSTMForecaster.forward.  x_bsd: (batch, seq, input_size) f32."""
    B, S, D = x_bsd.shape
    H = params["lstm_layers"][0][1].shape[0]
    O = params["fc_w"].shape[1]
    num_layers = len(params["lstm_layers"])

    B_p = _round_up(B, SUBLANE)       # dense sublanes
    D_p = _round_up(D, LANE)          # lane-dense input features
    H_p = _round_up(H, LANE)          # lane-dense hidden / gate slices
    O_p = _round_up(O, LANE)          # lane-dense (unmasked) output stores

    # time-major, pad batch+feature dims, flatten (S, B_p) -> S*B_p rows
    x = jnp.transpose(x_bsd, (1, 0, 2)).astype(jnp.float32)      # (S, B, D)
    x = jnp.pad(x, ((0, 0), (0, B_p - B), (0, D_p - D)))
    x = x.reshape(S * B_p, D_p).astype(MXU_DTYPE)

    flat_w = []
    for l, (w_ih, w_hh, bias) in enumerate(params["lstm_layers"]):
        d_in_p = D_p if l == 0 else H_p
        flat_w.append(_pad_gate_matrix(w_ih, d_in_p, H_p).astype(MXU_DTYPE))
        flat_w.append(_pad_gate_matrix(w_hh, H_p, H_p).astype(MXU_DTYPE))
        flat_w.append(_pad_gate_bias(bias, H_p).astype(jnp.float32))
    fc_w = jnp.pad(params["fc_w"],
                   ((0, H_p - H), (0, O_p - O))).astype(MXU_DTYPE)
    fc_b = jnp.pad(params["fc_b"], ((0, 0), (0, O_p - O))).astype(jnp.float32)

    inputs = [x, *flat_w, fc_w, fc_b]
    in_specs = [_full_block_spec(a) for a in inputs]

    scratch_shapes = [
        pltpu.VMEM((S * B_p, H_p), MXU_DTYPE),         # inter-layer h sequence
        pltpu.VMEM((S * B_p, 4 * H_p), jnp.float32),   # hoisted input projection
    ]

    # VMEM budget (keeps us honest on v7x's 64 MiB scoped default; tiny here).
    in_bytes = sum(a.size * a.dtype.itemsize for a in inputs)
    out_bytes = B_p * O_p * 4
    scr_bytes = S * B_p * H_p * 2 + S * B_p * 4 * H_p * 4
    vmem_limit = int(min(32 * 2**20,
                         max(4 * 2**20, 2 * (in_bytes + out_bytes + scr_bytes))))

    kernel = _make_fused_kernel(num_layers, S, B_p, H_p, MXU_DTYPE)

    out_p = pl.pallas_call(
        kernel,
        out_shape=jax.ShapeDtypeStruct((B_p, O_p), jnp.float32),
        in_specs=in_specs,
        out_specs=pl.BlockSpec((B_p, O_p), lambda: (0, 0)),
        scratch_shapes=scratch_shapes,
        compiler_params=pltpu.CompilerParams(vmem_limit_bytes=vmem_limit),
    )(*inputs)

    return out_p[:B, :O]                                 # drop padding


# ----------------------------------------------------------------------------
# Deterministic parameter init (PyTorch LSTM shapes, uniform(-1/sqrt(H), +))
# ----------------------------------------------------------------------------
def init_params(key, input_size, hidden_size, num_layers, output_size):
    bound = 1.0 / np.sqrt(hidden_size)
    layers = []
    for l in range(num_layers):
        d_in = input_size if l == 0 else hidden_size
        key, k1, k2, k3, k4 = jax.random.split(key, 5)
        # PyTorch stores weight_ih as (4H, d_in); we keep the transposed
        # layout (d_in, 4H) so the kernel does x @ W directly.  Gate order i,f,g,o.
        w_ih = jax.random.uniform(k1, (d_in, 4 * hidden_size), jnp.float32,
                                  -bound, bound)
        w_hh = jax.random.uniform(k2, (hidden_size, 4 * hidden_size),
                                  jnp.float32, -bound, bound)
        b_ih = jax.random.uniform(k3, (4 * hidden_size,), jnp.float32,
                                  -bound, bound)
        b_hh = jax.random.uniform(k4, (4 * hidden_size,), jnp.float32,
                                  -bound, bound)
        layers.append((w_ih, w_hh, (b_ih + b_hh)[None, :]))
    key, k5, k6 = jax.random.split(key, 3)
    fc_bound = 1.0 / np.sqrt(hidden_size)
    fc_w = jax.random.uniform(k5, (hidden_size, output_size), jnp.float32,
                              -fc_bound, fc_bound)
    fc_b = jax.random.uniform(k6, (1, output_size), jnp.float32,
                              -fc_bound, fc_bound)
    return {"lstm_layers": layers, "fc_w": fc_w, "fc_b": fc_b}


# ----------------------------------------------------------------------------
# Pure-JAX reference with the SAME cast points (bf16 matmul operands, f32 acc)
# ----------------------------------------------------------------------------
def reference_forward(x_bsd, params, matmul_dtype=MXU_DTYPE):
    x = jnp.transpose(x_bsd, (1, 0, 2)).astype(jnp.float32)      # (S, B, D)
    S, B, _ = x.shape
    for (w_ih, w_hh, bias) in params["lstm_layers"]:
        H = w_hh.shape[0]
        gx = jnp.dot(x.reshape(S * B, -1).astype(matmul_dtype),
                     w_ih.astype(matmul_dtype),
                     preferred_element_type=jnp.float32
                     ).reshape(S, B, 4 * H) + bias
        h = jnp.zeros((B, H), jnp.float32)
        c = jnp.zeros((B, H), jnp.float32)
        hs = []
        for t in range(S):
            g = gx[t] + jnp.dot(h.astype(matmul_dtype),
                                w_hh.astype(matmul_dtype),
                                preferred_element_type=jnp.float32)
            i = jax.nn.sigmoid(g[:, 0 * H:1 * H])
            f = jax.nn.sigmoid(g[:, 1 * H:2 * H])
            gg = jnp.tanh(g[:, 2 * H:3 * H])
            o = jax.nn.sigmoid(g[:, 3 * H:4 * H])
            c = f * c + i * gg
            h = o * jnp.tanh(c)
            hs.append(h)
        x = jnp.stack(hs, axis=0)
    return (jnp.dot(x[-1].astype(matmul_dtype),
                    params["fc_w"].astype(matmul_dtype),
                    preferred_element_type=jnp.float32)
            + params["fc_b"])


# ----------------------------------------------------------------------------
if __name__ == "__main__":
    # Small shapes consistent with the module's forward:
    batch, seq_len, input_size = 2, 8, 4
    hidden_size, num_layers, output_size = 32, 2, 1

    key = jax.random.PRNGKey(0)
    key, kx, kp = jax.random.split(key, 3)
    x = jax.random.normal(kx, (batch, seq_len, input_size), jnp.float32)
    params = init_params(kp, input_size, hidden_size, num_layers, output_size)

    out = lstm_forecaster_forward(x, params)
    out = jax.block_until_ready(out)

    ref = reference_forward(x, params)
    np.testing.assert_allclose(np.asarray(out), np.asarray(ref),
                               rtol=1e-3, atol=1e-3)

    assert out.shape == (batch, output_size)
    print("KERNEL_OK")
</pallas_src>

<mosaic_0001>
module attributes {stable_mosaic.version = 11 : i64} {
  func.func @kernel(%arg0: memref<64x128xbf16, #tpu.memory_space<vmem>>, %arg1: memref<128x512xbf16, #tpu.memory_space<vmem>>, %arg2: memref<128x512xbf16, #tpu.memory_space<vmem>>, %arg3: memref<1x512xf32, #tpu.memory_space<vmem>>, %arg4: memref<128x512xbf16, #tpu.memory_space<vmem>>, %arg5: memref<128x512xbf16, #tpu.memory_space<vmem>>, %arg6: memref<1x512xf32, #tpu.memory_space<vmem>>, %arg7: memref<128x128xbf16, #tpu.memory_space<vmem>>, %arg8: memref<1x128xf32, #tpu.memory_space<vmem>>, %arg9: memref<8x128xf32, #tpu.memory_space<vmem>>, %arg10: memref<64x128xbf16, #tpu.memory_space<vmem>>, %arg11: memref<64x512xf32, #tpu.memory_space<vmem>>) attributes {dimension_semantics = [], scalar_prefetch = 0 : i64, scratch_operands = 2 : i64, tpu.core_type = #tpu.core_type<tc>} {
    %c0 = arith.constant 0 : index
    %c0_0 = arith.constant 0 : index
    %0 = vector.load %arg0[%c0, %c0_0] : memref<64x128xbf16, #tpu.memory_space<vmem>>, vector<64x128xbf16>
    %c0_1 = arith.constant 0 : index
    %c0_2 = arith.constant 0 : index
    %1 = vector.load %arg1[%c0_1, %c0_2] : memref<128x512xbf16, #tpu.memory_space<vmem>>, vector<128x512xbf16>
    %cst = arith.constant dense<0.000000e+00> : vector<64x512xf32>
    %2 = tpu.matmul %0, %1, %cst {dimension_numbers = #tpu.dot_dimension_numbers<[1], [0], [0], [1], [0, 0, 1, 1], [], []>} : vector<64x128xbf16>, vector<128x512xbf16>, vector<64x512xf32> -> vector<64x512xf32>
    %c0_3 = arith.constant 0 : index
    %c0_4 = arith.constant 0 : index
    %3 = vector.load %arg3[%c0_3, %c0_4] : memref<1x512xf32, #tpu.memory_space<vmem>>, vector<1x512xf32>
    %4 = vector.broadcast %3 : vector<1x512xf32> to vector<64x512xf32>
    %5 = arith.addf %2, %4 : vector<64x512xf32>
    %c0_5 = arith.constant 0 : index
    %c0_6 = arith.constant 0 : index
    %6 = vector.load %arg11[%c0_5, %c0_6] : memref<64x512xf32, #tpu.memory_space<vmem>>, vector<64x512xf32>
    tpu.vector_store %arg11[%c0_5, %c0_6], %5 {strides = array<i32>} : memref<64x512xf32, #tpu.memory_space<vmem>>, vector<64x512xf32>,
    %cst_7 = arith.constant 0.000000e+00 : f32
    %7 = vector.broadcast %cst_7 : f32 to vector<8x128xf32>
    %cst_8 = arith.constant 0.000000e+00 : f32
    %8 = vector.broadcast %cst_8 : f32 to vector<8x128xf32>
    %c0_9 = arith.constant 0 : index
    %c0_10 = arith.constant 0 : index
    %9 = vector.load %arg11[%c0_9, %c0_10] : memref<64x512xf32, #tpu.memory_space<vmem>>, vector<8x512xf32>
    %10 = arith.truncf %7 : vector<8x128xf32> to vector<8x128xbf16>
    %c0_11 = arith.constant 0 : index
    %c0_12 = arith.constant 0 : index
    %11 = vector.load %arg2[%c0_11, %c0_12] : memref<128x512xbf16, #tpu.memory_space<vmem>>, vector<128x512xbf16>
    %cst_13 = arith.constant dense<0.000000e+00> : vector<8x512xf32>
    %12 = tpu.matmul %10, %11, %cst_13 {dimension_numbers = #tpu.dot_dimension_numbers<[1], [0], [0], [1], [0, 0, 1, 1], [], []>} : vector<8x128xbf16>, vector<128x512xbf16>, vector<8x512xf32> -> vector<8x512xf32>
    %13 = arith.addf %9, %12 : vector<8x512xf32>
    %14 = vector.extract_strided_slice %13 {offsets = [0, 0], sizes = [8, 128], strides = [1, 1]} : vector<8x512xf32> to vector<8x128xf32>
    %15 = arith.negf %14 : vector<8x128xf32>
    %16 = math.exp %15 : vector<8x128xf32>
    %cst_14 = arith.constant 1.000000e+00 : f32
    %17 = vector.broadcast %cst_14 : f32 to vector<8x128xf32>
    %18 = arith.addf %17, %16 : vector<8x128xf32>
    %19 = arith.divf %17, %18 : vector<8x128xf32>
    %20 = vector.extract_strided_slice %13 {offsets = [0, 128], sizes = [8, 128], strides = [1, 1]} : vector<8x512xf32> to vector<8x128xf32>
    %21 = arith.negf %20 : vector<8x128xf32>
    %22 = math.exp %21 : vector<8x128xf32>
    %cst_15 = arith.constant 1.000000e+00 : f32
    %23 = vector.broadcast %cst_15 : f32 to vector<8x128xf32>
    %24 = arith.addf %23, %22 : vector<8x128xf32>
    %25 = arith.divf %23, %24 : vector<8x128xf32>
    %26 = vector.extract_strided_slice %13 {offsets = [0, 256], sizes = [8, 128], strides = [1, 1]} : vector<8x512xf32> to vector<8x128xf32>
    %27 = math.tanh %26 : vector<8x128xf32>
    %28 = vector.extract_strided_slice %13 {offsets = [0, 384], sizes = [8, 128], strides = [1, 1]} : vector<8x512xf32> to vector<8x128xf32>
    %29 = arith.negf %28 : vector<8x128xf32>
    %30 = math.exp %29 : vector<8x128xf32>
    %cst_16 = arith.constant 1.000000e+00 : f32
    %31 = vector.broadcast %cst_16 : f32 to vector<8x128xf32>
    %32 = arith.addf %31, %30 : vector<8x128xf32>
    %33 = arith.divf %31, %32 : vector<8x128xf32>
    %34 = arith.mulf %25, %8 : vector<8x128xf32>
    %35 = arith.mulf %19, %27 : vector<8x128xf32>
    %36 = arith.addf %34, %35 : vector<8x128xf32>
    %37 = math.tanh %36 : vector<8x128xf32>
    %38 = arith.mulf %33, %37 : vector<8x128xf32>
    %39 = arith.truncf %38 : vector<8x128xf32> to vector<8x128xbf16>
    %c0_17 = arith.constant 0 : index
    %c0_18 = arith.constant 0 : index
    %40 = vector.load %arg10[%c0_17, %c0_18] : memref<64x128xbf16, #tpu.memory_space<vmem>>, vector<8x128xbf16>
    tpu.vector_store %arg10[%c0_17, %c0_18], %39 {strides = array<i32>} : memref<64x128xbf16, #tpu.memory_space<vmem>>, vector<8x128xbf16>,
    %c8 = arith.constant 8 : index
    %c0_19 = arith.constant 0 : index
    %41 = vector.load %arg11[%c8, %c0_19] : memref<64x512xf32, #tpu.memory_space<vmem>>, vector<8x512xf32>
    %42 = arith.truncf %38 : vector<8x128xf32> to vector<8x128xbf16>
    %c0_20 = arith.constant 0 : index
    %c0_21 = arith.constant 0 : index
    %43 = vector.load %arg2[%c0_20, %c0_21] : memref<128x512xbf16, #tpu.memory_space<vmem>>, vector<128x512xbf16>
    %cst_22 = arith.constant dense<0.000000e+00> : vector<8x512xf32>
    %44 = tpu.matmul %42, %43, %cst_22 {dimension_numbers = #tpu.dot_dimension_numbers<[1], [0], [0], [1], [0, 0, 1, 1], [], []>} : vector<8x128xbf16>, vector<128x512xbf16>, vector<8x512xf32> -> vector<8x512xf32>
    %45 = arith.addf %41, %44 : vector<8x512xf32>
    %46 = vector.extract_strided_slice %45 {offsets = [0, 0], sizes = [8, 128], strides = [1, 1]} : vector<8x512xf32> to vector<8x128xf32>
    %47 = arith.negf %46 : vector<8x128xf32>
    %48 = math.exp %47 : vector<8x128xf32>
    %cst_23 = arith.constant 1.000000e+00 : f32
    %49 = vector.broadcast %cst_23 : f32 to vector<8x128xf32>
    %50 = arith.addf %49, %48 : vector<8x128xf32>
    %51 = arith.divf %49, %50 : vector<8x128xf32>
    %52 = vector.extract_strided_slice %45 {offsets = [0, 128], sizes = [8, 128], strides = [1, 1]} : vector<8x512xf32> to vector<8x128xf32>
    %53 = arith.negf %52 : vector<8x128xf32>
    %54 = math.exp %53 : vector<8x128xf32>
    %cst_24 = arith.constant 1.000000e+00 : f32
    %55 = vector.broadcast %cst_24 : f32 to vector<8x128xf32>
    %56 = arith.addf %55, %54 : vector<8x128xf32>
    %57 = arith.divf %55, %56 : vector<8x128xf32>
    %58 = vector.extract_strided_slice %45 {offsets = [0, 256], sizes = [8, 128], strides = [1, 1]} : vector<8x512xf32> to vector<8x128xf32>
    %59 = math.tanh %58 : vector<8x128xf32>
    %60 = vector.extract_strided_slice %45 {offsets = [0, 384], sizes = [8, 128], strides = [1, 1]} : vector<8x512xf32> to vector<8x128xf32>
    %61 = arith.negf %60 : vector<8x128xf32>
    %62 = math.exp %61 : vector<8x128xf32>
    %cst_25 = arith.constant 1.000000e+00 : f32
    %63 = vector.broadcast %cst_25 : f32 to vector<8x128xf32>
    %64 = arith.addf %63, %62 : vector<8x128xf32>
    %65 = arith.divf %63, %64 : vector<8x128xf32>
    %66 = arith.mulf %57, %36 : vector<8x128xf32>
    %67 = arith.mulf %51, %59 : vector<8x128xf32>
    %68 = arith.addf %66, %67 : vector<8x128xf32>
    %69 = math.tanh %68 : vector<8x128xf32>
    %70 = arith.mulf %65, %69 : vector<8x128xf32>
    %71 = arith.truncf %70 : vector<8x128xf32> to vector<8x128xbf16>
    %c8_26 = arith.constant 8 : index
    %c0_27 = arith.constant 0 : index
    %72 = vector.load %arg10[%c8_26, %c0_27] : memref<64x128xbf16, #tpu.memory_space<vmem>>, vector<8x128xbf16>
    tpu.vector_store %arg10[%c8_26, %c0_27], %71 {strides = array<i32>} : memref<64x128xbf16, #tpu.memory_space<vmem>>, vector<8x128xbf16>,
    %c16 = arith.constant 16 : index
    %c0_28 = arith.constant 0 : index
    %73 = vector.load %arg11[%c16, %c0_28] : memref<64x512xf32, #tpu.memory_space<vmem>>, vector<8x512xf32>
    %74 = arith.truncf %70 : vector<8x128xf32> to vector<8x128xbf16>
    %c0_29 = arith.constant 0 : index
    %c0_30 = arith.constant 0 : index
    %75 = vector.load %arg2[%c0_29, %c0_30] : memref<128x512xbf16, #tpu.memory_space<vmem>>, vector<128x512xbf16>
    %cst_31 = arith.constant dense<0.000000e+00> : vector<8x512xf32>
    %76 = tpu.matmul %74, %75, %cst_31 {dimension_numbers = #tpu.dot_dimension_numbers<[1], [0], [0], [1], [0, 0, 1, 1], [], []>} : vector<8x128xbf16>, vector<128x512xbf16>, vector<8x512xf32> -> vector<8x512xf32>
    %77 = arith.addf %73, %76 : vector<8x512xf32>
    %78 = vector.extract_strided_slice %77 {offsets = [0, 0], sizes = [8, 128], strides = [1, 1]} : vector<8x512xf32> to vector<8x128xf32>
    %79 = arith.negf %78 : vector<8x128xf32>
    %80 = math.exp %79 : vector<8x128xf32>
    %cst_32 = arith.constant 1.000000e+00 : f32
    %81 = vector.broadcast %cst_32 : f32 to vector<8x128xf32>
    %82 = arith.addf %81, %80 : vector<8x128xf32>
    %83 = arith.divf %81, %82 : vector<8x128xf32>
    %84 = vector.extract_strided_slice %77 {offsets = [0, 128], sizes = [8, 128], strides = [1, 1]} : vector<8x512xf32> to vector<8x128xf32>
    %85 = arith.negf %84 : vector<8x128xf32>
    %86 = math.exp %85 : vector<8x128xf32>
    %cst_33 = arith.constant 1.000000e+00 : f32
    %87 = vector.broadcast %cst_33 : f32 to vector<8x128xf32>
    %88 = arith.addf %87, %86 : vector<8x128xf32>
    %89 = arith.divf %87, %88 : vector<8x128xf32>
    %90 = vector.extract_strided_slice %77 {offsets = [0, 256], sizes = [8, 128], strides = [1, 1]} : vector<8x512xf32> to vector<8x128xf32>
    %91 = math.tanh %90 : vector<8x128xf32>
    %92 = vector.extract_strided_slice %77 {offsets = [0, 384], sizes = [8, 128], strides = [1, 1]} : vector<8x512xf32> to vector<8x128xf32>
    %93 = arith.negf %92 : vector<8x128xf32>
    %94 = math.exp %93 : vector<8x128xf32>
    %cst_34 = arith.constant 1.000000e+00 : f32
    %95 = vector.broadcast %cst_34 : f32 to vector<8x128xf32>
    %96 = arith.addf %95, %94 : vector<8x128xf32>
    %97 = arith.divf %95, %96 : vector<8x128xf32>
    %98 = arith.mulf %89, %68 : vector<8x128xf32>
    %99 = arith.mulf %83, %91 : vector<8x128xf32>
    %100 = arith.addf %98, %99 : vector<8x128xf32>
    %101 = math.tanh %100 : vector<8x128xf32>
    %102 = arith.mulf %97, %101 : vector<8x128xf32>
    %103 = arith.truncf %102 : vector<8x128xf32> to vector<8x128xbf16>
    %c16_35 = arith.constant 16 : index
    %c0_36 = arith.constant 0 : index
    %104 = vector.load %arg10[%c16_35, %c0_36] : memref<64x128xbf16, #tpu.memory_space<vmem>>, vector<8x128xbf16>
    tpu.vector_store %arg10[%c16_35, %c0_36], %103 {strides = array<i32>} : memref<64x128xbf16, #tpu.memory_space<vmem>>, vector<8x128xbf16>,
    %c24 = arith.constant 24 : index
    %c0_37 = arith.constant 0 : index
    %105 = vector.load %arg11[%c24, %c0_37] : memref<64x512xf32, #tpu.memory_space<vmem>>, vector<8x512xf32>
    %106 = arith.truncf %102 : vector<8x128xf32> to vector<8x128xbf16>
    %c0_38 = arith.constant 0 : index
    %c0_39 = arith.constant 0 : index
    %107 = vector.load %arg2[%c0_38, %c0_39] : memref<128x512xbf16, #tpu.memory_space<vmem>>, vector<128x512xbf16>
    %cst_40 = arith.constant dense<0.000000e+00> : vector<8x512xf32>
    %108 = tpu.matmul %106, %107, %cst_40 {dimension_numbers = #tpu.dot_dimension_numbers<[1], [0], [0], [1], [0, 0, 1, 1], [], []>} : vector<8x128xbf16>, vector<128x512xbf16>, vector<8x512xf32> -> vector<8x512xf32>
    %109 = arith.addf %105, %108 : vector<8x512xf32>
    %110 = vector.extract_strided_slice %109 {offsets = [0, 0], sizes = [8, 128], strides = [1, 1]} : vector<8x512xf32> to vector<8x128xf32>
    %111 = arith.negf %110 : vector<8x128xf32>
    %112 = math.exp %111 : vector<8x128xf32>
    %cst_41 = arith.constant 1.000000e+00 : f32
    %113 = vector.broadcast %cst_41 : f32 to vector<8x128xf32>
    %114 = arith.addf %113, %112 : vector<8x128xf32>
    %115 = arith.divf %113, %114 : vector<8x128xf32>
    %116 = vector.extract_strided_slice %109 {offsets = [0, 128], sizes = [8, 128], strides = [1, 1]} : vector<8x512xf32> to vector<8x128xf32>
    %117 = arith.negf %116 : vector<8x128xf32>
    %118 = math.exp %117 : vector<8x128xf32>
    %cst_42 = arith.constant 1.000000e+00 : f32
    %119 = vector.broadcast %cst_42 : f32 to vector<8x128xf32>
    %120 = arith.addf %119, %118 : vector<8x128xf32>
    %121 = arith.divf %119, %120 : vector<8x128xf32>
    %122 = vector.extract_strided_slice %109 {offsets = [0, 256], sizes = [8, 128], strides = [1, 1]} : vector<8x512xf32> to vector<8x128xf32>
    %123 = math.tanh %122 : vector<8x128xf32>
    %124 = vector.extract_strided_slice %109 {offsets = [0, 384], sizes = [8, 128], strides = [1, 1]} : vector<8x512xf32> to vector<8x128xf32>
    %125 = arith.negf %124 : vector<8x128xf32>
    %126 = math.exp %125 : vector<8x128xf32>
    %cst_43 = arith.constant 1.000000e+00 : f32
    %127 = vector.broadcast %cst_43 : f32 to vector<8x128xf32>
    %128 = arith.addf %127, %126 : vector<8x128xf32>
    %129 = arith.divf %127, %128 : vector<8x128xf32>
    %130 = arith.mulf %121, %100 : vector<8x128xf32>
    %131 = arith.mulf %115, %123 : vector<8x128xf32>
    %132 = arith.addf %130, %131 : vector<8x128xf32>
    %133 = math.tanh %132 : vector<8x128xf32>
    %134 = arith.mulf %129, %133 : vector<8x128xf32>
    %135 = arith.truncf %134 : vector<8x128xf32> to vector<8x128xbf16>
    %c24_44 = arith.constant 24 : index
    %c0_45 = arith.constant 0 : index
    %136 = vector.load %arg10[%c24_44, %c0_45] : memref<64x128xbf16, #tpu.memory_space<vmem>>, vector<8x128xbf16>
    tpu.vector_store %arg10[%c24_44, %c0_45], %135 {strides = array<i32>} : memref<64x128xbf16, #tpu.memory_space<vmem>>, vector<8x128xbf16>,
    %c32 = arith.constant 32 : index
    %c0_46 = arith.constant 0 : index
    %137 = vector.load %arg11[%c32, %c0_46] : memref<64x512xf32, #tpu.memory_space<vmem>>, vector<8x512xf32>
    %138 = arith.truncf %134 : vector<8x128xf32> to vector<8x128xbf16>
    %c0_47 = arith.constant 0 : index
    %c0_48 = arith.constant 0 : index
    %139 = vector.load %arg2[%c0_47, %c0_48] : memref<128x512xbf16, #tpu.memory_space<vmem>>, vector<128x512xbf16>
    %cst_49 = arith.constant dense<0.000000e+00> : vector<8x512xf32>
    %140 = tpu.matmul %138, %139, %cst_49 {dimension_numbers = #tpu.dot_dimension_numbers<[1], [0], [0], [1], [0, 0, 1, 1], [], []>} : vector<8x128xbf16>, vector<128x512xbf16>, vector<8x512xf32> -> vector<8x512xf32>
    %141 = arith.addf %137, %140 : vector<8x512xf32>
    %142 = vector.extract_strided_slice %141 {offsets = [0, 0], sizes = [8, 128], strides = [1, 1]} : vector<8x512xf32> to vector<8x128xf32>
    %143 = arith.negf %142 : vector<8x128xf32>
    %144 = math.exp %143 : vector<8x128xf32>
    %cst_50 = arith.constant 1.000000e+00 : f32
    %145 = vector.broadcast %cst_50 : f32 to vector<8x128xf32>
    %146 = arith.addf %145, %144 : vector<8x128xf32>
    %147 = arith.divf %145, %146 : vector<8x128xf32>
    %148 = vector.extract_strided_slice %141 {offsets = [0, 128], sizes = [8, 128], strides = [1, 1]} : vector<8x512xf32> to vector<8x128xf32>
    %149 = arith.negf %148 : vector<8x128xf32>
    %150 = math.exp %149 : vector<8x128xf32>
    %cst_51 = arith.constant 1.000000e+00 : f32
    %151 = vector.broadcast %cst_51 : f32 to vector<8x128xf32>
    %152 = arith.addf %151, %150 : vector<8x128xf32>
    %153 = arith.divf %151, %152 : vector<8x128xf32>
    %154 = vector.extract_strided_slice %141 {offsets = [0, 256], sizes = [8, 128], strides = [1, 1]} : vector<8x512xf32> to vector<8x128xf32>
    %155 = math.tanh %154 : vector<8x128xf32>
    %156 = vector.extract_strided_slice %141 {offsets = [0, 384], sizes = [8, 128], strides = [1, 1]} : vector<8x512xf32> to vector<8x128xf32>
    %157 = arith.negf %156 : vector<8x128xf32>
    %158 = math.exp %157 : vector<8x128xf32>
    %cst_52 = arith.constant 1.000000e+00 : f32
    %159 = vector.broadcast %cst_52 : f32 to vector<8x128xf32>
    %160 = arith.addf %159, %158 : vector<8x128xf32>
    %161 = arith.divf %159, %160 : vector<8x128xf32>
    %162 = arith.mulf %153, %132 : vector<8x128xf32>
    %163 = arith.mulf %147, %155 : vector<8x128xf32>
    %164 = arith.addf %162, %163 : vector<8x128xf32>
    %165 = math.tanh %164 : vector<8x128xf32>
    %166 = arith.mulf %161, %165 : vector<8x128xf32>
    %167 = arith.truncf %166 : vector<8x128xf32> to vector<8x128xbf16>
    %c32_53 = arith.constant 32 : index
    %c0_54 = arith.constant 0 : index
    %168 = vector.load %arg10[%c32_53, %c0_54] : memref<64x128xbf16, #tpu.memory_space<vmem>>, vector<8x128xbf16>
    tpu.vector_store %arg10[%c32_53, %c0_54], %167 {strides = array<i32>} : memref<64x128xbf16, #tpu.memory_space<vmem>>, vector<8x128xbf16>,
    %c40 = arith.constant 40 : index
    %c0_55 = arith.constant 0 : index
    %169 = vector.load %arg11[%c40, %c0_55] : memref<64x512xf32, #tpu.memory_space<vmem>>, vector<8x512xf32>
    %170 = arith.truncf %166 : vector<8x128xf32> to vector<8x128xbf16>
    %c0_56 = arith.constant 0 : index
    %c0_57 = arith.constant 0 : index
    %171 = vector.load %arg2[%c0_56, %c0_57] : memref<128x512xbf16, #tpu.memory_space<vmem>>, vector<128x512xbf16>
    %cst_58 = arith.constant dense<0.000000e+00> : vector<8x512xf32>
    %172 = tpu.matmul %170, %171, %cst_58 {dimension_numbers = #tpu.dot_dimension_numbers<[1], [0], [0], [1], [0, 0, 1, 1], [], []>} : vector<8x128xbf16>, vector<128x512xbf16>, vector<8x512xf32> -> vector<8x512xf32>
    %173 = arith.addf %169, %172 : vector<8x512xf32>
    %174 = vector.extract_strided_slice %173 {offsets = [0, 0], sizes = [8, 128], strides = [1, 1]} : vector<8x512xf32> to vector<8x128xf32>
    %175 = arith.negf %174 : vector<8x128xf32>
    %176 = math.exp %175 : vector<8x128xf32>
    %cst_59 = arith.constant 1.000000e+00 : f32
    %177 = vector.broadcast %cst_59 : f32 to vector<8x128xf32>
    %178 = arith.addf %177, %176 : vector<8x128xf32>
    %179 = arith.divf %177, %178 : vector<8x128xf32>
    %180 = vector.extract_strided_slice %173 {offsets = [0, 128], sizes = [8, 128], strides = [1, 1]} : vector<8x512xf32> to vector<8x128xf32>
    %181 = arith.negf %180 : vector<8x128xf32>
    %182 = math.exp %181 : vector<8x128xf32>
    %cst_60 = arith.constant 1.000000e+00 : f32
    %183 = vector.broadcast %cst_60 : f32 to vector<8x128xf32>
    %184 = arith.addf %183, %182 : vector<8x128xf32>
    %185 = arith.divf %183, %184 : vector<8x128xf32>
    %186 = vector.extract_strided_slice %173 {offsets = [0, 256], sizes = [8, 128], strides = [1, 1]} : vector<8x512xf32> to vector<8x128xf32>
    %187 = math.tanh %186 : vector<8x128xf32>
    %188 = vector.extract_strided_slice %173 {offsets = [0, 384], sizes = [8, 128], strides = [1, 1]} : vector<8x512xf32> to vector<8x128xf32>
    %189 = arith.negf %188 : vector<8x128xf32>
    %190 = math.exp %189 : vector<8x128xf32>
    %cst_61 = arith.constant 1.000000e+00 : f32
    %191 = vector.broadcast %cst_61 : f32 to vector<8x128xf32>
    %192 = arith.addf %191, %190 : vector<8x128xf32>
    %193 = arith.divf %191, %192 : vector<8x128xf32>
    %194 = arith.mulf %185, %164 : vector<8x128xf32>
    %195 = arith.mulf %179, %187 : vector<8x128xf32>
    %196 = arith.addf %194, %195 : vector<8x128xf32>
    %197 = math.tanh %196 : vector<8x128xf32>
    %198 = arith.mulf %193, %197 : vector<8x128xf32>
    %199 = arith.truncf %198 : vector<8x128xf32> to vector<8x128xbf16>
    %c40_62 = arith.constant 40 : index
    %c0_63 = arith.constant 0 : index
    %200 = vector.load %arg10[%c40_62, %c0_63] : memref<64x128xbf16, #tpu.memory_space<vmem>>, vector<8x128xbf16>
    tpu.vector_store %arg10[%c40_62, %c0_63], %199 {strides = array<i32>} : memref<64x128xbf16, #tpu.memory_space<vmem>>, vector<8x128xbf16>,
    %c48 = arith.constant 48 : index
    %c0_64 = arith.constant 0 : index
    %201 = vector.load %arg11[%c48, %c0_64] : memref<64x512xf32, #tpu.memory_space<vmem>>, vector<8x512xf32>
    %202 = arith.truncf %198 : vector<8x128xf32> to vector<8x128xbf16>
    %c0_65 = arith.constant 0 : index
    %c0_66 = arith.constant 0 : index
    %203 = vector.load %arg2[%c0_65, %c0_66] : memref<128x512xbf16, #tpu.memory_space<vmem>>, vector<128x512xbf16>
    %cst_67 = arith.constant dense<0.000000e+00> : vector<8x512xf32>
    %204 = tpu.matmul %202, %203, %cst_67 {dimension_numbers = #tpu.dot_dimension_numbers<[1], [0], [0], [1], [0, 0, 1, 1], [], []>} : vector<8x128xbf16>, vector<128x512xbf16>, vector<8x512xf32> -> vector<8x512xf32>
    %205 = arith.addf %201, %204 : vector<8x512xf32>
    %206 = vector.extract_strided_slice %205 {offsets = [0, 0], sizes = [8, 128], strides = [1, 1]} : vector<8x512xf32> to vector<8x128xf32>
    %207 = arith.negf %206 : vector<8x128xf32>
    %208 = math.exp %207 : vector<8x128xf32>
    %cst_68 = arith.constant 1.000000e+00 : f32
    %209 = vector.broadcast %cst_68 : f32 to vector<8x128xf32>
    %210 = arith.addf %209, %208 : vector<8x128xf32>
    %211 = arith.divf %209, %210 : vector<8x128xf32>
    %212 = vector.extract_strided_slice %205 {offsets = [0, 128], sizes = [8, 128], strides = [1, 1]} : vector<8x512xf32> to vector<8x128xf32>
    %213 = arith.negf %212 : vector<8x128xf32>
    %214 = math.exp %213 : vector<8x128xf32>
    %cst_69 = arith.constant 1.000000e+00 : f32
    %215 = vector.broadcast %cst_69 : f32 to vector<8x128xf32>
    %216 = arith.addf %215, %214 : vector<8x128xf32>
    %217 = arith.divf %215, %216 : vector<8x128xf32>
    %218 = vector.extract_strided_slice %205 {offsets = [0, 256], sizes = [8, 128], strides = [1, 1]} : vector<8x512xf32> to vector<8x128xf32>
    %219 = math.tanh %218 : vector<8x128xf32>
    %220 = vector.extract_strided_slice %205 {offsets = [0, 384], sizes = [8, 128], strides = [1, 1]} : vector<8x512xf32> to vector<8x128xf32>
    %221 = arith.negf %220 : vector<8x128xf32>
    %222 = math.exp %221 : vector<8x128xf32>
    %cst_70 = arith.constant 1.000000e+00 : f32
    %223 = vector.broadcast %cst_70 : f32 to vector<8x128xf32>
    %224 = arith.addf %223, %222 : vector<8x128xf32>
    %225 = arith.divf %223, %224 : vector<8x128xf32>
    %226 = arith.mulf %217, %196 : vector<8x128xf32>
    %227 = arith.mulf %211, %219 : vector<8x128xf32>
    %228 = arith.addf %226, %227 : vector<8x128xf32>
    %229 = math.tanh %228 : vector<8x128xf32>
    %230 = arith.mulf %225, %229 : vector<8x128xf32>
    %231 = arith.truncf %230 : vector<8x128xf32> to vector<8x128xbf16>
    %c48_71 = arith.constant 48 : index
    %c0_72 = arith.constant 0 : index
    %232 = vector.load %arg10[%c48_71, %c0_72] : memref<64x128xbf16, #tpu.memory_space<vmem>>, vector<8x128xbf16>
    tpu.vector_store %arg10[%c48_71, %c0_72], %231 {strides = array<i32>} : memref<64x128xbf16, #tpu.memory_space<vmem>>, vector<8x128xbf16>,
    %c56 = arith.constant 56 : index
    %c0_73 = arith.constant 0 : index
    %233 = vector.load %arg11[%c56, %c0_73] : memref<64x512xf32, #tpu.memory_space<vmem>>, vector<8x512xf32>
    %234 = arith.truncf %230 : vector<8x128xf32> to vector<8x128xbf16>
    %c0_74 = arith.constant 0 : index
    %c0_75 = arith.constant 0 : index
    %235 = vector.load %arg2[%c0_74, %c0_75] : memref<128x512xbf16, #tpu.memory_space<vmem>>, vector<128x512xbf16>
    %cst_76 = arith.constant dense<0.000000e+00> : vector<8x512xf32>
    %236 = tpu.matmul %234, %235, %cst_76 {dimension_numbers = #tpu.dot_dimension_numbers<[1], [0], [0], [1], [0, 0, 1, 1], [], []>} : vector<8x128xbf16>, vector<128x512xbf16>, vector<8x512xf32> -> vector<8x512xf32>
    %237 = arith.addf %233, %236 : vector<8x512xf32>
    %238 = vector.extract_strided_slice %237 {offsets = [0, 0], sizes = [8, 128], strides = [1, 1]} : vector<8x512xf32> to vector<8x128xf32>
    %239 = arith.negf %238 : vector<8x128xf32>
    %240 = math.exp %239 : vector<8x128xf32>
    %cst_77 = arith.constant 1.000000e+00 : f32
    %241 = vector.broadcast %cst_77 : f32 to vector<8x128xf32>
    %242 = arith.addf %241, %240 : vector<8x128xf32>
    %243 = arith.divf %241, %242 : vector<8x128xf32>
    %244 = vector.extract_strided_slice %237 {offsets = [0, 128], sizes = [8, 128], strides = [1, 1]} : vector<8x512xf32> to vector<8x128xf32>
    %245 = arith.negf %244 : vector<8x128xf32>
    %246 = math.exp %245 : vector<8x128xf32>
    %cst_78 = arith.constant 1.000000e+00 : f32
    %247 = vector.broadcast %cst_78 : f32 to vector<8x128xf32>
    %248 = arith.addf %247, %246 : vector<8x128xf32>
    %249 = arith.divf %247, %248 : vector<8x128xf32>
    %250 = vector.extract_strided_slice %237 {offsets = [0, 256], sizes = [8, 128], strides = [1, 1]} : vector<8x512xf32> to vector<8x128xf32>
    %251 = math.tanh %250 : vector<8x128xf32>
    %252 = vector.extract_strided_slice %237 {offsets = [0, 384], sizes = [8, 128], strides = [1, 1]} : vector<8x512xf32> to vector<8x128xf32>
    %253 = arith.negf %252 : vector<8x128xf32>
    %254 = math.exp %253 : vector<8x128xf32>
    %cst_79 = arith.constant 1.000000e+00 : f32
    %255 = vector.broadcast %cst_79 : f32 to vector<8x128xf32>
    %256 = arith.addf %255, %254 : vector<8x128xf32>
    %257 = arith.divf %255, %256 : vector<8x128xf32>
    %258 = arith.mulf %249, %228 : vector<8x128xf32>
    %259 = arith.mulf %243, %251 : vector<8x128xf32>
    %260 = arith.addf %258, %259 : vector<8x128xf32>
    %261 = math.tanh %260 : vector<8x128xf32>
    %262 = arith.mulf %257, %261 : vector<8x128xf32>
    %263 = arith.truncf %262 : vector<8x128xf32> to vector<8x128xbf16>
    %c56_80 = arith.constant 56 : index
    %c0_81 = arith.constant 0 : index
    %264 = vector.load %arg10[%c56_80, %c0_81] : memref<64x128xbf16, #tpu.memory_space<vmem>>, vector<8x128xbf16>
    tpu.vector_store %arg10[%c56_80, %c0_81], %263 {strides = array<i32>} : memref<64x128xbf16, #tpu.memory_space<vmem>>, vector<8x128xbf16>,
    %c0_82 = arith.constant 0 : index
    %c0_83 = arith.constant 0 : index
    %265 = vector.load %arg10[%c0_82, %c0_83] : memref<64x128xbf16, #tpu.memory_space<vmem>>, vector<64x128xbf16>
    %c0_84 = arith.constant 0 : index
    %c0_85 = arith.constant 0 : index
    %266 = vector.load %arg4[%c0_84, %c0_85] : memref<128x512xbf16, #tpu.memory_space<vmem>>, vector<128x512xbf16>
    %cst_86 = arith.constant dense<0.000000e+00> : vector<64x512xf32>
    %267 = tpu.matmul %265, %266, %cst_86 {dimension_numbers = #tpu.dot_dimension_numbers<[1], [0], [0], [1], [0, 0, 1, 1], [], []>} : vector<64x128xbf16>, vector<128x512xbf16>, vector<64x512xf32> -> vector<64x512xf32>
    %c0_87 = arith.constant 0 : index
    %c0_88 = arith.constant 0 : index
    %268 = vector.load %arg6[%c0_87, %c0_88] : memref<1x512xf32, #tpu.memory_space<vmem>>, vector<1x512xf32>
    %269 = vector.broadcast %268 : vector<1x512xf32> to vector<64x512xf32>
    %270 = arith.addf %267, %269 : vector<64x512xf32>
    %c0_89 = arith.constant 0 : index
    %c0_90 = arith.constant 0 : index
    %271 = vector.load %arg11[%c0_89, %c0_90] : memref<64x512xf32, #tpu.memory_space<vmem>>, vector<64x512xf32>
    tpu.vector_store %arg11[%c0_89, %c0_90], %270 {strides = array<i32>} : memref<64x512xf32, #tpu.memory_space<vmem>>, vector<64x512xf32>,
    %cst_91 = arith.constant 0.000000e+00 : f32
    %272 = vector.broadcast %cst_91 : f32 to vector<8x128xf32>
    %cst_92 = arith.constant 0.000000e+00 : f32
    %273 = vector.broadcast %cst_92 : f32 to vector<8x128xf32>
    %c0_93 = arith.constant 0 : index
    %c0_94 = arith.constant 0 : index
    %274 = vector.load %arg11[%c0_93, %c0_94] : memref<64x512xf32, #tpu.memory_space<vmem>>, vector<8x512xf32>
    %275 = arith.truncf %272 : vector<8x128xf32> to vector<8x128xbf16>
    %c0_95 = arith.constant 0 : index
    %c0_96 = arith.constant 0 : index
    %276 = vector.load %arg5[%c0_95, %c0_96] : memref<128x512xbf16, #tpu.memory_space<vmem>>, vector<128x512xbf16>
    %cst_97 = arith.constant dense<0.000000e+00> : vector<8x512xf32>
    %277 = tpu.matmul %275, %276, %cst_97 {dimension_numbers = #tpu.dot_dimension_numbers<[1], [0], [0], [1], [0, 0, 1, 1], [], []>} : vector<8x128xbf16>, vector<128x512xbf16>, vector<8x512xf32> -> vector<8x512xf32>
    %278 = arith.addf %274, %277 : vector<8x512xf32>
    %279 = vector.extract_strided_slice %278 {offsets = [0, 0], sizes = [8, 128], strides = [1, 1]} : vector<8x512xf32> to vector<8x128xf32>
    %280 = arith.negf %279 : vector<8x128xf32>
    %281 = math.exp %280 : vector<8x128xf32>
    %cst_98 = arith.constant 1.000000e+00 : f32
    %282 = vector.broadcast %cst_98 : f32 to vector<8x128xf32>
    %283 = arith.addf %282, %281 : vector<8x128xf32>
    %284 = arith.divf %282, %283 : vector<8x128xf32>
    %285 = vector.extract_strided_slice %278 {offsets = [0, 128], sizes = [8, 128], strides = [1, 1]} : vector<8x512xf32> to vector<8x128xf32>
    %286 = arith.negf %285 : vector<8x128xf32>
    %287 = math.exp %286 : vector<8x128xf32>
    %cst_99 = arith.constant 1.000000e+00 : f32
    %288 = vector.broadcast %cst_99 : f32 to vector<8x128xf32>
    %289 = arith.addf %288, %287 : vector<8x128xf32>
    %290 = arith.divf %288, %289 : vector<8x128xf32>
    %291 = vector.extract_strided_slice %278 {offsets = [0, 256], sizes = [8, 128], strides = [1, 1]} : vector<8x512xf32> to vector<8x128xf32>
    %292 = math.tanh %291 : vector<8x128xf32>
    %293 = vector.extract_strided_slice %278 {offsets = [0, 384], sizes = [8, 128], strides = [1, 1]} : vector<8x512xf32> to vector<8x128xf32>
    %294 = arith.negf %293 : vector<8x128xf32>
    %295 = math.exp %294 : vector<8x128xf32>
    %cst_100 = arith.constant 1.000000e+00 : f32
    %296 = vector.broadcast %cst_100 : f32 to vector<8x128xf32>
    %297 = arith.addf %296, %295 : vector<8x128xf32>
    %298 = arith.divf %296, %297 : vector<8x128xf32>
    %299 = arith.mulf %290, %273 : vector<8x128xf32>
    %300 = arith.mulf %284, %292 : vector<8x128xf32>
    %301 = arith.addf %299, %300 : vector<8x128xf32>
    %302 = math.tanh %301 : vector<8x128xf32>
    %303 = arith.mulf %298, %302 : vector<8x128xf32>
    %c8_101 = arith.constant 8 : index
    %c0_102 = arith.constant 0 : index
    %304 = vector.load %arg11[%c8_101, %c0_102] : memref<64x512xf32, #tpu.memory_space<vmem>>, vector<8x512xf32>
    %305 = arith.truncf %303 : vector<8x128xf32> to vector<8x128xbf16>
    %c0_103 = arith.constant 0 : index
    %c0_104 = arith.constant 0 : index
    %306 = vector.load %arg5[%c0_103, %c0_104] : memref<128x512xbf16, #tpu.memory_space<vmem>>, vector<128x512xbf16>
    %cst_105 = arith.constant dense<0.000000e+00> : vector<8x512xf32>
    %307 = tpu.matmul %305, %306, %cst_105 {dimension_numbers = #tpu.dot_dimension_numbers<[1], [0], [0], [1], [0, 0, 1, 1], [], []>} : vector<8x128xbf16>, vector<128x512xbf16>, vector<8x512xf32> -> vector<8x512xf32>
    %308 = arith.addf %304, %307 : vector<8x512xf32>
    %309 = vector.extract_strided_slice %308 {offsets = [0, 0], sizes = [8, 128], strides = [1, 1]} : vector<8x512xf32> to vector<8x128xf32>
    %310 = arith.negf %309 : vector<8x128xf32>
    %311 = math.exp %310 : vector<8x128xf32>
    %cst_106 = arith.constant 1.000000e+00 : f32
    %312 = vector.broadcast %cst_106 : f32 to vector<8x128xf32>
    %313 = arith.addf %312, %311 : vector<8x128xf32>
    %314 = arith.divf %312, %313 : vector<8x128xf32>
    %315 = vector.extract_strided_slice %308 {offsets = [0, 128], sizes = [8, 128], strides = [1, 1]} : vector<8x512xf32> to vector<8x128xf32>
    %316 = arith.negf %315 : vector<8x128xf32>
    %317 = math.exp %316 : vector<8x128xf32>
    %cst_107 = arith.constant 1.000000e+00 : f32
    %318 = vector.broadcast %cst_107 : f32 to vector<8x128xf32>
    %319 = arith.addf %318, %317 : vector<8x128xf32>
    %320 = arith.divf %318, %319 : vector<8x128xf32>
    %321 = vector.extract_strided_slice %308 {offsets = [0, 256], sizes = [8, 128], strides = [1, 1]} : vector<8x512xf32> to vector<8x128xf32>
    %322 = math.tanh %321 : vector<8x128xf32>
    %323 = vector.extract_strided_slice %308 {offsets = [0, 384], sizes = [8, 128], strides = [1, 1]} : vector<8x512xf32> to vector<8x128xf32>
    %324 = arith.negf %323 : vector<8x128xf32>
    %325 = math.exp %324 : vector<8x128xf32>
    %cst_108 = arith.constant 1.000000e+00 : f32
    %326 = vector.broadcast %cst_108 : f32 to vector<8x128xf32>
    %327 = arith.addf %326, %325 : vector<8x128xf32>
    %328 = arith.divf %326, %327 : vector<8x128xf32>
    %329 = arith.mulf %320, %301 : vector<8x128xf32>
    %330 = arith.mulf %314, %322 : vector<8x128xf32>
    %331 = arith.addf %329, %330 : vector<8x128xf32>
    %332 = math.tanh %331 : vector<8x128xf32>
    %333 = arith.mulf %328, %332 : vector<8x128xf32>
    %c16_109 = arith.constant 16 : index
    %c0_110 = arith.constant 0 : index
    %334 = vector.load %arg11[%c16_109, %c0_110] : memref<64x512xf32, #tpu.memory_space<vmem>>, vector<8x512xf32>
    %335 = arith.truncf %333 : vector<8x128xf32> to vector<8x128xbf16>
    %c0_111 = arith.constant 0 : index
    %c0_112 = arith.constant 0 : index
    %336 = vector.load %arg5[%c0_111, %c0_112] : memref<128x512xbf16, #tpu.memory_space<vmem>>, vector<128x512xbf16>
    %cst_113 = arith.constant dense<0.000000e+00> : vector<8x512xf32>
    %337 = tpu.matmul %335, %336, %cst_113 {dimension_numbers = #tpu.dot_dimension_numbers<[1], [0], [0], [1], [0, 0, 1, 1], [], []>} : vector<8x128xbf16>, vector<128x512xbf16>, vector<8x512xf32> -> vector<8x512xf32>
    %338 = arith.addf %334, %337 : vector<8x512xf32>
    %339 = vector.extract_strided_slice %338 {offsets = [0, 0], sizes = [8, 128], strides = [1, 1]} : vector<8x512xf32> to vector<8x128xf32>
    %340 = arith.negf %339 : vector<8x128xf32>
    %341 = math.exp %340 : vector<8x128xf32>
    %cst_114 = arith.constant 1.000000e+00 : f32
    %342 = vector.broadcast %cst_114 : f32 to vector<8x128xf32>
    %343 = arith.addf %342, %341 : vector<8x128xf32>
    %344 = arith.divf %342, %343 : vector<8x128xf32>
    %345 = vector.extract_strided_slice %338 {offsets = [0, 128], sizes = [8, 128], strides = [1, 1]} : vector<8x512xf32> to vector<8x128xf32>
    %346 = arith.negf %345 : vector<8x128xf32>
    %347 = math.exp %346 : vector<8x128xf32>
    %cst_115 = arith.constant 1.000000e+00 : f32
    %348 = vector.broadcast %cst_115 : f32 to vector<8x128xf32>
    %349 = arith.addf %348, %347 : vector<8x128xf32>
    %350 = arith.divf %348, %349 : vector<8x128xf32>
    %351 = vector.extract_strided_slice %338 {offsets = [0, 256], sizes = [8, 128], strides = [1, 1]} : vector<8x512xf32> to vector<8x128xf32>
    %352 = math.tanh %351 : vector<8x128xf32>
    %353 = vector.extract_strided_slice %338 {offsets = [0, 384], sizes = [8, 128], strides = [1, 1]} : vector<8x512xf32> to vector<8x128xf32>
    %354 = arith.negf %353 : vector<8x128xf32>
    %355 = math.exp %354 : vector<8x128xf32>
    %cst_116 = arith.constant 1.000000e+00 : f32
    %356 = vector.broadcast %cst_116 : f32 to vector<8x128xf32>
    %357 = arith.addf %356, %355 : vector<8x128xf32>
    %358 = arith.divf %356, %357 : vector<8x128xf32>
    %359 = arith.mulf %350, %331 : vector<8x128xf32>
    %360 = arith.mulf %344, %352 : vector<8x128xf32>
    %361 = arith.addf %359, %360 : vector<8x128xf32>
    %362 = math.tanh %361 : vector<8x128xf32>
    %363 = arith.mulf %358, %362 : vector<8x128xf32>
    %c24_117 = arith.constant 24 : index
    %c0_118 = arith.constant 0 : index
    %364 = vector.load %arg11[%c24_117, %c0_118] : memref<64x512xf32, #tpu.memory_space<vmem>>, vector<8x512xf32>
    %365 = arith.truncf %363 : vector<8x128xf32> to vector<8x128xbf16>
    %c0_119 = arith.constant 0 : index
    %c0_120 = arith.constant 0 : index
    %366 = vector.load %arg5[%c0_119, %c0_120] : memref<128x512xbf16, #tpu.memory_space<vmem>>, vector<128x512xbf16>
    %cst_121 = arith.constant dense<0.000000e+00> : vector<8x512xf32>
    %367 = tpu.matmul %365, %366, %cst_121 {dimension_numbers = #tpu.dot_dimension_numbers<[1], [0], [0], [1], [0, 0, 1, 1], [], []>} : vector<8x128xbf16>, vector<128x512xbf16>, vector<8x512xf32> -> vector<8x512xf32>
    %368 = arith.addf %364, %367 : vector<8x512xf32>
    %369 = vector.extract_strided_slice %368 {offsets = [0, 0], sizes = [8, 128], strides = [1, 1]} : vector<8x512xf32> to vector<8x128xf32>
    %370 = arith.negf %369 : vector<8x128xf32>
    %371 = math.exp %370 : vector<8x128xf32>
    %cst_122 = arith.constant 1.000000e+00 : f32
    %372 = vector.broadcast %cst_122 : f32 to vector<8x128xf32>
    %373 = arith.addf %372, %371 : vector<8x128xf32>
    %374 = arith.divf %372, %373 : vector<8x128xf32>
    %375 = vector.extract_strided_slice %368 {offsets = [0, 128], sizes = [8, 128], strides = [1, 1]} : vector<8x512xf32> to vector<8x128xf32>
    %376 = arith.negf %375 : vector<8x128xf32>
    %377 = math.exp %376 : vector<8x128xf32>
    %cst_123 = arith.constant 1.000000e+00 : f32
    %378 = vector.broadcast %cst_123 : f32 to vector<8x128xf32>
    %379 = arith.addf %378, %377 : vector<8x128xf32>
    %380 = arith.divf %378, %379 : vector<8x128xf32>
    %381 = vector.extract_strided_slice %368 {offsets = [0, 256], sizes = [8, 128], strides = [1, 1]} : vector<8x512xf32> to vector<8x128xf32>
    %382 = math.tanh %381 : vector<8x128xf32>
    %383 = vector.extract_strided_slice %368 {offsets = [0, 384], sizes = [8, 128], strides = [1, 1]} : vector<8x512xf32> to vector<8x128xf32>
    %384 = arith.negf %383 : vector<8x128xf32>
    %385 = math.exp %384 : vector<8x128xf32>
    %cst_124 = arith.constant 1.000000e+00 : f32
    %386 = vector.broadcast %cst_124 : f32 to vector<8x128xf32>
    %387 = arith.addf %386, %385 : vector<8x128xf32>
    %388 = arith.divf %386, %387 : vector<8x128xf32>
    %389 = arith.mulf %380, %361 : vector<8x128xf32>
    %390 = arith.mulf %374, %382 : vector<8x128xf32>
    %391 = arith.addf %389, %390 : vector<8x128xf32>
    %392 = math.tanh %391 : vector<8x128xf32>
    %393 = arith.mulf %388, %392 : vector<8x128xf32>
    %c32_125 = arith.constant 32 : index
    %c0_126 = arith.constant 0 : index
    %394 = vector.load %arg11[%c32_125, %c0_126] : memref<64x512xf32, #tpu.memory_space<vmem>>, vector<8x512xf32>
    %395 = arith.truncf %393 : vector<8x128xf32> to vector<8x128xbf16>
    %c0_127 = arith.constant 0 : index
    %c0_128 = arith.constant 0 : index
    %396 = vector.load %arg5[%c0_127, %c0_128] : memref<128x512xbf16, #tpu.memory_space<vmem>>, vector<128x512xbf16>
    %cst_129 = arith.constant dense<0.000000e+00> : vector<8x512xf32>
    %397 = tpu.matmul %395, %396, %cst_129 {dimension_numbers = #tpu.dot_dimension_numbers<[1], [0], [0], [1], [0, 0, 1, 1], [], []>} : vector<8x128xbf16>, vector<128x512xbf16>, vector<8x512xf32> -> vector<8x512xf32>
    %398 = arith.addf %394, %397 : vector<8x512xf32>
    %399 = vector.extract_strided_slice %398 {offsets = [0, 0], sizes = [8, 128], strides = [1, 1]} : vector<8x512xf32> to vector<8x128xf32>
    %400 = arith.negf %399 : vector<8x128xf32>
    %401 = math.exp %400 : vector<8x128xf32>
    %cst_130 = arith.constant 1.000000e+00 : f32
    %402 = vector.broadcast %cst_130 : f32 to vector<8x128xf32>
    %403 = arith.addf %402, %401 : vector<8x128xf32>
    %404 = arith.divf %402, %403 : vector<8x128xf32>
    %405 = vector.extract_strided_slice %398 {offsets = [0, 128], sizes = [8, 128], strides = [1, 1]} : vector<8x512xf32> to vector<8x128xf32>
    %406 = arith.negf %405 : vector<8x128xf32>
    %407 = math.exp %406 : vector<8x128xf32>
    %cst_131 = arith.constant 1.000000e+00 : f32
    %408 = vector.broadcast %cst_131 : f32 to vector<8x128xf32>
    %409 = arith.addf %408, %407 : vector<8x128xf32>
    %410 = arith.divf %408, %409 : vector<8x128xf32>
    %411 = vector.extract_strided_slice %398 {offsets = [0, 256], sizes = [8, 128], strides = [1, 1]} : vector<8x512xf32> to vector<8x128xf32>
    %412 = math.tanh %411 : vector<8x128xf32>
    %413 = vector.extract_strided_slice %398 {offsets = [0, 384], sizes = [8, 128], strides = [1, 1]} : vector<8x512xf32> to vector<8x128xf32>
    %414 = arith.negf %413 : vector<8x128xf32>
    %415 = math.exp %414 : vector<8x128xf32>
    %cst_132 = arith.constant 1.000000e+00 : f32
    %416 = vector.broadcast %cst_132 : f32 to vector<8x128xf32>
    %417 = arith.addf %416, %415 : vector<8x128xf32>
    %418 = arith.divf %416, %417 : vector<8x128xf32>
    %419 = arith.mulf %410, %391 : vector<8x128xf32>
    %420 = arith.mulf %404, %412 : vector<8x128xf32>
    %421 = arith.addf %419, %420 : vector<8x128xf32>
    %422 = math.tanh %421 : vector<8x128xf32>
    %423 = arith.mulf %418, %422 : vector<8x128xf32>
    %c40_133 = arith.constant 40 : index
    %c0_134 = arith.constant 0 : index
    %424 = vector.load %arg11[%c40_133, %c0_134] : memref<64x512xf32, #tpu.memory_space<vmem>>, vector<8x512xf32>
    %425 = arith.truncf %423 : vector<8x128xf32> to vector<8x128xbf16>
    %c0_135 = arith.constant 0 : index
    %c0_136 = arith.constant 0 : index
    %426 = vector.load %arg5[%c0_135, %c0_136] : memref<128x512xbf16, #tpu.memory_space<vmem>>, vector<128x512xbf16>
    %cst_137 = arith.constant dense<0.000000e+00> : vector<8x512xf32>
    %427 = tpu.matmul %425, %426, %cst_137 {dimension_numbers = #tpu.dot_dimension_numbers<[1], [0], [0], [1], [0, 0, 1, 1], [], []>} : vector<8x128xbf16>, vector<128x512xbf16>, vector<8x512xf32> -> vector<8x512xf32>
    %428 = arith.addf %424, %427 : vector<8x512xf32>
    %429 = vector.extract_strided_slice %428 {offsets = [0, 0], sizes = [8, 128], strides = [1, 1]} : vector<8x512xf32> to vector<8x128xf32>
    %430 = arith.negf %429 : vector<8x128xf32>
    %431 = math.exp %430 : vector<8x128xf32>
    %cst_138 = arith.constant 1.000000e+00 : f32
    %432 = vector.broadcast %cst_138 : f32 to vector<8x128xf32>
    %433 = arith.addf %432, %431 : vector<8x128xf32>
    %434 = arith.divf %432, %433 : vector<8x128xf32>
    %435 = vector.extract_strided_slice %428 {offsets = [0, 128], sizes = [8, 128], strides = [1, 1]} : vector<8x512xf32> to vector<8x128xf32>
    %436 = arith.negf %435 : vector<8x128xf32>
    %437 = math.exp %436 : vector<8x128xf32>
    %cst_139 = arith.constant 1.000000e+00 : f32
    %438 = vector.broadcast %cst_139 : f32 to vector<8x128xf32>
    %439 = arith.addf %438, %437 : vector<8x128xf32>
    %440 = arith.divf %438, %439 : vector<8x128xf32>
    %441 = vector.extract_strided_slice %428 {offsets = [0, 256], sizes = [8, 128], strides = [1, 1]} : vector<8x512xf32> to vector<8x128xf32>
    %442 = math.tanh %441 : vector<8x128xf32>
    %443 = vector.extract_strided_slice %428 {offsets = [0, 384], sizes = [8, 128], strides = [1, 1]} : vector<8x512xf32> to vector<8x128xf32>
    %444 = arith.negf %443 : vector<8x128xf32>
    %445 = math.exp %444 : vector<8x128xf32>
    %cst_140 = arith.constant 1.000000e+00 : f32
    %446 = vector.broadcast %cst_140 : f32 to vector<8x128xf32>
    %447 = arith.addf %446, %445 : vector<8x128xf32>
    %448 = arith.divf %446, %447 : vector<8x128xf32>
    %449 = arith.mulf %440, %421 : vector<8x128xf32>
    %450 = arith.mulf %434, %442 : vector<8x128xf32>
    %451 = arith.addf %449, %450 : vector<8x128xf32>
    %452 = math.tanh %451 : vector<8x128xf32>
    %453 = arith.mulf %448, %452 : vector<8x128xf32>
    %c48_141 = arith.constant 48 : index
    %c0_142 = arith.constant 0 : index
    %454 = vector.load %arg11[%c48_141, %c0_142] : memref<64x512xf32, #tpu.memory_space<vmem>>, vector<8x512xf32>
    %455 = arith.truncf %453 : vector<8x128xf32> to vector<8x128xbf16>
    %c0_143 = arith.constant 0 : index
    %c0_144 = arith.constant 0 : index
    %456 = vector.load %arg5[%c0_143, %c0_144] : memref<128x512xbf16, #tpu.memory_space<vmem>>, vector<128x512xbf16>
    %cst_145 = arith.constant dense<0.000000e+00> : vector<8x512xf32>
    %457 = tpu.matmul %455, %456, %cst_145 {dimension_numbers = #tpu.dot_dimension_numbers<[1], [0], [0], [1], [0, 0, 1, 1], [], []>} : vector<8x128xbf16>, vector<128x512xbf16>, vector<8x512xf32> -> vector<8x512xf32>
    %458 = arith.addf %454, %457 : vector<8x512xf32>
    %459 = vector.extract_strided_slice %458 {offsets = [0, 0], sizes = [8, 128], strides = [1, 1]} : vector<8x512xf32> to vector<8x128xf32>
    %460 = arith.negf %459 : vector<8x128xf32>
    %461 = math.exp %460 : vector<8x128xf32>
    %cst_146 = arith.constant 1.000000e+00 : f32
    %462 = vector.broadcast %cst_146 : f32 to vector<8x128xf32>
    %463 = arith.addf %462, %461 : vector<8x128xf32>
    %464 = arith.divf %462, %463 : vector<8x128xf32>
    %465 = vector.extract_strided_slice %458 {offsets = [0, 128], sizes = [8, 128], strides = [1, 1]} : vector<8x512xf32> to vector<8x128xf32>
    %466 = arith.negf %465 : vector<8x128xf32>
    %467 = math.exp %466 : vector<8x128xf32>
    %cst_147 = arith.constant 1.000000e+00 : f32
    %468 = vector.broadcast %cst_147 : f32 to vector<8x128xf32>
    %469 = arith.addf %468, %467 : vector<8x128xf32>
    %470 = arith.divf %468, %469 : vector<8x128xf32>
    %471 = vector.extract_strided_slice %458 {offsets = [0, 256], sizes = [8, 128], strides = [1, 1]} : vector<8x512xf32> to vector<8x128xf32>
    %472 = math.tanh %471 : vector<8x128xf32>
    %473 = vector.extract_strided_slice %458 {offsets = [0, 384], sizes = [8, 128], strides = [1, 1]} : vector<8x512xf32> to vector<8x128xf32>
    %474 = arith.negf %473 : vector<8x128xf32>
    %475 = math.exp %474 : vector<8x128xf32>
    %cst_148 = arith.constant 1.000000e+00 : f32
    %476 = vector.broadcast %cst_148 : f32 to vector<8x128xf32>
    %477 = arith.addf %476, %475 : vector<8x128xf32>
    %478 = arith.divf %476, %477 : vector<8x128xf32>
    %479 = arith.mulf %470, %451 : vector<8x128xf32>
    %480 = arith.mulf %464, %472 : vector<8x128xf32>
    %481 = arith.addf %479, %480 : vector<8x128xf32>
    %482 = math.tanh %481 : vector<8x128xf32>
    %483 = arith.mulf %478, %482 : vector<8x128xf32>
    %c56_149 = arith.constant 56 : index
    %c0_150 = arith.constant 0 : index
    %484 = vector.load %arg11[%c56_149, %c0_150] : memref<64x512xf32, #tpu.memory_space<vmem>>, vector<8x512xf32>
    %485 = arith.truncf %483 : vector<8x128xf32> to vector<8x128xbf16>
    %c0_151 = arith.constant 0 : index
    %c0_152 = arith.constant 0 : index
    %486 = vector.load %arg5[%c0_151, %c0_152] : memref<128x512xbf16, #tpu.memory_space<vmem>>, vector<128x512xbf16>
    %cst_153 = arith.constant dense<0.000000e+00> : vector<8x512xf32>
    %487 = tpu.matmul %485, %486, %cst_153 {dimension_numbers = #tpu.dot_dimension_numbers<[1], [0], [0], [1], [0, 0, 1, 1], [], []>} : vector<8x128xbf16>, vector<128x512xbf16>, vector<8x512xf32> -> vector<8x512xf32>
    %488 = arith.addf %484, %487 : vector<8x512xf32>
    %489 = vector.extract_strided_slice %488 {offsets = [0, 0], sizes = [8, 128], strides = [1, 1]} : vector<8x512xf32> to vector<8x128xf32>
    %490 = arith.negf %489 : vector<8x128xf32>
    %491 = math.exp %490 : vector<8x128xf32>
    %cst_154 = arith.constant 1.000000e+00 : f32
    %492 = vector.broadcast %cst_154 : f32 to vector<8x128xf32>
    %493 = arith.addf %492, %491 : vector<8x128xf32>
    %494 = arith.divf %492, %493 : vector<8x128xf32>
    %495 = vector.extract_strided_slice %488 {offsets = [0, 128], sizes = [8, 128], strides = [1, 1]} : vector<8x512xf32> to vector<8x128xf32>
    %496 = arith.negf %495 : vector<8x128xf32>
    %497 = math.exp %496 : vector<8x128xf32>
    %cst_155 = arith.constant 1.000000e+00 : f32
    %498 = vector.broadcast %cst_155 : f32 to vector<8x128xf32>
    %499 = arith.addf %498, %497 : vector<8x128xf32>
    %500 = arith.divf %498, %499 : vector<8x128xf32>
    %501 = vector.extract_strided_slice %488 {offsets = [0, 256], sizes = [8, 128], strides = [1, 1]} : vector<8x512xf32> to vector<8x128xf32>
    %502 = math.tanh %501 : vector<8x128xf32>
    %503 = vector.extract_strided_slice %488 {offsets = [0, 384], sizes = [8, 128], strides = [1, 1]} : vector<8x512xf32> to vector<8x128xf32>
    %504 = arith.negf %503 : vector<8x128xf32>
    %505 = math.exp %504 : vector<8x128xf32>
    %cst_156 = arith.constant 1.000000e+00 : f32
    %506 = vector.broadcast %cst_156 : f32 to vector<8x128xf32>
    %507 = arith.addf %506, %505 : vector<8x128xf32>
    %508 = arith.divf %506, %507 : vector<8x128xf32>
    %509 = arith.mulf %500, %481 : vector<8x128xf32>
    %510 = arith.mulf %494, %502 : vector<8x128xf32>
    %511 = arith.addf %509, %510 : vector<8x128xf32>
    %512 = math.tanh %511 : vector<8x128xf32>
    %513 = arith.mulf %508, %512 : vector<8x128xf32>
    %514 = arith.truncf %513 : vector<8x128xf32> to vector<8x128xbf16>
    %c0_157 = arith.constant 0 : index
    %c0_158 = arith.constant 0 : index
    %515 = vector.load %arg7[%c0_157, %c0_158] : memref<128x128xbf16, #tpu.memory_space<vmem>>, vector<128x128xbf16>
    %cst_159 = arith.constant dense<0.000000e+00> : vector<8x128xf32>
    %516 = tpu.matmul %514, %515, %cst_159 {dimension_numbers = #tpu.dot_dimension_numbers<[1], [0], [0], [1], [0, 0, 1, 1], [], []>} : vector<8x128xbf16>, vector<128x128xbf16>, vector<8x128xf32> -> vector<8x128xf32>
    %c0_160 = arith.constant 0 : index
    %c0_161 = arith.constant 0 : index
    %517 = vector.load %arg8[%c0_160, %c0_161] : memref<1x128xf32, #tpu.memory_space<vmem>>, vector<1x128xf32>
    %518 = vector.broadcast %517 : vector<1x128xf32> to vector<8x128xf32>
    %519 = arith.addf %516, %518 : vector<8x128xf32>
    %c0_162 = arith.constant 0 : index
    %c0_163 = arith.constant 0 : index
    %520 = vector.load %arg9[%c0_162, %c0_163] : memref<8x128xf32, #tpu.memory_space<vmem>>, vector<8x128xf32>
    tpu.vector_store %arg9[%c0_162, %c0_163], %519 {strides = array<i32>} : memref<8x128xf32, #tpu.memory_space<vmem>>, vector<8x128xf32>,
    return
  }
}

</mosaic_0001>

<bundles_post_ra>
// kernel: tpu_custom_call.1
= control target key start
LH: loop header
LB: loop body
LE: loop exit
PB: predicated region body
PF: predicated region fallthrough
CT: control target
= control target key end

     0   :  { %14 = vsyncpa [#allocation5], 0  ;;  %s7953_s0 = inlined_call_operand.hbm [shape: bf16[64,128], index: 0, kind: input, shape index: {}]   ;;  %s7954_s1 = inlined_call_operand.hbm [shape: bf16[128,512], index: 1, kind: input, shape index: {}]   ;;  %s7955_s2 = inlined_call_operand.hbm [shape: bf16[128,512], index: 2, kind: input, shape index: {}]   ;;  %s7956_s3 = inlined_call_operand.hbm [shape: f32[1,512], index: 3, kind: input, shape index: {}]   ;;  %s7957_s4 = inlined_call_operand.hbm [shape: bf16[128,512], index: 4, kind: input, shape index: {}]   ;;  %s7958_s5 = inlined_call_operand.hbm [shape: bf16[128,512], index: 5, kind: input, shape index: {}]   ;;  %s7959_s6 = inlined_call_operand.vmem [shape: f32[1,512], index: 6, kind: input, shape index: {}]   ;;  %s7960_s7 = inlined_call_operand.hbm [shape: bf16[128,128], index: 7, kind: input, shape index: {}]   ;;  %s7961_s8 = inlined_call_operand.vmem [shape: f32[1,128], index: 8, kind: input, shape index: {}]   ;;  %s7962_s9 = inlined_call_operand.hbm [shape: f32[8,128], index: 9, kind: output, shape index: {}]  }
   0x1   :  { %15 = vsyncpa [#allocation8], 0 }
   0x2   :  { %16 = vsyncpa [#allocation11], 0 }
   0x3   :  { %17 = vsyncpa [#allocation14], 0  ;;  %s36_s11 = sshll.u32 %s7954_s1, 4  ;;  %s37_s11 = int_to_ptr.hbm [resolvable:$true] %s36_s11 }
   0x4   :  { %18 = vsyncpa [#allocation6], 0  ;;  %s7087_s12 = smov [#allocation7]   ;;  %s63_s16 = sshll.u32 %s7956_s3, 4  ;;  %s64_s16 = int_to_ptr.hbm [resolvable:$true] %s63_s16 }
   0x5   :  { %s38_s13 = sshll.u32 %s7087_s12, 4  ;;  %s7088_s17 = smov 256   ;;  %s39_s13 = int_to_ptr.vmem [resolvable:$true] %s38_s13 }
   0x6   :  { %s7089_s18 = smov 16   ;;  %s7090_s19 = smov [#allocation10]  }
   0x7   :  { %44 = dma.hbm_to_vmem [thread:$0]  %s37_s11, 4096, %s39_s13, [#allocation8], %s7088_s17, %s7088_s17, %s7089_s18  }
   0x8   :  { %s65_s20 = sshll.u32 %s7090_s19, 4  ;;  %s86_s22 = sshll.u32 %s7958_s5, 4  ;;  %s66_s20 = int_to_ptr.vmem [resolvable:$true] %s65_s20  ;;  %s87_s22 = int_to_ptr.hbm [resolvable:$true] %s86_s22 }
   0x9   :  { %68 = dma.hbm_to_vmem [thread:$0]  %s64_s16, 64, %s66_s20, [#allocation11]  }
   0xa   :  { %s23_s3 = sshll.u32 %s7953_s0, 4  ;;  %s7091_s25 = smov [#allocation13]   ;;  %s24_s3 = int_to_ptr.hbm [resolvable:$true] %s23_s3 }
   0xb   :  { %s88_s26 = sshll.u32 %s7091_s25, 4  ;;  %s7092_s27 = smov [#allocation4]   ;;  %s89_s26 = int_to_ptr.vmem [resolvable:$true] %s88_s26 }
   0xc   :  { %94 = dma.hbm_to_vmem [thread:$0]  %s87_s22, 4096, %s89_s26, [#allocation14], %s7088_s17, %s7088_s17, %s7089_s18  }
   0xd   :  { %s25_s28 = sshll.u32 %s7092_s27, 4  ;;  %s7093_s29 = smov 64   ;;  %s26_s28 = int_to_ptr.vmem [resolvable:$true] %s25_s28 }
   0xe   :  { %s7094_s5 = smov 4   ;;  %s49_s11 = sshll.u32 %s7955_s2, 4  ;;  %s50_s11 = int_to_ptr.hbm [resolvable:$true] %s49_s11 }
   0xf   :  { %31 = dma.hbm_to_vmem [thread:$0]  %s24_s3, 512, %s26_s28, [#allocation5], %s7093_s29, %s7093_s29, %s7094_s5  }
  0x10   :  { %s7095_s0 = smov [#allocation9]   ;;  %s73_s15 = sshll.u32 %s7957_s4, 4  ;;  %s74_s15 = int_to_ptr.hbm [resolvable:$true] %s73_s15 }
  0x11   :  { %s51_s12 = sshll.u32 %s7095_s0, 4  ;;  %s7096_s16 = smov [#allocation12]   ;;  %s52_s12 = int_to_ptr.vmem [resolvable:$true] %s51_s12 }
  0x12   :  { %57 = dma.hbm_to_vmem [thread:$0]  %s50_s11, 4096, %s52_s12, [#allocation8], %s7088_s17, %s7088_s17, %s7089_s18  }
  0x13   :  { %s75_s19 = sshll.u32 %s7096_s16, 4  ;;  %s101_s1 = sshll.u32 %s7960_s7, 4  ;;  %s76_s19 = int_to_ptr.vmem [resolvable:$true] %s75_s19  ;;  %s102_s1 = int_to_ptr.hbm [resolvable:$true] %s101_s1 }
  0x14   :  { %81 = dma.hbm_to_vmem [thread:$0]  %s74_s15, 4096, %s76_s19, [#allocation11], %s7088_s17, %s7088_s17, %s7089_s18  }
  0x15   :  { %s7097_s2 = smov [#allocation15]  }
  0x16   :  { %s103_s22 = sshll.u32 %s7097_s2, 4  ;;  %s104_s22 = int_to_ptr.vmem [resolvable:$true] %s103_s22 }
  0x17   :  { %109 = dma.hbm_to_vmem [thread:$0]  %s102_s1, 1024, %s104_s22, [#allocation14], %s7093_s29, %s7093_s29, %s7094_s5  }
  0x18   :  { %7077 = dma.done.wait [#allocation5], 512  }
  0x19   :  { %7078 = vsyncadd [#allocation5], 4294966784 }
  0x1a   :  { %7079 = dma.done.wait [#allocation8], 8192  }
  0x1b   :  { %7080 = vsyncadd [#allocation8], 4294959104 }
  0x1c   :  { %7081 = dma.done.wait [#allocation11], 4160  }
  0x1d   :  { %7082 = vsyncadd [#allocation11], 4294963136 }
  0x1e   :  { %7083 = dma.done.wait [#allocation14], 5120  }
  0x1f   :  { %7084 = vsyncadd [#allocation14], 4294962176  ;;  %v4857_v0 = vld [vmem:[#allocation7 + $0xe0] sm:$0xf]  ;;  %v6281_v1 = vld [vmem:[#allocation7 + $0xec] sm:$0xf0] }
  0x20   :  { %v6279_v2 = vld [vmem:[#allocation7 + $0xe4] sm:$0xf]  ;;  %v4858_v3 = vor.u32 %v6281_v1, %v4857_v0  ;;  %v4859_v4 = vld [vmem:[#allocation7 + $0xf0] sm:$0xf0]  ;;  %v4865_v5 = vld [vmem:[#allocation7 + $0xe8] sm:$0xf] }
  0x21   :  { %v6282_v6 = vld [vmem:[#allocation7 + $0xf4] sm:$0xf0]  ;;  %v4862_v7 = vor.u32 %v6279_v2, %v4859_v4  ;;  %v6280_v9 = vld [vmem:[#allocation7 + $0xec] sm:$0xf]  ;;  %v4867_v10 = vld [vmem:[#allocation7 + $0xf8] sm:$0xf0] }
  0x22   :  { %v4866_v8 = vor.u32 %v6282_v6, %v4865_v5  ;;  %v4841_v11 = vld [vmem:[#allocation7 + $0xc0] sm:$0xf]  ;;  %375 = vmatpush.bf16.msra.mxu0 %v4858_v3  ;;  %v4870_v12 = vor.u32 %v6280_v9, %v4867_v10  ;;  %v6277_v13 = vld [vmem:[#allocation7 + $0xcc] sm:$0xf0]  ;;  %v6275_v14 = vld [vmem:[#allocation7 + $0xc4] sm:$0xf] }
  0x23   :  { %v4843_v15 = vld [vmem:[#allocation7 + $0xd0] sm:$0xf0]  ;;  %404 = vmatpush.bf16.msra.mxu1 %v4862_v7  ;;  %v4842_v16 = vor.u32 %v6277_v13, %v4841_v11  ;;  %v4849_v18 = vld [vmem:[#allocation7 + $0xc8] sm:$0xf]  ;;  %v6278_v19 = vld [vmem:[#allocation7 + $0xd4] sm:$0xf0] }
  0x24   :  { %433 = vmatpush.bf16.msra.mxu2 %v4866_v8  ;;  %v4846_v17 = vor.u32 %v6275_v14, %v4843_v15  ;;  %v6276_v20 = vld [vmem:[#allocation7 + $0xcc] sm:$0xf]  ;;  %462 = vmatpush.bf16.msra.mxu3 %v4870_v12  ;;  %v4850_v21 = vor.u32 %v6278_v19, %v4849_v18  ;;  %v4851_v22 = vld [vmem:[#allocation7 + $0xd8] sm:$0xf0]  ;;  %v4825_v23 = vld [vmem:[#allocation7 + $0xa0] sm:$0xf] }
  0x25   :  { %v6273_v24 = vld [vmem:[#allocation7 + $0xac] sm:$0xf0]  ;;  %v4854_v25 = vor.u32 %v6276_v20, %v4851_v22  ;;  %v6271_v26 = vld [vmem:[#allocation7 + $0xa4] sm:$0xf]  ;;  %v4827_v27 = vld [vmem:[#allocation7 + $0xb0] sm:$0xf0] }
  0x26   :  { %v4833_v28 = vld [vmem:[#allocation7 + $0xa8] sm:$0xf]  ;;  %376 = vmatpush.bf16.msra.mxu0 %v4842_v16  ;;  %v4826_v29 = vor.u32 %v6273_v24, %v4825_v23  ;;  %v6274_v30 = vld [vmem:[#allocation7 + $0xb4] sm:$0xf0]  ;;  %v6272_v31 = vld [vmem:[#allocation7 + $0xac] sm:$0xf]  ;;  %v4830_v33 = vor.u32 %v6271_v26, %v4827_v27 }
  0x27   :  { %v4835_v32 = vld [vmem:[#allocation7 + $0xb8] sm:$0xf0]  ;;  %405 = vmatpush.bf16.msra.mxu1 %v4846_v17  ;;  %v4834_v34 = vor.u32 %v6274_v30, %v4833_v28  ;;  %v4809_v35 = vld [vmem:[#allocation7 + $0x80] sm:$0xf]  ;;  %v6269_v36 = vld [vmem:[#allocation7 + $0x8c] sm:$0xf0] }
  0x28   :  { %434 = vmatpush.bf16.msra.mxu2 %v4850_v21  ;;  %v6267_v37 = vld [vmem:[#allocation7 + $0x84] sm:$0xf]  ;;  %463 = vmatpush.bf16.msra.mxu3 %v4854_v25  ;;  %v4838_v38 = vor.u32 %v6272_v31, %v4835_v32  ;;  %v4811_v39 = vld [vmem:[#allocation7 + $0x90] sm:$0xf0]  ;;  %v4817_v40 = vld [vmem:[#allocation7 + $0x88] sm:$0xf]  ;;  %v4810_v44 = vor.u32 %v6269_v36, %v4809_v35 }
  0x29   :  { %v6270_v41 = vld [vmem:[#allocation7 + $0x94] sm:$0xf0]  ;;  %v6268_v42 = vld [vmem:[#allocation7 + $0x8c] sm:$0xf]  ;;  %v4819_v43 = vld [vmem:[#allocation7 + $0x98] sm:$0xf0]  ;;  %v4814_v45 = vor.u32 %v6267_v37, %v4811_v39 }
  0x2a   :  { %377 = vmatpush.bf16.msra.mxu0 %v4826_v29  ;;  %v4818_v46 = vor.u32 %v6270_v41, %v4817_v40  ;;  %v4793_v47 = vld [vmem:[#allocation7 + $0x60] sm:$0xf]  ;;  %v6265_v48 = vld [vmem:[#allocation7 + $0x6c] sm:$0xf0]  ;;  %v6263_v49 = vld [vmem:[#allocation7 + $0x64] sm:$0xf]  ;;  %v4822_v50 = vor.u32 %v6268_v42, %v4819_v43 }
  0x2b   :  { %406 = vmatpush.bf16.msra.mxu1 %v4830_v33  ;;  %v4795_v51 = vld [vmem:[#allocation7 + $0x70] sm:$0xf0]  ;;  %v4801_v52 = vld [vmem:[#allocation7 + $0x68] sm:$0xf]  ;;  %v6266_v53 = vld [vmem:[#allocation7 + $0x74] sm:$0xf0]  ;;  %v4794_v56 = vor.u32 %v6265_v48, %v4793_v47 }
  0x2c   :  { %435 = vmatpush.bf16.msra.mxu2 %v4834_v34  ;;  %464 = vmatpush.bf16.msra.mxu3 %v4838_v38  ;;  %v6264_v54 = vld [vmem:[#allocation7 + $0x6c] sm:$0xf]  ;;  %v4803_v55 = vld [vmem:[#allocation7 + $0x78] sm:$0xf0]  ;;  %v4798_v57 = vor.u32 %v6263_v49, %v4795_v51  ;;  %v4802_v58 = vor.u32 %v6266_v53, %v4801_v52  ;;  %v4777_v59 = vld [vmem:[#allocation7 + $0x40] sm:$0xf] }
  0x2d   :  { %v6261_v60 = vld [vmem:[#allocation7 + $0x4c] sm:$0xf0]  ;;  %v6259_v61 = vld [vmem:[#allocation7 + $0x44] sm:$0xf]  ;;  %v4806_v62 = vor.u32 %v6264_v54, %v4803_v55  ;;  %v4779_v63 = vld [vmem:[#allocation7 + $0x50] sm:$0xf0] }
  0x2e   :  { %378 = vmatpush.bf16.msra.mxu0 %v4810_v44  ;;  %v4785_v0 = vld [vmem:[#allocation7 + $0x48] sm:$0xf]  ;;  %v6262_v1 = vld [vmem:[#allocation7 + $0x54] sm:$0xf0]  ;;  %v6260_v2 = vld [vmem:[#allocation7 + $0x4c] sm:$0xf]  ;;  %v4778_v4 = vor.u32 %v6261_v60, %v4777_v59  ;;  %v4782_v5 = vor.u32 %v6259_v61, %v4779_v63 }
  0x2f   :  { %407 = vmatpush.bf16.msra.mxu1 %v4814_v45  ;;  %v4787_v3 = vld [vmem:[#allocation7 + $0x58] sm:$0xf0]  ;;  %v4786_v6 = vor.u32 %v6262_v1, %v4785_v0  ;;  %v4761_v7 = vld [vmem:[#allocation7 + $0x20] sm:$0xf]  ;;  %v6257_v8 = vld [vmem:[#allocation7 + $0x2c] sm:$0xf0] }
  0x30   :  { %436 = vmatpush.bf16.msra.mxu2 %v4818_v46  ;;  %465 = vmatpush.bf16.msra.mxu3 %v4822_v50  ;;  %v6255_v9 = vld [vmem:[#allocation7 + $0x24] sm:$0xf]  ;;  %v4790_v10 = vor.u32 %v6260_v2, %v4787_v3  ;;  %v4763_v11 = vld [vmem:[#allocation7 + $0x30] sm:$0xf0]  ;;  %v4769_v12 = vld [vmem:[#allocation7 + $0x28] sm:$0xf]  ;;  %v4762_v16 = vor.u32 %v6257_v8, %v4761_v7 }
  0x31   :  { %v6258_v13 = vld [vmem:[#allocation7 + $0x34] sm:$0xf0]  ;;  %v6256_v14 = vld [vmem:[#allocation7 + $0x2c] sm:$0xf]  ;;  %v4771_v15 = vld [vmem:[#allocation7 + $0x38] sm:$0xf0]  ;;  %v4766_v18 = vor.u32 %v6255_v9, %v4763_v11 }
  0x32   :  { %379 = vmatpush.bf16.msra.mxu0 %v4794_v56  ;;  %v4745_v17 = vld [vmem:[#allocation7] sm:$0xf]  ;;  %v4770_v19 = vor.u32 %v6258_v13, %v4769_v12  ;;  %v6253_v20 = vld [vmem:[#allocation7 + $0xc] sm:$0xf0]  ;;  %v6251_v21 = vld [vmem:[#allocation7 + $0x4] sm:$0xf]  ;;  %v4774_v23 = vor.u32 %v6256_v14, %v4771_v15 }
  0x33   :  { %408 = vmatpush.bf16.msra.mxu1 %v4798_v57  ;;  %v4747_v22 = vld [vmem:[#allocation7 + $0x10] sm:$0xf0]  ;;  %v4753_v24 = vld [vmem:[#allocation7 + $0x8] sm:$0xf]  ;;  %v6254_v25 = vld [vmem:[#allocation7 + $0x14] sm:$0xf0]  ;;  %v4746_v30 = vor.u32 %v6253_v20, %v4745_v17 }
  0x34   :  { %437 = vmatpush.bf16.msra.mxu2 %v4802_v58  ;;  %466 = vmatpush.bf16.msra.mxu3 %v4806_v62  ;;  %v6252_v26 = vld [vmem:[#allocation7 + $0xc] sm:$0xf]  ;;  %v4755_v27 = vld [vmem:[#allocation7 + $0x18] sm:$0xf0]  ;;  %v4985_v28 = vld [vmem:[#allocation9 + $0xe0] sm:$0xf]  ;;  %v4750_v33 = vor.u32 %v6251_v21, %v4747_v22  ;;  %v4754_v34 = vor.u32 %v6254_v25, %v4753_v24 }
  0x35   :  { %v6313_v29 = vld [vmem:[#allocation9 + $0xec] sm:$0xf0]  ;;  %v6311_v31 = vld [vmem:[#allocation9 + $0xe4] sm:$0xf]  ;;  %v4987_v32 = vld [vmem:[#allocation9 + $0xf0] sm:$0xf0]  ;;  %v4758_v36 = vor.u32 %v6252_v26, %v4755_v27 }
  0x36   :  { %380 = vmatpush.bf16.msra.mxu0 %v4778_v4  ;;  %v6247_v35 = vld [vmem:[#allocation4] sm:$0xff]  ;;  %v4986_v37 = vor.u32 %v6313_v29, %v4985_v28  ;;  %v6312_v38 = vld [vmem:[#allocation9 + $0xec] sm:$0xf]  ;;  %v4993_v39 = vld [vmem:[#allocation9 + $0xe8] sm:$0xf]  ;;  %v4990_v41 = vor.u32 %v6311_v31, %v4987_v32  ;;  %s7099_s18 = smov [#allocation16]  }
  0x37   :  { %409 = vmatpush.bf16.msra.mxu1 %v4782_v5  ;;  %v6314_v40 = vld [vmem:[#allocation9 + $0xf4] sm:$0xf0]  ;;  %v4995_v42 = vld [vmem:[#allocation9 + $0xf8] sm:$0xf0]  ;;  %v4969_v43 = vld [vmem:[#allocation9 + $0xc0] sm:$0xf] }
  0x38   :  { %438 = vmatpush.bf16.msra.mxu2 %v4786_v6  ;;  %467 = vmatpush.bf16.msra.mxu3 %v4790_v10  ;;  %v6309_v44 = vld [vmem:[#allocation9 + $0xcc] sm:$0xf0]  ;;  %v6307_v45 = vld [vmem:[#allocation9 + $0xc4] sm:$0xf]  ;;  %v4971_v46 = vld [vmem:[#allocation9 + $0xd0] sm:$0xf0]  ;;  %v4994_v47 = vor.u32 %v6314_v40, %v4993_v39  ;;  %v4998_v48 = vor.u32 %v6312_v38, %v4995_v42 }
  0x39   :  { %v4970_v49 = vor.u32 %v6309_v44, %v4969_v43  ;;  %v6308_v50 = vld [vmem:[#allocation9 + $0xcc] sm:$0xf]  ;;  %v4977_v51 = vld [vmem:[#allocation9 + $0xc8] sm:$0xf]  ;;  %v6310_v52 = vld [vmem:[#allocation9 + $0xd4] sm:$0xf0]  ;;  %v4974_v53 = vor.u32 %v6307_v45, %v4971_v46 }
  0x3a   :  { %381 = vmatpush.bf16.msra.mxu0 %v4762_v16  ;;  %v4979_v54 = vld [vmem:[#allocation9 + $0xd8] sm:$0xf0]  ;;  %v4953_v55 = vld [vmem:[#allocation9 + $0xa0] sm:$0xf]  ;;  %v6305_v56 = vld [vmem:[#allocation9 + $0xac] sm:$0xf0]  ;;  %v4978_v59 = vor.u32 %v6310_v52, %v4977_v51 }
  0x3b   :  { %410 = vmatpush.bf16.msra.mxu1 %v4766_v18  ;;  %v6303_v57 = vld [vmem:[#allocation9 + $0xa4] sm:$0xf]  ;;  %v4955_v58 = vld [vmem:[#allocation9 + $0xb0] sm:$0xf0]  ;;  %v4982_v60 = vor.u32 %v6308_v50, %v4979_v54  ;;  %v4954_v61 = vor.u32 %v6305_v56, %v4953_v55  ;;  %v6304_v62 = vld [vmem:[#allocation9 + $0xac] sm:$0xf] }
  0x3c   :  { %439 = vmatpush.bf16.msra.mxu2 %v4770_v19  ;;  %468 = vmatpush.bf16.msra.mxu3 %v4774_v23  ;;  %v4961_v63 = vld [vmem:[#allocation9 + $0xa8] sm:$0xf]  ;;  %v6306_v0 = vld [vmem:[#allocation9 + $0xb4] sm:$0xf0]  ;;  %v4958_v1 = vor.u32 %v6303_v57, %v4955_v58  ;;  %v4963_v2 = vld [vmem:[#allocation9 + $0xb8] sm:$0xf0] }
  0x3d   :  { %v4937_v3 = vld [vmem:[#allocation9 + $0x80] sm:$0xf]  ;;  %v6301_v4 = vld [vmem:[#allocation9 + $0x8c] sm:$0xf0]  ;;  %v6299_v5 = vld [vmem:[#allocation9 + $0x84] sm:$0xf]  ;;  %v4962_v7 = vor.u32 %v6306_v0, %v4961_v63  ;;  %v4966_v8 = vor.u32 %v6304_v62, %v4963_v2 }
  0x3e   :  { %382 = vmatpush.bf16.msra.mxu0 %v4746_v30  ;;  %v4939_v6 = vld [vmem:[#allocation9 + $0x90] sm:$0xf0]  ;;  %v4938_v9 = vor.u32 %v6301_v4, %v4937_v3  ;;  %v6300_v10 = vld [vmem:[#allocation9 + $0x8c] sm:$0xf]  ;;  %v4945_v11 = vld [vmem:[#allocation9 + $0x88] sm:$0xf] }
  0x3f   :  { %411 = vmatpush.bf16.msra.mxu1 %v4750_v33  ;;  %v6302_v12 = vld [vmem:[#allocation9 + $0x94] sm:$0xf0]  ;;  %v4942_v13 = vor.u32 %v6299_v5, %v4939_v6  ;;  %v4947_v14 = vld [vmem:[#allocation9 + $0x98] sm:$0xf0]  ;;  %v4921_v15 = vld [vmem:[#allocation9 + $0x60] sm:$0xf] }
  0x40   :  { %440 = vmatpush.bf16.msra.mxu2 %v4754_v34  ;;  %469 = vmatpush.bf16.msra.mxu3 %v4758_v36  ;;  %v6297_v16 = vld [vmem:[#allocation9 + $0x6c] sm:$0xf0]  ;;  %v6295_v17 = vld [vmem:[#allocation9 + $0x64] sm:$0xf]  ;;  %v4923_v18 = vld [vmem:[#allocation9 + $0x70] sm:$0xf0]  ;;  %v4946_v20 = vor.u32 %v6302_v12, %v4945_v11  ;;  %v4950_v21 = vor.u32 %v6300_v10, %v4947_v14 }
  0x41   :  { %383 = vmatmul.bf16.vlgmr.msra.gmra.mxu0 %v6247_v35  ;;  %v6248_v19 = vld [vmem:[#allocation4 + $0x8] sm:$0xff]  ;;  %v4922_v22 = vor.u32 %v6297_v16, %v4921_v15  ;;  %v6298_v25 = vld [vmem:[#allocation9 + $0x74] sm:$0xf0]  ;;  %v4926_v26 = vor.u32 %v6295_v17, %v4923_v18  ;;  %v4931_v27 = vld [vmem:[#allocation9 + $0x78] sm:$0xf0]  ;;  %v7098_v4 = vmov 0  }
  0x42   :  { %719 = vmatpush.bf16.msrb.mxu0 %v4986_v37  ;;  %412 = vmatmul.bf16.vlgmr.msra.gmra.mxu1 %v6247_v35  ;;  %v6296_v23 = vld [vmem:[#allocation9 + $0x6c] sm:$0xf]  ;;  %v4929_v24 = vld [vmem:[#allocation9 + $0x68] sm:$0xf]  ;;  %v4905_v28 = vld [vmem:[#allocation9 + $0x40] sm:$0xf] }
  0x43   :  { %732 = vmatpush.bf16.msrb.mxu1 %v4990_v41  ;;  %441 = vmatmul.bf16.vlgmr.msra.gmra.mxu2 %v6247_v35  ;;  %v6293_v29 = vld [vmem:[#allocation9 + $0x4c] sm:$0xf0]  ;;  %v6291_v30 = vld [vmem:[#allocation9 + $0x44] sm:$0xf]  ;;  %v4907_v31 = vld [vmem:[#allocation9 + $0x50] sm:$0xf0]  ;;  %v4930_v32 = vor.u32 %v6298_v25, %v4929_v24  ;;  %v4934_v33 = vor.u32 %v6296_v23, %v4931_v27 }
  0x44   :  { %470 = vmatmul.bf16.vlgmr.msra.gmra.mxu3 %v6247_v35  ;;  %745 = vmatpush.bf16.msrb.mxu2 %v4994_v47  ;;  %v4906_v34 = vor.u32 %v6293_v29, %v4905_v28  ;;  %v4910_v35 = vor.u32 %v6291_v30, %v4907_v31  ;;  %v6292_v36 = vld [vmem:[#allocation9 + $0x4c] sm:$0xf]  ;;  %v4915_v37 = vld [vmem:[#allocation9 + $0x58] sm:$0xf0]  ;;  %v4889_v38 = vld [vmem:[#allocation9 + $0x20] sm:$0xf] }
  0x45   :  { %758 = vmatpush.bf16.msrb.mxu3 %v4998_v48  ;;  %v6289_v39 = vld [vmem:[#allocation9 + $0x2c] sm:$0xf0]  ;;  %v6287_v40 = vld [vmem:[#allocation9 + $0x24] sm:$0xf]  ;;  %v4918_v41 = vor.u32 %v6292_v36, %v4915_v37  ;;  %v4891_v43 = vld [vmem:[#allocation9 + $0x30] sm:$0xf0] }
  0x46   :  { %720 = vmatpush.bf16.msrb.mxu0 %v4970_v49  ;;  %v4890_v42 = vor.u32 %v6289_v39, %v4889_v38  ;;  %v4913_v44 = vld [vmem:[#allocation9 + $0x48] sm:$0xf]  ;;  %v6294_v45 = vld [vmem:[#allocation9 + $0x54] sm:$0xf0]  ;;  %v4894_v46 = vor.u32 %v6287_v40, %v4891_v43  ;;  %v6288_v48 = vld [vmem:[#allocation9 + $0x2c] sm:$0xf] }
  0x47   :  { %733 = vmatpush.bf16.msrb.mxu1 %v4974_v53  ;;  %v4914_v47 = vor.u32 %v6294_v45, %v4913_v44  ;;  %v4899_v49 = vld [vmem:[#allocation9 + $0x38] sm:$0xf0]  ;;  %v4873_v50 = vld [vmem:[#allocation9] sm:$0xf]  ;;  %v6285_v51 = vld [vmem:[#allocation9 + $0xc] sm:$0xf0] }
  0x48   :  { %746 = vmatpush.bf16.msrb.mxu2 %v4978_v59  ;;  %v6283_v52 = vld [vmem:[#allocation9 + $0x4] sm:$0xf]  ;;  %v4875_v53 = vld [vmem:[#allocation9 + $0x10] sm:$0xf0]  ;;  %v4897_v54 = vld [vmem:[#allocation9 + $0x28] sm:$0xf]  ;;  %v4902_v56 = vor.u32 %v6288_v48, %v4899_v49  ;;  %v4874_v57 = vor.u32 %v6285_v51, %v4873_v50 }
  0x49   :  { %759 = vmatpush.bf16.msrb.mxu3 %v4982_v60  ;;  %v6290_v55 = vld [vmem:[#allocation9 + $0x34] sm:$0xf0]  ;;  %v4881_v59 = vld [vmem:[#allocation9 + $0x8] sm:$0xf]  ;;  %v6284_v62 = vld [vmem:[#allocation9 + $0xc] sm:$0xf] }
  0x4a   :  { %721 = vmatpush.bf16.msrb.mxu0 %v4954_v61  ;;  %v4898_v58 = vor.u32 %v6290_v55, %v4897_v54  ;;  %v6286_v60 = vld [vmem:[#allocation9 + $0x14] sm:$0xf0]  ;;  %v4878_v61 = vor.u32 %v6283_v52, %v4875_v53  ;;  %v4883_v63 = vld [vmem:[#allocation9 + $0x18] sm:$0xf0]  ;;  %v6249_v2 = vld [vmem:[#allocation4 + $0x10] sm:$0xff]  ;;  %s4712_s23 = sshll.u32 %s7099_s18, 4  ;;  %s4713_s23 = int_to_ptr.vmem [resolvable:$true] %s4712_s23 }
  0x4b   :  { %734 = vmatpush.bf16.msrb.mxu1 %v4958_v1  ;;  %v4882_v0 = vor.u32 %v6286_v60, %v4881_v59  ;;  %v4886_v1 = vor.u32 %v6284_v62, %v4883_v63  ;;  %v6250_v3 = vld [vmem:[#allocation4 + $0x18] sm:$0xff]  ;;  %v181_v11 = vld [vmem:[#allocation10] sm:$0xf]  ;;  %v6343_v43 = vld [vmem:[#allocation9 + $0xe4] sm:$0xf]  ;;  %s4714_s25 = sshll.u32 %s7962_s9, 4  ;;  %s4715_s25 = int_to_ptr.hbm [resolvable:$true] %s4714_s25 }
  0x4c   :  { %747 = vmatpush.bf16.msrb.mxu2 %v4962_v7  ;;  %v7199_v12 = vperm.slane %v181_v11, 0  ;;  %v7203_v14 = vperm.slane %v181_v11, 1  ;;  %v5124_v48 = vld [vmem:[#allocation9 + $0xe8] sm:$0xf]  ;;  %v6346_v49 = vld [vmem:[#allocation9 + $0xf4] sm:$0xf0] }
  0x4d   :  { %760 = vmatpush.bf16.msrb.mxu3 %v4966_v8  ;;  %v5125_v53 = vor.u32 %v6346_v49, %v5124_v48  ;;  %v6344_v54 = vld [vmem:[#allocation9 + $0xec] sm:$0xf]  ;;  %v5126_v55 = vld [vmem:[#allocation9 + $0xf8] sm:$0xf0]  ;;  %v6341_v59 = vld [vmem:[#allocation9 + $0xcc] sm:$0xf0] }
  0x4e   :  { %722 = vmatpush.bf16.msrb.mxu0 %v4938_v9  ;;  %v6339_v60 = vld [vmem:[#allocation9 + $0xc4] sm:$0xf]  ;;  %v5102_v62 = vld [vmem:[#allocation9 + $0xd0] sm:$0xf0]  ;;  %v5108_v63 = vld [vmem:[#allocation9 + $0xc8] sm:$0xf] }
  0x4f   :  { %735 = vmatpush.bf16.msrb.mxu1 %v4942_v13 }
  0x50   :  { %748 = vmatpush.bf16.msrb.mxu2 %v4946_v20  ;;  %v7213_v20 = vperm.slane %v181_v11, 2 }
  0x51   :  { %761 = vmatpush.bf16.msrb.mxu3 %v4950_v21  ;;  %388 = vmatmul.bf16.gmra.mxu0 %v6248_v19  ;;  %v7215_v21 = vperm.slane %v181_v11, 3  ;;  %v5110_v11 = vld [vmem:[#allocation9 + $0xd8] sm:$0xf0] }
  0x52   :  { %723 = vmatpush.bf16.msrb.mxu0 %v4922_v22  ;;  %417 = vmatmul.bf16.gmra.mxu1 %v6248_v19 }
  0x53   :  { %736 = vmatpush.bf16.msrb.mxu1 %v4926_v26  ;;  %446 = vmatmul.bf16.gmra.mxu2 %v6248_v19 }
  0x54   :  { %475 = vmatmul.bf16.gmra.mxu3 %v6248_v19  ;;  %749 = vmatpush.bf16.msrb.mxu2 %v4930_v32 }
  0x55   :  { %762 = vmatpush.bf16.msrb.mxu3 %v4934_v33 }
  0x56   :  { %724 = vmatpush.bf16.msrb.mxu0 %v4906_v34 }
  0x57   :  { %737 = vmatpush.bf16.msrb.mxu1 %v4910_v35 }
  0x58   :  { %750 = vmatpush.bf16.msrb.mxu2 %v4914_v47  ;;  %v5118_v47 = vld [vmem:[#allocation9 + $0xf0] sm:$0xf0] }
  0x59   :  { %763 = vmatpush.bf16.msrb.mxu3 %v4918_v41  ;;  %v5116_v41 = vld [vmem:[#allocation9 + $0xe0] sm:$0xf]  ;;  %v5121_v52 = vor.u32 %v6343_v43, %v5118_v47  ;;  %v5092_v43 = vld [vmem:[#allocation9 + $0xa8] sm:$0xf] }
  0x5a   :  { %725 = vmatpush.bf16.msrb.mxu0 %v4890_v42  ;;  %v6345_v42 = vld [vmem:[#allocation9 + $0xec] sm:$0xf0] }
  0x5b   :  { %738 = vmatpush.bf16.msrb.mxu1 %v4894_v46  ;;  %v5117_v46 = vor.u32 %v6345_v42, %v5116_v41  ;;  %v5086_v42 = vld [vmem:[#allocation9 + $0xb0] sm:$0xf0] }
  0x5c   :  { %751 = vmatpush.bf16.msrb.mxu2 %v4898_v58  ;;  %v5100_v58 = vld [vmem:[#allocation9 + $0xc0] sm:$0xf] }
  0x5d   :  { %764 = vmatpush.bf16.msrb.mxu3 %v4902_v56 }
  0x5e   :  { %726 = vmatpush.bf16.msrb.mxu0 %v4874_v57  ;;  %v5129_v57 = vor.u32 %v6344_v54, %v5126_v55  ;;  %v5068_v54 = vld [vmem:[#allocation9 + $0x80] sm:$0xf]  ;;  %v6333_v55 = vld [vmem:[#allocation9 + $0x8c] sm:$0xf0] }
  0x5f   :  { %739 = vmatpush.bf16.msrb.mxu1 %v4878_v61  ;;  %v5101_v61 = vor.u32 %v6341_v59, %v5100_v58  ;;  %v5069_v58 = vor.u32 %v6333_v55, %v5068_v54  ;;  %v5070_v59 = vld [vmem:[#allocation9 + $0x90] sm:$0xf0] }
  0x60   :  { %752 = vmatpush.bf16.msrb.mxu2 %v4882_v0  ;;  %v6342_v0 = vld [vmem:[#allocation9 + $0xd4] sm:$0xf0] }
  0x61   :  { %765 = vmatpush.bf16.msrb.mxu3 %v4886_v1  ;;  %393 = vmatmul.bf16.gmra.mxu0 %v6249_v2  ;;  %v5105_v1 = vor.u32 %v6339_v60, %v5102_v62  ;;  %v5076_v60 = vld [vmem:[#allocation9 + $0x88] sm:$0xf] }
  0x62   :  { %422 = vmatmul.bf16.gmra.mxu1 %v6249_v2  ;;  %1036 = vmatpush.bf16.msra.mxu0 %v5117_v46 }
  0x63   :  { %451 = vmatmul.bf16.gmra.mxu2 %v6249_v2  ;;  %1049 = vmatpush.bf16.msra.mxu1 %v5121_v52  ;;  %v5094_v52 = vld [vmem:[#allocation9 + $0xb8] sm:$0xf0] }
  0x64   :  { %480 = vmatmul.bf16.gmra.mxu3 %v6249_v2  ;;  %1062 = vmatpush.bf16.msra.mxu2 %v5125_v53  ;;  %v5109_v2 = vor.u32 %v6342_v0, %v5108_v63  ;;  %v6332_v0 = vld [vmem:[#allocation9 + $0x8c] sm:$0xf] }
  0x65   :  { %1075 = vmatpush.bf16.msra.mxu3 %v5129_v57  ;;  %v6331_v57 = vld [vmem:[#allocation9 + $0x84] sm:$0xf] }
  0x66   :  { %1037 = vmatpush.bf16.msra.mxu0 %v5101_v61  ;;  %v6334_v61 = vld [vmem:[#allocation9 + $0x94] sm:$0xf0]  ;;  %v5073_v62 = vor.u32 %v6331_v57, %v5070_v59 }
  0x67   :  { %1050 = vmatpush.bf16.msra.mxu1 %v5105_v1  ;;  %v5077_v63 = vor.u32 %v6334_v61, %v5076_v60  ;;  %v5078_v1 = vld [vmem:[#allocation9 + $0x98] sm:$0xf0]  ;;  %v6323_v61 = vld [vmem:[#allocation9 + $0x44] sm:$0xf] }
  0x68   :  { %1063 = vmatpush.bf16.msra.mxu2 %v5109_v2  ;;  %v5081_v2 = vor.u32 %v6332_v0, %v5078_v1  ;;  %v5044_v0 = vld [vmem:[#allocation9 + $0x48] sm:$0xf]  ;;  %v6326_v1 = vld [vmem:[#allocation9 + $0x54] sm:$0xf0] }
  0x71   :  { %398 = vmatmul.bf16.gmra.mxu0 %v6250_v3 }
  0x72   :  { %427 = vmatmul.bf16.gmra.mxu1 %v6250_v3 }
  0x73   :  { %456 = vmatmul.bf16.gmra.mxu2 %v6250_v3 }
  0x74   :  { %485 = vmatmul.bf16.gmra.mxu3 %v6250_v3  ;;  %v6340_v3 = vld [vmem:[#allocation9 + $0xcc] sm:$0xf] }
  0x81   :  { %727 = vmatmul.bf16.vlgmr.msrb.gmra.mxu0 %v7098_v4 }
  0x82   :  { %740 = vmatmul.bf16.vlgmr.msrb.gmra.mxu1 %v7098_v4 }
  0x83   :  { %753 = vmatmul.bf16.vlgmr.msrb.gmra.mxu2 %v7098_v4 }
  0x84   :  { %766 = vmatmul.bf16.vlgmr.msrb.gmra.mxu3 %v7098_v4 }
  0xbe   :  { %v7187_v5 = vpop.f32.mrf.mxu0 }
  0xbf   :  { %v7189_v6 = vpop.f32.mrf.mxu1 }
  0xc6   :  { %v7191_v7 = vpop.f32.mrf.mxu2  ;;  %v7195_v9 = vpop.f32.mrf.mxu0 }
  0xc7   :  { %v7193_v8 = vpop.f32.mrf.mxu3  ;;  %v7197_v10 = vpop.f32.mrf.mxu1 }
  0xce   :  { %v7201_v13 = vpop.f32.mrf.mxu2  ;;  %v389_v16 = vpop.f32.mrf.mxu0 }
  0xcf   :  { %v7205_v15 = vpop.f32.mrf.mxu3  ;;  %v7208_v17 = vadd.f32 %v389_v16, %v7199_v12  ;;  %v418_v18 = vpop.f32.mrf.mxu1  ;;  %v5113_v16 = vor.u32 %v6340_v3, %v5110_v11  ;;  %v385_v3 = vadd.f32 %v7187_v5, %v7199_v12 }
  0xd0   :  { %v7211_v19 = vadd.f32 %v418_v18, %v7203_v14 }
  0xd1   :  { %1076 = vmatpush.bf16.msra.mxu3 %v5113_v16  ;;  %v5052_v16 = vld [vmem:[#allocation9 + $0x60] sm:$0xf] }
  0xd6   :  { %v447_v22 = vpop.f32.mrf.mxu2  ;;  %v7220_v25 = vpop.f32.mrf.mxu0 }
  0xd7   :  { %v7218_v23 = vadd.f32 %v447_v22, %v7213_v20  ;;  %v476_v24 = vpop.f32.mrf.mxu3  ;;  %v7225_v27 = vpop.f32.mrf.mxu1  ;;  %v5084_v22 = vld [vmem:[#allocation9 + $0xa0] sm:$0xf] }
  0xd8   :  { %v7223_v26 = vadd.f32 %v476_v24, %v7215_v21  ;;  %v6337_v24 = vld [vmem:[#allocation9 + $0xac] sm:$0xf0] }
  0xd9   :  { %v5085_v41 = vor.u32 %v6337_v24, %v5084_v22  ;;  %v6327_v22 = vld [vmem:[#allocation9 + $0x64] sm:$0xf]  ;;  %v414_v24 = vadd.f32 %v7189_v6, %v7203_v14  ;;  %v5036_v6 = vld [vmem:[#allocation9 + $0x40] sm:$0xf] }
  0xdb   :  { %1038 = vmatpush.bf16.msra.mxu0 %v5085_v41 }
  0xde   :  { %v7227_v28 = vpop.f32.mrf.mxu2  ;;  %v394_v30 = vpop.f32.mrf.mxu0 }
  0xdf   :  { %v7229_v29 = vpop.f32.mrf.mxu3  ;;  %v7232_v31 = vadd.f32 %v394_v30, %v7199_v12  ;;  %v423_v32 = vpop.f32.mrf.mxu1  ;;  %v6335_v30 = vld [vmem:[#allocation9 + $0xa4] sm:$0xf]  ;;  %1039 = vmatpush.bf16.msra.mxu0 %v5069_v58  ;;  %v6325_v58 = vld [vmem:[#allocation9 + $0x4c] sm:$0xf0] }
  0xe0   :  { %v7235_v33 = vadd.f32 %v423_v32, %v7203_v14  ;;  %v5089_v48 = vor.u32 %v6335_v30, %v5086_v42  ;;  %v5054_v42 = vld [vmem:[#allocation9 + $0x70] sm:$0xf0]  ;;  %v5037_v60 = vor.u32 %v6325_v58, %v5036_v6 }
  0xe2   :  { %1051 = vmatpush.bf16.msra.mxu1 %v5089_v48 }
  0xe6   :  { %v452_v34 = vpop.f32.mrf.mxu2  ;;  %v7240_v37 = vpop.f32.mrf.mxu0  ;;  %1052 = vmatpush.bf16.msra.mxu1 %v5073_v62  ;;  %v5038_v62 = vld [vmem:[#allocation9 + $0x50] sm:$0xf0] }
  0xe7   :  { %v7238_v35 = vadd.f32 %v452_v34, %v7213_v20  ;;  %v481_v36 = vpop.f32.mrf.mxu3  ;;  %v7245_v39 = vpop.f32.mrf.mxu1 }
  0xe8   :  { %v7243_v38 = vadd.f32 %v481_v36, %v7215_v21 }
  0xee   :  { %v7247_v40 = vpop.f32.mrf.mxu2  ;;  %v399_v45 = vpop.f32.mrf.mxu0 }
  0xef   :  { %v7249_v44 = vpop.f32.mrf.mxu3  ;;  %v7252_v50 = vadd.f32 %v399_v45, %v7199_v12  ;;  %v428_v51 = vpop.f32.mrf.mxu1  ;;  %v6338_v45 = vld [vmem:[#allocation9 + $0xb4] sm:$0xf0] }
  0xf0   :  { %v7255_v56 = vadd.f32 %v428_v51, %v7203_v14  ;;  %v5093_v49 = vor.u32 %v6338_v45, %v5092_v43  ;;  %v6336_v51 = vld [vmem:[#allocation9 + $0xac] sm:$0xf]  ;;  %v5060_v43 = vld [vmem:[#allocation9 + $0x68] sm:$0xf]  ;;  %v6330_v45 = vld [vmem:[#allocation9 + $0x74] sm:$0xf0] }
  0xf1   :  { %v5097_v53 = vor.u32 %v6336_v51, %v5094_v52  ;;  %v5061_v51 = vor.u32 %v6330_v45, %v5060_v43  ;;  %v6328_v52 = vld [vmem:[#allocation9 + $0x6c] sm:$0xf]  ;;  %v6319_v43 = vld [vmem:[#allocation9 + $0x24] sm:$0xf]  ;;  %v5022_v45 = vld [vmem:[#allocation9 + $0x30] sm:$0xf0] }
  0xf2   :  { %1064 = vmatpush.bf16.msra.mxu2 %v5093_v49  ;;  %v5057_v49 = vor.u32 %v6327_v22, %v5054_v42  ;;  %v6321_v22 = vld [vmem:[#allocation9 + $0x2c] sm:$0xf0] }
  0xf3   :  { %1077 = vmatpush.bf16.msra.mxu3 %v5097_v53  ;;  %v5062_v53 = vld [vmem:[#allocation9 + $0x78] sm:$0xf0] }
  0xf4   :  { %v5065_v55 = vor.u32 %v6328_v52, %v5062_v53  ;;  %1053 = vmatpush.bf16.msra.mxu1 %v5057_v49  ;;  %v6322_v52 = vld [vmem:[#allocation9 + $0x34] sm:$0xf0]  ;;  %v6320_v53 = vld [vmem:[#allocation9 + $0x2c] sm:$0xf] }
  0xf6   :  { %v457_v18 = vpop.f32.mrf.mxu2  ;;  %v7260_v36 = vpop.f32.mrf.mxu0  ;;  %1065 = vmatpush.bf16.msra.mxu2 %v5077_v63  ;;  %v5041_v63 = vor.u32 %v6323_v61, %v5038_v62  ;;  %v5006_v62 = vld [vmem:[#allocation9 + $0x10] sm:$0xf0] }
  0xf7   :  { %v7258_v32 = vadd.f32 %v457_v18, %v7213_v20  ;;  %v486_v34 = vpop.f32.mrf.mxu3  ;;  %v7265_v47 = vpop.f32.mrf.mxu1  ;;  %v6329_v18 = vld [vmem:[#allocation9 + $0x6c] sm:$0xf0]  ;;  %1078 = vmatpush.bf16.msra.mxu3 %v5081_v2  ;;  %v6324_v2 = vld [vmem:[#allocation9 + $0x4c] sm:$0xf] }
  0xf8   :  { %v7263_v46 = vadd.f32 %v486_v34, %v7215_v21  ;;  %v5053_v41 = vor.u32 %v6329_v18, %v5052_v16  ;;  %v5046_v16 = vld [vmem:[#allocation9 + $0x58] sm:$0xf0]  ;;  %v5020_v18 = vld [vmem:[#allocation9 + $0x20] sm:$0xf]  ;;  %1054 = vmatpush.bf16.msra.mxu1 %v5041_v63  ;;  %v5012_v63 = vld [vmem:[#allocation9 + $0x8] sm:$0xf] }
  0xf9   :  { %v5021_v42 = vor.u32 %v6321_v22, %v5020_v18  ;;  %v5014_v18 = vld [vmem:[#allocation9 + $0x18] sm:$0xf0] }
  0xfa   :  { %1040 = vmatpush.bf16.msra.mxu0 %v5053_v41  ;;  %1066 = vmatpush.bf16.msra.mxu2 %v5061_v51  ;;  %v5049_v41 = vor.u32 %v6324_v2, %v5046_v16  ;;  %v5025_v51 = vor.u32 %v6319_v43, %v5022_v45  ;;  %v6316_v16 = vld [vmem:[#allocation9 + $0xc] sm:$0xf] }
  0xfb   :  { %1079 = vmatpush.bf16.msra.mxu3 %v5065_v55  ;;  %v5017_v45 = vor.u32 %v6316_v16, %v5014_v18 }
  0xfc   :  { %1055 = vmatpush.bf16.msra.mxu1 %v5025_v51 }
  0xfe   :  { %v7269_v11 = vpop.f32.mrf.mxu2  ;;  %v728_v34 = vpop.f32.mrf.mxu0  ;;  %1041 = vmatpush.bf16.msra.mxu0 %v5037_v60  ;;  %v6315_v60 = vld [vmem:[#allocation9 + $0x4] sm:$0xf] }
  0xff   :  { %v7273_v30 = vpop.f32.mrf.mxu3  ;;  %v771_v48 = vadd.f32 %v728_v34, %v385_v3  ;;  %v741_v5 = vpop.f32.mrf.mxu1  ;;  %v5045_v3 = vor.u32 %v6326_v1, %v5044_v0  ;;  %1080 = vmatpush.bf16.msra.mxu3 %v5049_v41  ;;  %v6318_v0 = vld [vmem:[#allocation9 + $0x14] sm:$0xf0] }
 0x100   :  { %v772_v54 = vadd.f32 %v741_v5, %v414_v24  ;;  %v472_v24 = vadd.f32 %v7193_v8, %v7215_v21  ;;  %v5004_v8 = vld [vmem:[#allocation9] sm:$0xf]  ;;  %v5013_v41 = vor.u32 %v6318_v0, %v5012_v63 }
 0x101   :  { %v4999_v57 = vmul.f32 -1.442695, %v771_v48  ;;  %v5028_v48 = vld [vmem:[#allocation9 + $0x28] sm:$0xf]  ;;  %1067 = vmatpush.bf16.msra.mxu2 %v5045_v3  ;;  %v5009_v3 = vor.u32 %v6315_v60, %v5006_v62 }
 0x102   :  { %v5000_v59 = vmul.f32 -1.442695, %v772_v54  ;;  %v5030_v54 = vld [vmem:[#allocation9 + $0x38] sm:$0xf0]  ;;  %v5029_v6 = vor.u32 %v6322_v52, %v5028_v48  ;;  %1042 = vmatpush.bf16.msra.mxu0 %v5021_v42 }
 0x103   :  { %6629 = vpow2.f32 %v4999_v57  ;;  %v5033_v58 = vor.u32 %v6320_v53, %v5030_v54  ;;  %1056 = vmatpush.bf16.msra.mxu1 %v5009_v3 }
 0x104   :  { %6631 = vpow2.f32 %v5000_v59  ;;  %v6317_v59 = vld [vmem:[#allocation9 + $0xc] sm:$0xf0] }
 0x105   :  { %v5005_v61 = vor.u32 %v6317_v59, %v5004_v8  ;;  %1068 = vmatpush.bf16.msra.mxu2 %v5029_v6  ;;  %1081 = vmatpush.bf16.msra.mxu3 %v5033_v58 }
 0x106   :  { %v754_v34 = vpop.f32.mrf.mxu2  ;;  %v730_v49 = vpop.f32.mrf.mxu0 }
 0x107   :  { %v767_v5 = vpop.f32.mrf.mxu3  ;;  %v743_v57 = vpop.f32.mrf.mxu1  ;;  %1043 = vmatpush.bf16.msra.mxu0 %v5005_v61 }
 0x108   :  { %v774_v55 = vadd.f32 %v767_v5, %v472_v24  ;;  %v443_v5 = vadd.f32 %v7191_v7, %v7213_v20 }
 0x109   :  { %v6630_v1 = vpop.eup %6629  ;;  %1069 = vmatpush.bf16.msra.mxu2 %v5013_v41  ;;  %1082 = vmatpush.bf16.msra.mxu3 %v5017_v45 }
 0x10a   :  { %v5001_v2 = vmul.f32 -1.442695, %v774_v55  ;;  %v6632_v22 = vpop.eup %6631  ;;  %v778_v24 = vadd.f32 1.0, %v6630_v1  ;;  %v773_v52 = vadd.f32 %v754_v34, %v443_v5 }
 0x10b   :  { %v797_v43 = vadd.f32 1.0, %v6632_v22 }
 0x10c   :  { %6633 = vpow2.f32 %v5001_v2  ;;  %v790_v8 = vand.u32 2147483648, %v778_v24  ;;  %v788_v61 = vand.u32 2147483647, %v778_v24  ;;  %vm784_vm2 = vweird.f32 %v778_v24 }
 0x10d   :  { %6635 = vrcp.f32 %v778_v24  ;;  %v809_v59 = vand.u32 2147483648, %v797_v43  ;;  %v807_v63 = vand.u32 2147483647, %v797_v43  ;;  %vm803_vm3 = vweird.f32 %v797_v43 }
 0x10e   :  { %6637 = vrcp.f32 %v797_v43  ;;  %v756_v42 = vpop.f32.mrf.mxu2  ;;  %v791_v34 = vor.u32 1.1754944e-38, %v790_v8  ;;  %vm789_vm5 = vcmp.eq.f32.partialorder %v788_v61, 8.507059e+37  ;;  %v6375_v61 = vld [vmem:[#allocation9 + $0xe4] sm:$0xf] }
 0x10f   :  { %v769_v48 = vpop.f32.mrf.mxu3  ;;  %v810_v2 = vor.u32 1.1754944e-38, %v809_v59  ;;  %vm808_vm7 = vcmp.eq.f32.partialorder %v807_v63, 8.507059e+37  ;;  %v5247_v59 = vld [vmem:[#allocation9 + $0xe0] sm:$0xf]  ;;  %v5249_v63 = vld [vmem:[#allocation9 + $0xf0] sm:$0xf0] }
 0x112   :  { %v6634_v49 = vpop.eup %6633 }
 0x113   :  { %v6636_v51 = vpop.eup %6635  ;;  %v817_v53 = vadd.f32 1.0, %v6634_v49 }
 0x114   :  { %v6638_v54 = vpop.eup %6637  ;;  %v780_v55 = vmul.f32 %v6636_v51, %v778_v24  ;;  %vm785_vm0 = vweird.f32 %v6636_v51 }
 0x115   :  { %v799_v57 = vmul.f32 %v6638_v54, %v797_v43  ;;  %6639 = vrcp.f32 %v817_v53  ;;  %vm804_vm1 = vweird.f32 %v6638_v54  ;;  %vm786_vm4 = vmor %vm784_vm2, %vm785_vm0  ;;  %vm823_vm9 = vweird.f32 %v817_v53 }
 0x116   :  { %v781_v6 = vsub.f32 1.0, %v780_v55  ;;  %6641 = vtanh.f32 %v773_v52  ;;  %vm805_vm6 = vmor %vm803_vm3, %vm804_vm1  ;;  %v829_v52 = vand.u32 2147483648, %v817_v53 }
 0x117   :  { %v800_v58 = vsub.f32 1.0, %v799_v57 }
 0x118   :  { %v782_v60 = vmul.f32 %v6636_v51, %v781_v6  ;;  %v830_v57 = vor.u32 1.1754944e-38, %v829_v52  ;;  %v5241_v52 = vld [vmem:[#allocation9 + $0xd8] sm:$0xf0] }
 0x119   :  { %v801_v62 = vmul.f32 %v6638_v54, %v800_v58 }
 0x11a   :  { %v783_v7 = vadd.f32 %v6636_v51, %v782_v60  ;;  %v6377_v60 = vld [vmem:[#allocation9 + $0xec] sm:$0xf0] }
 0x11b   :  { %v6640_v0 = vpop.eup %6639  ;;  %v802_v1 = vadd.f32 %v6638_v54, %v801_v62  ;;  %v5248_v62 = vor.u32 %v6377_v60, %v5247_v59  ;;  %v6370_v59 = vld [vmem:[#allocation9 + $0xb4] sm:$0xf0] }
 0x11c   :  { %v787_v3 = vsel %vm786_vm4, %v6636_v51, %v783_v7  ;;  %v819_v16 = vmul.f32 %v6640_v0, %v817_v53  ;;  %v6642_v18 = vpop.eup %6641  ;;  %vm824_vm8 = vweird.f32 %v6640_v0  ;;  %v827_v51 = vand.u32 2147483647, %v817_v53  ;;  %v5255_v7 = vld [vmem:[#allocation9 + $0xe8] sm:$0xf]  ;;  %v6378_v53 = vld [vmem:[#allocation9 + $0xf4] sm:$0xf0] }
 0x11d   :  { %v792_v22 = vsel %vm789_vm5, %v791_v34, %v787_v3  ;;  %v806_v41 = vsel %vm805_vm6, %v6638_v54, %v802_v1  ;;  %vm825_vm10 = vmor %vm823_vm9, %vm824_vm8  ;;  %v5252_v34 = vor.u32 %v6375_v61, %v5249_v63  ;;  %v6376_v1 = vld [vmem:[#allocation9 + $0xec] sm:$0xf]  ;;  %1353 = vmatpush.bf16.msrb.mxu0 %v5248_v62  ;;  %v5225_v63 = vld [vmem:[#allocation9 + $0xb8] sm:$0xf0] }
 0x11e   :  { %v811_v45 = vsel %vm808_vm7, %v810_v2, %v806_v41  ;;  %v834_v42 = vmul.f32 %v6642_v18, %v792_v22  ;;  %v820_v48 = vsub.f32 1.0, %v819_v16  ;;  %vm828_vm11 = vcmp.eq.f32.partialorder %v827_v51, 8.507059e+37  ;;  %v5257_v2 = vld [vmem:[#allocation9 + $0xf8] sm:$0xf0]  ;;  %v5231_v16 = vld [vmem:[#allocation9 + $0xc0] sm:$0xf] }
 0x11f   :  { %v833_v5 = vmul.f32 0.0, %v811_v45  ;;  %v5260_v3 = vor.u32 %v6376_v1, %v5257_v2  ;;  %1366 = vmatpush.bf16.msrb.mxu1 %v5252_v34  ;;  %v6373_v18 = vld [vmem:[#allocation9 + $0xcc] sm:$0xf0]  ;;  %v6371_v22 = vld [vmem:[#allocation9 + $0xc4] sm:$0xf] }
 0x120   :  { %v821_v49 = vmul.f32 %v6640_v0, %v820_v48  ;;  %v5232_v41 = vor.u32 %v6373_v18, %v5231_v16  ;;  %v5233_v45 = vld [vmem:[#allocation9 + $0xd0] sm:$0xf0]  ;;  %v6374_v48 = vld [vmem:[#allocation9 + $0xd4] sm:$0xf0]  ;;  %v6368_v62 = vld [vmem:[#allocation9 + $0xac] sm:$0xf] }
 0x121   :  { %v7279_v24 = vadd.f32 %v834_v42, %v833_v5  ;;  %1392 = vmatpush.bf16.msrb.mxu3 %v5260_v3  ;;  %v5239_v42 = vld [vmem:[#allocation9 + $0xc8] sm:$0xf]  ;;  %v5236_v5 = vor.u32 %v6371_v22, %v5233_v45  ;;  %v6365_v34 = vld [vmem:[#allocation9 + $0x8c] sm:$0xf0]  ;;  %v5201_v2 = vld [vmem:[#allocation9 + $0x90] sm:$0xf0] }
 0x122   :  { %v822_v43 = vadd.f32 %v6640_v0, %v821_v49  ;;  %v5240_v49 = vor.u32 %v6374_v48, %v5239_v42  ;;  %1354 = vmatpush.bf16.msrb.mxu0 %v5232_v41  ;;  %v5207_v3 = vld [vmem:[#allocation9 + $0x88] sm:$0xf]  ;;  %v6366_v16 = vld [vmem:[#allocation9 + $0x94] sm:$0xf0]  ;;  %v6364_v41 = vld [vmem:[#allocation9 + $0x8c] sm:$0xf] }
 0x123   :  { %6643 = vtanh.f32 %v7279_v24  ;;  %1367 = vmatpush.bf16.msrb.mxu1 %v5236_v5  ;;  %v5208_v22 = vor.u32 %v6366_v16, %v5207_v3  ;;  %v5209_v45 = vld [vmem:[#allocation9 + $0x98] sm:$0xf0]  ;;  %v5183_v48 = vld [vmem:[#allocation9 + $0x60] sm:$0xf]  ;;  %v6361_v5 = vld [vmem:[#allocation9 + $0x6c] sm:$0xf0] }
 0x124   :  { %v826_v55 = vsel %vm825_vm10, %v6640_v0, %v822_v43  ;;  %v5256_v0 = vor.u32 %v6378_v53, %v5255_v7  ;;  %v6372_v43 = vld [vmem:[#allocation9 + $0xcc] sm:$0xf]  ;;  %v5228_v7 = vor.u32 %v6368_v62, %v5225_v63  ;;  %v5199_v53 = vld [vmem:[#allocation9 + $0x80] sm:$0xf]  ;;  %v5212_v42 = vor.u32 %v6364_v41, %v5209_v45  ;;  %v5175_v16 = vld [vmem:[#allocation9 + $0x48] sm:$0xf] }
 0x125   :  { %v831_v6 = vsel %vm828_vm11, %v830_v57, %v826_v55  ;;  %v5244_v51 = vor.u32 %v6372_v43, %v5241_v52  ;;  %v5215_v55 = vld [vmem:[#allocation9 + $0xa0] sm:$0xf]  ;;  %v6369_v57 = vld [vmem:[#allocation9 + $0xac] sm:$0xf0]  ;;  %v5200_v1 = vor.u32 %v6365_v34, %v5199_v53  ;;  %v387_v43 = vadd.f32 %v7195_v9, %v7199_v12  ;;  %v5177_v45 = vld [vmem:[#allocation9 + $0x58] sm:$0xf0] }
 0x126   :  { %1379 = vmatpush.bf16.msrb.mxu2 %v5256_v0  ;;  %v6363_v0 = vld [vmem:[#allocation9 + $0x84] sm:$0xf]  ;;  %v416_v52 = vadd.f32 %v7197_v10, %v7203_v14  ;;  %v5167_v9 = vld [vmem:[#allocation9 + $0x40] sm:$0xf]  ;;  %v6357_v53 = vld [vmem:[#allocation9 + $0x4c] sm:$0xf0] }
 0x127   :  { %1393 = vmatpush.bf16.msrb.mxu3 %v5244_v51  ;;  %v5204_v18 = vor.u32 %v6363_v0, %v5201_v2  ;;  %v5184_v51 = vor.u32 %v6361_v5, %v5183_v48  ;;  %v6355_v10 = vld [vmem:[#allocation9 + $0x44] sm:$0xf]  ;;  %v5169_v2 = vld [vmem:[#allocation9 + $0x50] sm:$0xf0]  ;;  %v6353_v48 = vld [vmem:[#allocation9 + $0x2c] sm:$0xf0]  ;;  %v474_v5 = vadd.f32 %v7205_v15, %v7215_v21 }
 0x128   :  { %v5172_v3 = vor.u32 %v6355_v10, %v5169_v2 }
 0x129   :  { %v6644_v54 = vpop.eup %6643 }
 0x12a   :  { %v837_v58 = vmul.f32 %v6644_v54, %v831_v6  ;;  %1380 = vmatpush.bf16.msrb.mxu2 %v5240_v49  ;;  %v6367_v54 = vld [vmem:[#allocation9 + $0xa4] sm:$0xf]  ;;  %v5216_v6 = vor.u32 %v6369_v57, %v5215_v55  ;;  %v5185_v55 = vld [vmem:[#allocation9 + $0x70] sm:$0xf0]  ;;  %v5191_v57 = vld [vmem:[#allocation9 + $0x68] sm:$0xf] }
 0x12b   :  { %1394 = vmatpush.bf16.msrb.mxu3 %v5228_v7  ;;  %v6359_v49 = vld [vmem:[#allocation9 + $0x64] sm:$0xf] }
 0x12c   :  { %v838_v8 = vpack.c.bf16 %v837_v58, %v837_v58  ;;  %v5217_v58 = vld [vmem:[#allocation9 + $0xb0] sm:$0xf0]  ;;  %1355 = vmatpush.bf16.msrb.mxu0 %v5216_v6 }
 0x12d   :  { %v5220_v60 = vor.u32 %v6367_v54, %v5217_v58  ;;  %v6362_v54 = vld [vmem:[#allocation9 + $0x74] sm:$0xf0] }
 0x12e   :  { %839 = vst [vmem:[#allocation2] sm:$0xf] %v838_v8  ;;  %1044 = vmatmul.bf16.vlgmr.msra.gmra.mxu0 %v838_v8  ;;  %1057 = vmatmul.bf16.vlgmr.msra.gmra.mxu1 %v838_v8 }
 0x12f   :  { %1070 = vmatmul.bf16.vlgmr.msra.gmra.mxu2 %v838_v8  ;;  %1083 = vmatmul.bf16.vlgmr.msra.gmra.mxu3 %v838_v8  ;;  %v5223_v8 = vld [vmem:[#allocation9 + $0xa8] sm:$0xf] }
 0x130   :  { %v5224_v61 = vor.u32 %v6370_v59, %v5223_v8  ;;  %1368 = vmatpush.bf16.msrb.mxu1 %v5220_v60  ;;  %1356 = vmatpush.bf16.msrb.mxu0 %v5200_v1  ;;  %v5188_v8 = vor.u32 %v6359_v49, %v5185_v55  ;;  %v5192_v59 = vor.u32 %v6362_v54, %v5191_v57  ;;  %v6360_v60 = vld [vmem:[#allocation9 + $0x6c] sm:$0xf]  ;;  %v5159_v55 = vld [vmem:[#allocation9 + $0x28] sm:$0xf] }
 0x131   :  { %1395 = vmatpush.bf16.msrb.mxu3 %v5212_v42  ;;  %v5168_v1 = vor.u32 %v6357_v53, %v5167_v9  ;;  %v5151_v42 = vld [vmem:[#allocation9 + $0x20] sm:$0xf]  ;;  %v6349_v9 = vld [vmem:[#allocation9 + $0xc] sm:$0xf0]  ;;  %v6347_v53 = vld [vmem:[#allocation9 + $0x4] sm:$0xf] }
 0x132   :  { %1381 = vmatpush.bf16.msrb.mxu2 %v5224_v61  ;;  %v5193_v61 = vld [vmem:[#allocation9 + $0x78] sm:$0xf0] }
 0x133   :  { %v5196_v7 = vor.u32 %v6360_v60, %v5193_v61 }
 0x134   :  { %1369 = vmatpush.bf16.msrb.mxu1 %v5204_v18  ;;  %1357 = vmatpush.bf16.msrb.mxu0 %v5184_v51  ;;  %v6358_v18 = vld [vmem:[#allocation9 + $0x54] sm:$0xf0]  ;;  %v5153_v51 = vld [vmem:[#allocation9 + $0x30] sm:$0xf0] }
 0x135   :  { %1396 = vmatpush.bf16.msrb.mxu3 %v5196_v7  ;;  %v5176_v41 = vor.u32 %v6358_v18, %v5175_v16  ;;  %v5135_v7 = vld [vmem:[#allocation9] sm:$0xf]  ;;  %v6348_v16 = vld [vmem:[#allocation9 + $0xc] sm:$0xf]  ;;  %v5145_v18 = vld [vmem:[#allocation9 + $0x18] sm:$0xf0] }
 0x136   :  { %1382 = vmatpush.bf16.msrb.mxu2 %v5208_v22  ;;  %v6356_v22 = vld [vmem:[#allocation9 + $0x4c] sm:$0xf]  ;;  %v5136_v10 = vor.u32 %v6349_v9, %v5135_v7 }
 0x137   :  { %v5180_v49 = vor.u32 %v6356_v22, %v5177_v45 }
 0x138   :  { %1370 = vmatpush.bf16.msrb.mxu1 %v5188_v8  ;;  %1358 = vmatpush.bf16.msrb.mxu0 %v5168_v1  ;;  %v6352_v8 = vld [vmem:[#allocation9 + $0x2c] sm:$0xf]  ;;  %v6350_v1 = vld [vmem:[#allocation9 + $0x14] sm:$0xf0] }
 0x139   :  { %1397 = vmatpush.bf16.msrb.mxu3 %v5180_v49 }
 0x13a   :  { %1383 = vmatpush.bf16.msrb.mxu2 %v5192_v59  ;;  %v5161_v59 = vld [vmem:[#allocation9 + $0x38] sm:$0xf0] }
 0x13b   :  { %v5164_v15 = vor.u32 %v6352_v8, %v5161_v59 }
 0x13c   :  { %1371 = vmatpush.bf16.msrb.mxu1 %v5172_v3 }
 0x13d   :  { %1398 = vmatpush.bf16.msrb.mxu3 %v5164_v15 }
 0x13e   :  { %1384 = vmatpush.bf16.msrb.mxu2 %v5176_v41 }
 0x1ab   :  { %v1045_v6 = vpop.f32.mrf.mxu0  ;;  %v1058_v58 = vpop.f32.mrf.mxu1 }
 0x1ac   :  { %v1088_v62 = vadd.f32 %v1045_v6, %v387_v43  ;;  %v1089_v63 = vadd.f32 %v1058_v58, %v416_v52  ;;  %v5152_v43 = vor.u32 %v6353_v48, %v5151_v42  ;;  %v6351_v52 = vld [vmem:[#allocation9 + $0x24] sm:$0xf]  ;;  %v6354_v58 = vld [vmem:[#allocation9 + $0x34] sm:$0xf0]  ;;  %v5148_v48 = vor.u32 %v6348_v16, %v5145_v18 }
 0x1ad   :  { %v5156_v6 = vor.u32 %v6351_v52, %v5153_v51  ;;  %v445_v51 = vadd.f32 %v7201_v13, %v7213_v20 }
 0x1ae   :  { %v5130_v34 = vmul.f32 -1.442695, %v1088_v62  ;;  %v5131_v0 = vmul.f32 -1.442695, %v1089_v63  ;;  %v5160_v63 = vor.u32 %v6354_v58, %v5159_v55  ;;  %1359 = vmatpush.bf16.msrb.mxu0 %v5152_v43  ;;  %1399 = vmatpush.bf16.msrb.mxu3 %v5148_v48 }
 0x1af   :  { %1372 = vmatpush.bf16.msrb.mxu1 %v5156_v6 }
 0x1b0   :  { %6645 = vpow2.f32 %v5130_v34  ;;  %v5137_v34 = vld [vmem:[#allocation9 + $0x10] sm:$0xf0]  ;;  %1385 = vmatpush.bf16.msrb.mxu2 %v5160_v63 }
 0x1b1   :  { %6647 = vpow2.f32 %v5131_v0  ;;  %v5143_v0 = vld [vmem:[#allocation9 + $0x8] sm:$0xf]  ;;  %v5140_v3 = vor.u32 %v6347_v53, %v5137_v34 }
 0x1b2   :  { %v1071_v57 = vpop.f32.mrf.mxu2  ;;  %v1084_v54 = vpop.f32.mrf.mxu3  ;;  %v5144_v41 = vor.u32 %v6350_v1, %v5143_v0  ;;  %1360 = vmatpush.bf16.msrb.mxu0 %v5136_v10 }
 0x1b3   :  { %v1091_v60 = vadd.f32 %v1084_v54, %v474_v5  ;;  %v1047_v61 = vpop.f32.mrf.mxu0  ;;  %v1060_v62 = vpop.f32.mrf.mxu1  ;;  %1373 = vmatpush.bf16.msrb.mxu1 %v5140_v3  ;;  %v1090_v6 = vadd.f32 %v1071_v57, %v445_v51 }
 0x1b4   :  { %1386 = vmatpush.bf16.msrb.mxu2 %v5144_v41 }
 0x1b5   :  { %v5132_v2 = vmul.f32 -1.442695, %v1091_v60 }
 0x1b6   :  { %v6646_v22 = vpop.eup %6645 }
 0x1b7   :  { %v6648_v45 = vpop.eup %6647  ;;  %v1095_v42 = vadd.f32 1.0, %v6646_v22  ;;  %6649 = vpow2.f32 %v5132_v2 }
 0x1b8   :  { %v1114_v5 = vadd.f32 1.0, %v6648_v45 }
 0x1b9   :  { %6651 = vrcp.f32 %v1095_v42  ;;  %v1107_v62 = vand.u32 2147483648, %v1095_v42  ;;  %v1105_v7 = vand.u32 2147483647, %v1095_v42  ;;  %vm1101_vm14 = vweird.f32 %v1095_v42 }
 0x1ba   :  { %6653 = vrcp.f32 %v1114_v5  ;;  %v1073_v49 = vpop.f32.mrf.mxu2  ;;  %v1086_v43 = vpop.f32.mrf.mxu3  ;;  %v1126_v63 = vand.u32 2147483648, %v1114_v5  ;;  %v1124_v53 = vand.u32 2147483647, %v1114_v5  ;;  %vm1120_vm15 = vweird.f32 %v1114_v5 }
 0x1bb   :  { %v1108_v57 = vor.u32 1.1754944e-38, %v1107_v62  ;;  %vm1106_vm2 = vcmp.eq.f32.partialorder %v1105_v7, 8.507059e+37 }
 0x1bc   :  { %v1127_v1 = vor.u32 1.1754944e-38, %v1126_v63  ;;  %vm1125_vm3 = vcmp.eq.f32.partialorder %v1124_v53, 8.507059e+37  ;;  %v5380_v63 = vld [vmem:[#allocation9 + $0xf0] sm:$0xf0]  ;;  %v6408_v53 = vld [vmem:[#allocation9 + $0xec] sm:$0xf] }
 0x1bd   :  { %v6650_v52 = vpop.eup %6649 }
 0x1be   :  { %v1134_v55 = vadd.f32 1.0, %v6650_v52 }
 0x1bf   :  { %v6652_v54 = vpop.eup %6651 }
 0x1c0   :  { %v6654_v58 = vpop.eup %6653  ;;  %v1097_v8 = vmul.f32 %v6652_v54, %v1095_v42  ;;  %6655 = vrcp.f32 %v1134_v55  ;;  %vm1102_vm12 = vweird.f32 %v6652_v54  ;;  %v1146_v43 = vand.u32 2147483648, %v1134_v55 }
 0x1c1   :  { %v1116_v59 = vmul.f32 %v6654_v58, %v1114_v5  ;;  %6657 = vtanh.f32 %v1090_v6  ;;  %vm1121_vm13 = vweird.f32 %v6654_v58  ;;  %vm1103_vm0 = vmor %vm1101_vm14, %vm1102_vm12  ;;  %vm1140_vm5 = vweird.f32 %v1134_v55 }
 0x1c2   :  { %v1098_v60 = vsub.f32 1.0, %v1097_v8  ;;  %vm1122_vm1 = vmor %vm1120_vm15, %vm1121_vm13  ;;  %v1144_v52 = vand.u32 2147483647, %v1134_v55 }
 0x1c3   :  { %v1117_v61 = vsub.f32 1.0, %v1116_v59 }
 0x1c4   :  { %v1099_v15 = vmul.f32 %v6652_v54, %v1098_v60  ;;  %vm1145_vm7 = vcmp.eq.f32.partialorder %v1144_v52, 8.507059e+37  ;;  %v6409_v60 = vld [vmem:[#allocation9 + $0xec] sm:$0xf0] }
 0x1c5   :  { %v1118_v9 = vmul.f32 %v6654_v58, %v1117_v61  ;;  %v6407_v61 = vld [vmem:[#allocation9 + $0xe4] sm:$0xf] }
 0x1c6   :  { %v6656_v10 = vpop.eup %6655  ;;  %v1100_v13 = vadd.f32 %v6652_v54, %v1099_v15  ;;  %v5386_v15 = vld [vmem:[#allocation9 + $0xe8] sm:$0xf]  ;;  %v5383_v7 = vor.u32 %v6407_v61, %v5380_v63  ;;  %v5330_v61 = vld [vmem:[#allocation9 + $0x80] sm:$0xf]  ;;  %v6395_v63 = vld [vmem:[#allocation9 + $0x84] sm:$0xf] }
 0x1c7   :  { %v1119_v34 = vadd.f32 %v6654_v58, %v1118_v9  ;;  %v1136_v0 = vmul.f32 %v6656_v10, %v1134_v55  ;;  %v6658_v3 = vpop.eup %6657  ;;  %vm1141_vm4 = vweird.f32 %v6656_v10  ;;  %v6410_v55 = vld [vmem:[#allocation9 + $0xf4] sm:$0xf0] }
 0x1c8   :  { %v1104_v2 = vsel %vm1103_vm0, %v6652_v54, %v1100_v13  ;;  %vm1142_vm6 = vmor %vm1140_vm5, %vm1141_vm4  ;;  %v1147_v54 = vor.u32 1.1754944e-38, %v1146_v43  ;;  %v5387_v9 = vor.u32 %v6410_v55, %v5386_v15  ;;  %1683 = vmatpush.bf16.msra.mxu1 %v5383_v7  ;;  %v6399_v43 = vld [vmem:[#allocation9 + $0xa4] sm:$0xf]  ;;  %v5332_v55 = vld [vmem:[#allocation9 + $0x90] sm:$0xf0] }
 0x1c9   :  { %v1109_v16 = vsel %vm1106_vm2, %v1108_v57, %v1104_v2  ;;  %v1123_v18 = vsel %vm1122_vm1, %v6654_v58, %v1119_v34  ;;  %v1137_v22 = vsub.f32 1.0, %v1136_v0  ;;  %v5362_v57 = vld [vmem:[#allocation9 + $0xc0] sm:$0xf]  ;;  %v6405_v34 = vld [vmem:[#allocation9 + $0xcc] sm:$0xf0] }
 0x1ca   :  { %v1128_v41 = vsel %vm1125_vm3, %v1127_v1, %v1123_v18  ;;  %v1151_v45 = vmul.f32 %v6658_v3, %v1109_v16  ;;  %1696 = vmatpush.bf16.msra.mxu2 %v5387_v9  ;;  %v6403_v0 = vld [vmem:[#allocation9 + $0xc4] sm:$0xf]  ;;  %v5363_v1 = vor.u32 %v6405_v34, %v5362_v57  ;;  %v5364_v2 = vld [vmem:[#allocation9 + $0xd0] sm:$0xf0]  ;;  %v5370_v3 = vld [vmem:[#allocation9 + $0xc8] sm:$0xf] }
 0x1cb   :  { %v1150_v48 = vmul.f32 %v1128_v41, %v7279_v24  ;;  %v1138_v49 = vmul.f32 %v6656_v10, %v1137_v22  ;;  %v5378_v24 = vld [vmem:[#allocation9 + $0xe0] sm:$0xf]  ;;  %v6406_v16 = vld [vmem:[#allocation9 + $0xd4] sm:$0xf0]  ;;  %v5367_v18 = vor.u32 %v6403_v0, %v5364_v2  ;;  %v6404_v41 = vld [vmem:[#allocation9 + $0xcc] sm:$0xf] }
 0x1cc   :  { %v5379_v62 = vor.u32 %v6409_v60, %v5378_v24  ;;  %v5371_v22 = vor.u32 %v6406_v16, %v5370_v3  ;;  %v5356_v24 = vld [vmem:[#allocation9 + $0xb8] sm:$0xf0]  ;;  %v5338_v7 = vld [vmem:[#allocation9 + $0x88] sm:$0xf]  ;;  %v6398_v9 = vld [vmem:[#allocation9 + $0x94] sm:$0xf0] }
 0x1cd   :  { %v7291_v42 = vadd.f32 %v1151_v45, %v1150_v48  ;;  %v1139_v5 = vadd.f32 %v6656_v10, %v1138_v49  ;;  %v5372_v45 = vld [vmem:[#allocation9 + $0xd8] sm:$0xf0]  ;;  %1684 = vmatpush.bf16.msra.mxu1 %v5367_v18  ;;  %v5346_v49 = vld [vmem:[#allocation9 + $0xa0] sm:$0xf]  ;;  %v6391_v2 = vld [vmem:[#allocation9 + $0x64] sm:$0xf] }
 0x1ce   :  { %1670 = vmatpush.bf16.msra.mxu0 %v5379_v62  ;;  %v5375_v48 = vor.u32 %v6404_v41, %v5372_v45  ;;  %1697 = vmatpush.bf16.msra.mxu2 %v5371_v22  ;;  %v6397_v62 = vld [vmem:[#allocation9 + $0x8c] sm:$0xf0]  ;;  %v5340_v57 = vld [vmem:[#allocation9 + $0x98] sm:$0xf0]  ;;  %v5314_v0 = vld [vmem:[#allocation9 + $0x60] sm:$0xf] }
 0x1cf   :  { %6659 = vtanh.f32 %v7291_v42  ;;  %v1143_v51 = vsel %vm1142_vm6, %v6656_v10, %v1139_v5  ;;  %v5388_v10 = vld [vmem:[#allocation9 + $0xf8] sm:$0xf0]  ;;  %v6401_v5 = vld [vmem:[#allocation9 + $0xac] sm:$0xf0]  ;;  %v5331_v15 = vor.u32 %v6397_v62, %v5330_v61  ;;  %v5316_v16 = vld [vmem:[#allocation9 + $0x70] sm:$0xf0] }
 0x1d0   :  { %v1148_v58 = vsel %vm1145_vm7, %v1147_v54, %v1143_v51  ;;  %v5391_v13 = vor.u32 %v6408_v53, %v5388_v10  ;;  %v5347_v52 = vor.u32 %v6401_v5, %v5346_v49  ;;  %v5348_v51 = vld [vmem:[#allocation9 + $0xb0] sm:$0xf0]  ;;  %v5354_v54 = vld [vmem:[#allocation9 + $0xa8] sm:$0xf]  ;;  %v5335_v53 = vor.u32 %v6395_v63, %v5332_v55  ;;  %v6394_v22 = vld [vmem:[#allocation9 + $0x74] sm:$0xf0] }
 0x1d1   :  { %v5339_v10 = vor.u32 %v6398_v9, %v5338_v7  ;;  %v5322_v18 = vld [vmem:[#allocation9 + $0x68] sm:$0xf]  ;;  %v6392_v5 = vld [vmem:[#allocation9 + $0x6c] sm:$0xf]  ;;  %v5300_v61 = vld [vmem:[#allocation9 + $0x50] sm:$0xf0] }
 0x1d2   :  { %1709 = vmatpush.bf16.msra.mxu3 %v5391_v13  ;;  %1671 = vmatpush.bf16.msra.mxu0 %v5363_v1  ;;  %v6396_v13 = vld [vmem:[#allocation9 + $0x8c] sm:$0xf]  ;;  %v6393_v1 = vld [vmem:[#allocation9 + $0x6c] sm:$0xf0]  ;;  %v5323_v49 = vor.u32 %v6394_v22, %v5322_v18  ;;  %v5306_v63 = vld [vmem:[#allocation9 + $0x48] sm:$0xf] }
 0x1d3   :  { %v5343_v34 = vor.u32 %v6396_v13, %v5340_v57  ;;  %v5315_v3 = vor.u32 %v6393_v1, %v5314_v0  ;;  %v6388_v55 = vld [vmem:[#allocation9 + $0x4c] sm:$0xf]  ;;  %v5282_v7 = vld [vmem:[#allocation9 + $0x20] sm:$0xf]  ;;  %v6385_v9 = vld [vmem:[#allocation9 + $0x2c] sm:$0xf0] }
 0x1d4   :  { %v6383_v13 = vld [vmem:[#allocation9 + $0x24] sm:$0xf]  ;;  %v5284_v57 = vld [vmem:[#allocation9 + $0x30] sm:$0xf0]  ;;  %v5292_v18 = vld [vmem:[#allocation9 + $0x38] sm:$0xf0] }
 0x1d5   :  { %v6660_v6 = vpop.eup %6659 }
 0x1d6   :  { %v1154_v8 = vmul.f32 %v6660_v6, %v1148_v58  ;;  %1710 = vmatpush.bf16.msra.mxu3 %v5375_v48  ;;  %v6402_v6 = vld [vmem:[#allocation9 + $0xb4] sm:$0xf0]  ;;  %v5351_v58 = vor.u32 %v6399_v43, %v5348_v51  ;;  %1672 = vmatpush.bf16.msra.mxu0 %v5347_v52  ;;  %v5319_v48 = vor.u32 %v6391_v2, %v5316_v16  ;;  %v5324_v43 = vld [vmem:[#allocation9 + $0x78] sm:$0xf0]  ;;  %v6384_v16 = vld [vmem:[#allocation9 + $0x2c] sm:$0xf] }
 0x1d7   :  { %v5287_v2 = vor.u32 %v6383_v13, %v5284_v57 }
 0x1d8   :  { %v1155_v59 = vpack.c.bf16 %v1154_v8, %v1154_v8  ;;  %v5355_v8 = vor.u32 %v6402_v6, %v5354_v54  ;;  %1685 = vmatpush.bf16.msra.mxu1 %v5351_v58  ;;  %v5327_v54 = vor.u32 %v6392_v5, %v5324_v43  ;;  %v5298_v6 = vld [vmem:[#allocation9 + $0x40] sm:$0xf]  ;;  %v6389_v58 = vld [vmem:[#allocation9 + $0x4c] sm:$0xf0] }
 0x1d9   :  { %v5266_v5 = vld [vmem:[#allocation9] sm:$0xf]  ;;  %v6381_v43 = vld [vmem:[#allocation9 + $0xc] sm:$0xf0] }
 0x1da   :  { %1156 = vst [vmem:[#allocation2 + $0x4] sm:$0xf] %v1155_v59  ;;  %1361 = vmatmul.bf16.vlgmr.msrb.gmra.mxu0 %v1155_v59  ;;  %1374 = vmatmul.bf16.vlgmr.msrb.gmra.mxu1 %v1155_v59 }
 0x1db   :  { %1387 = vmatmul.bf16.vlgmr.msrb.gmra.mxu2 %v1155_v59  ;;  %1400 = vmatmul.bf16.vlgmr.msrb.gmra.mxu3 %v1155_v59  ;;  %v6400_v59 = vld [vmem:[#allocation9 + $0xac] sm:$0xf] }
 0x1dc   :  { %v5359_v60 = vor.u32 %v6400_v59, %v5356_v24  ;;  %1698 = vmatpush.bf16.msra.mxu2 %v5355_v8  ;;  %1673 = vmatpush.bf16.msra.mxu0 %v5331_v15  ;;  %v6387_v8 = vld [vmem:[#allocation9 + $0x44] sm:$0xf]  ;;  %v6390_v15 = vld [vmem:[#allocation9 + $0x54] sm:$0xf0] }
 0x1dd   :  { %1686 = vmatpush.bf16.msra.mxu1 %v5335_v53  ;;  %v5303_v62 = vor.u32 %v6387_v8, %v5300_v61 }
 0x1de   :  { %1711 = vmatpush.bf16.msra.mxu3 %v5359_v60  ;;  %v5299_v60 = vor.u32 %v6389_v58, %v5298_v6  ;;  %v5274_v6 = vld [vmem:[#allocation9 + $0x8] sm:$0xf]  ;;  %v6382_v58 = vld [vmem:[#allocation9 + $0x14] sm:$0xf0] }
 0x1e0   :  { %1699 = vmatpush.bf16.msra.mxu2 %v5339_v10  ;;  %1674 = vmatpush.bf16.msra.mxu0 %v5315_v3  ;;  %v5283_v10 = vor.u32 %v6385_v9, %v5282_v7  ;;  %v6386_v3 = vld [vmem:[#allocation9 + $0x34] sm:$0xf0] }
 0x1e1   :  { %1687 = vmatpush.bf16.msra.mxu1 %v5319_v48 }
 0x1e2   :  { %1712 = vmatpush.bf16.msra.mxu3 %v5343_v34  ;;  %v5290_v34 = vld [vmem:[#allocation9 + $0x28] sm:$0xf] }
 0x1e3   :  { %v5291_v48 = vor.u32 %v6386_v3, %v5290_v34 }
 0x1e4   :  { %1700 = vmatpush.bf16.msra.mxu2 %v5323_v49  ;;  %1675 = vmatpush.bf16.msra.mxu0 %v5299_v60  ;;  %v5295_v49 = vor.u32 %v6384_v16, %v5292_v18  ;;  %v5276_v60 = vld [vmem:[#allocation9 + $0x18] sm:$0xf0] }
 0x1e5   :  { %1688 = vmatpush.bf16.msra.mxu1 %v5303_v62 }
 0x1e6   :  { %1713 = vmatpush.bf16.msra.mxu3 %v5327_v54  ;;  %v5268_v54 = vld [vmem:[#allocation9 + $0x10] sm:$0xf0] }
 0x1e8   :  { %1676 = vmatpush.bf16.msra.mxu0 %v5283_v10 }
 0x1e9   :  { %1689 = vmatpush.bf16.msra.mxu1 %v5287_v2 }
 0x257   :  { %v1362_v41 = vpop.f32.mrf.mxu0  ;;  %v1375_v45 = vpop.f32.mrf.mxu1 }
 0x258   :  { %v1405_v52 = vadd.f32 %v1362_v41, %v7208_v17  ;;  %v1406_v51 = vadd.f32 %v1375_v45, %v7211_v19  ;;  %v5307_v17 = vor.u32 %v6390_v15, %v5306_v63  ;;  %v5308_v19 = vld [vmem:[#allocation9 + $0x58] sm:$0xf0] }
 0x259   :  { %v5311_v53 = vor.u32 %v6388_v55, %v5308_v19 }
 0x25a   :  { %v5261_v59 = vmul.f32 -1.442695, %v1405_v52  ;;  %v5262_v24 = vmul.f32 -1.442695, %v1406_v51  ;;  %1701 = vmatpush.bf16.msra.mxu2 %v5307_v17  ;;  %v6379_v52 = vld [vmem:[#allocation9 + $0x4] sm:$0xf]  ;;  %v5267_v51 = vor.u32 %v6381_v43, %v5266_v5 }
 0x25b   :  { %1714 = vmatpush.bf16.msra.mxu3 %v5311_v53 }
 0x25c   :  { %6661 = vpow2.f32 %v5261_v59  ;;  %v5271_v59 = vor.u32 %v6379_v52, %v5268_v54  ;;  %1677 = vmatpush.bf16.msra.mxu0 %v5267_v51 }
 0x25d   :  { %6663 = vpow2.f32 %v5262_v24  ;;  %v6380_v24 = vld [vmem:[#allocation9 + $0xc] sm:$0xf] }
 0x25e   :  { %v1388_v0 = vpop.f32.mrf.mxu2  ;;  %v1401_v1 = vpop.f32.mrf.mxu3  ;;  %1702 = vmatpush.bf16.msra.mxu2 %v5291_v48  ;;  %v5279_v15 = vor.u32 %v6380_v24, %v5276_v60  ;;  %1690 = vmatpush.bf16.msra.mxu1 %v5271_v59 }
 0x25f   :  { %v1408_v22 = vadd.f32 %v1401_v1, %v7223_v26  ;;  %v1364_v41 = vpop.f32.mrf.mxu0  ;;  %v1377_v45 = vpop.f32.mrf.mxu1  ;;  %v5275_v26 = vor.u32 %v6382_v58, %v5274_v6  ;;  %1715 = vmatpush.bf16.msra.mxu3 %v5295_v49  ;;  %v1407_v10 = vadd.f32 %v1388_v0, %v7218_v23 }
 0x261   :  { %v5263_v8 = vmul.f32 -1.442695, %v1408_v22 }
 0x262   :  { %v6662_v61 = vpop.eup %6661  ;;  %1703 = vmatpush.bf16.msra.mxu2 %v5275_v26 }
 0x263   :  { %v6664_v62 = vpop.eup %6663  ;;  %v1412_v63 = vadd.f32 1.0, %v6662_v61  ;;  %6665 = vpow2.f32 %v5263_v8  ;;  %1716 = vmatpush.bf16.msra.mxu3 %v5279_v15 }
 0x264   :  { %v1431_v55 = vadd.f32 1.0, %v6664_v62 }
 0x265   :  { %6667 = vrcp.f32 %v1412_v63  ;;  %v1424_v3 = vand.u32 2147483648, %v1412_v63  ;;  %v1422_v22 = vand.u32 2147483647, %v1412_v63  ;;  %vm1418_vm10 = vweird.f32 %v1412_v63 }
 0x266   :  { %6669 = vrcp.f32 %v1431_v55  ;;  %v1390_v17 = vpop.f32.mrf.mxu2  ;;  %v1403_v19 = vpop.f32.mrf.mxu3  ;;  %v1443_v16 = vand.u32 2147483648, %v1431_v55  ;;  %v1441_v45 = vand.u32 2147483647, %v1431_v55  ;;  %vm1437_vm11 = vweird.f32 %v1431_v55 }
 0x267   :  { %v1425_v23 = vor.u32 1.1754944e-38, %v1424_v3  ;;  %vm1423_vm14 = vcmp.eq.f32.partialorder %v1422_v22, 8.507059e+37 }
 0x268   :  { %v1444_v43 = vor.u32 1.1754944e-38, %v1443_v16  ;;  %vm1442_vm15 = vcmp.eq.f32.partialorder %v1441_v45, 8.507059e+37  ;;  %v6440_v16 = vld [vmem:[#allocation9 + $0xec] sm:$0xf]  ;;  %v6437_v45 = vld [vmem:[#allocation9 + $0xcc] sm:$0xf0] }
 0x269   :  { %v6666_v7 = vpop.eup %6665 }
 0x26a   :  { %v1451_v9 = vadd.f32 1.0, %v6666_v7 }
 0x26b   :  { %v6668_v53 = vpop.eup %6667 }
 0x26c   :  { %v6670_v13 = vpop.eup %6669  ;;  %v1414_v57 = vmul.f32 %v6668_v53, %v1412_v63  ;;  %6671 = vrcp.f32 %v1451_v9  ;;  %vm1419_vm8 = vweird.f32 %v6668_v53  ;;  %v1463_v62 = vand.u32 2147483648, %v1451_v9 }
 0x26d   :  { %v1433_v34 = vmul.f32 %v6670_v13, %v1431_v55  ;;  %6673 = vtanh.f32 %v1407_v10  ;;  %vm1438_vm9 = vweird.f32 %v6670_v13  ;;  %vm1420_vm12 = vmor %vm1418_vm10, %vm1419_vm8  ;;  %vm1457_vm1 = vweird.f32 %v1451_v9  ;;  %v6441_v10 = vld [vmem:[#allocation9 + $0xec] sm:$0xf0] }
 0x26e   :  { %v1415_v1 = vsub.f32 1.0, %v1414_v57  ;;  %vm1439_vm13 = vmor %vm1437_vm11, %vm1438_vm9  ;;  %v1461_v63 = vand.u32 2147483647, %v1451_v9  ;;  %v1464_v55 = vor.u32 1.1754944e-38, %v1463_v62  ;;  %v6434_v62 = vld [vmem:[#allocation9 + $0xb4] sm:$0xf0] }
 0x26f   :  { %v1434_v2 = vsub.f32 1.0, %v1433_v34  ;;  %v5511_v34 = vld [vmem:[#allocation9 + $0xf0] sm:$0xf0] }
 0x270   :  { %v1416_v18 = vmul.f32 %v6668_v53, %v1415_v1  ;;  %vm1462_vm3 = vcmp.eq.f32.partialorder %v1461_v63, 8.507059e+37  ;;  %v5517_v1 = vld [vmem:[#allocation9 + $0xe8] sm:$0xf] }
 0x271   :  { %v1435_v41 = vmul.f32 %v6670_v13, %v1434_v2 }
 0x272   :  { %v6672_v48 = vpop.eup %6671  ;;  %v1417_v49 = vadd.f32 %v6668_v53, %v1416_v18  ;;  %v5519_v18 = vld [vmem:[#allocation9 + $0xf8] sm:$0xf0] }
 0x273   :  { %v1436_v0 = vadd.f32 %v6670_v13, %v1435_v41  ;;  %v1453_v5 = vmul.f32 %v6672_v48, %v1451_v9  ;;  %v6674_v51 = vpop.eup %6673  ;;  %vm1458_vm0 = vweird.f32 %v6672_v48  ;;  %v6442_v9 = vld [vmem:[#allocation9 + $0xf4] sm:$0xf0]  ;;  %v5522_v22 = vor.u32 %v6440_v16, %v5519_v18  ;;  %v5493_v41 = vld [vmem:[#allocation9 + $0xc0] sm:$0xf] }
 0x274   :  { %v1421_v52 = vsel %vm1420_vm12, %v6668_v53, %v1417_v49  ;;  %vm1459_vm2 = vmor %vm1457_vm1, %vm1458_vm0  ;;  %v5518_v3 = vor.u32 %v6442_v9, %v5517_v1  ;;  %v5494_v49 = vor.u32 %v6437_v45, %v5493_v41  ;;  %v5445_v18 = vld [vmem:[#allocation9 + $0x60] sm:$0xf]  ;;  %v6423_v41 = vld [vmem:[#allocation9 + $0x64] sm:$0xf]  ;;  %v392_v45 = vadd.f32 %v7220_v25, %v7199_v12 }
 0x275   :  { %v1426_v54 = vsel %vm1423_vm14, %v1425_v23, %v1421_v52  ;;  %v1440_v6 = vsel %vm1439_vm13, %v6670_v13, %v1436_v0  ;;  %v1454_v58 = vsub.f32 1.0, %v1453_v5  ;;  %v6439_v13 = vld [vmem:[#allocation9 + $0xe4] sm:$0xf]  ;;  %2026 = vmatpush.bf16.msrb.mxu3 %v5522_v22  ;;  %v5495_v23 = vld [vmem:[#allocation9 + $0xd0] sm:$0xf0] }
 0x276   :  { %v1445_v8 = vsel %vm1442_vm15, %v1444_v43, %v1440_v6  ;;  %v1468_v59 = vmul.f32 %v6674_v51, %v1426_v54  ;;  %v5514_v2 = vor.u32 %v6439_v13, %v5511_v34  ;;  %2013 = vmatpush.bf16.msrb.mxu2 %v5518_v3  ;;  %v5501_v0 = vld [vmem:[#allocation9 + $0xc8] sm:$0xf]  ;;  %v6438_v5 = vld [vmem:[#allocation9 + $0xd4] sm:$0xf0]  ;;  %v6436_v51 = vld [vmem:[#allocation9 + $0xcc] sm:$0xf] }
 0x277   :  { %v1467_v24 = vmul.f32 %v1445_v8, %v7291_v42  ;;  %v1455_v60 = vmul.f32 %v6672_v48, %v1454_v58  ;;  %v5509_v42 = vld [vmem:[#allocation9 + $0xe0] sm:$0xf]  ;;  %v5502_v52 = vor.u32 %v6438_v5, %v5501_v0  ;;  %v5503_v54 = vld [vmem:[#allocation9 + $0xd8] sm:$0xf0]  ;;  %v6433_v8 = vld [vmem:[#allocation9 + $0xac] sm:$0xf0] }
 0x278   :  { %v5510_v57 = vor.u32 %v6441_v10, %v5509_v42  ;;  %2000 = vmatpush.bf16.msrb.mxu1 %v5514_v2  ;;  %v5506_v6 = vor.u32 %v6436_v51, %v5503_v54  ;;  %v5477_v58 = vld [vmem:[#allocation9 + $0xa0] sm:$0xf]  ;;  %v6427_v42 = vld [vmem:[#allocation9 + $0x84] sm:$0xf]  ;;  %v5463_v13 = vld [vmem:[#allocation9 + $0x90] sm:$0xf0] }
 0x279   :  { %v7299_v61 = vadd.f32 %v1468_v59, %v1467_v24  ;;  %v1456_v26 = vadd.f32 %v6672_v48, %v1455_v60  ;;  %v6431_v59 = vld [vmem:[#allocation9 + $0xa4] sm:$0xf]  ;;  %v5478_v24 = vor.u32 %v6433_v8, %v5477_v58  ;;  %v5479_v60 = vld [vmem:[#allocation9 + $0xb0] sm:$0xf0]  ;;  %v6430_v34 = vld [vmem:[#allocation9 + $0x94] sm:$0xf0]  ;;  %v5466_v1 = vor.u32 %v6427_v42, %v5463_v13 }
 0x27a   :  { %1987 = vmatpush.bf16.msrb.mxu0 %v5510_v57  ;;  %2014 = vmatpush.bf16.msrb.mxu2 %v5502_v52  ;;  %v5482_v63 = vor.u32 %v6431_v59, %v5479_v60  ;;  %v5469_v57 = vld [vmem:[#allocation9 + $0x88] sm:$0xf]  ;;  %v6428_v2 = vld [vmem:[#allocation9 + $0x8c] sm:$0xf]  ;;  %v5471_v3 = vld [vmem:[#allocation9 + $0x98] sm:$0xf0] }
 0x27b   :  { %6675 = vtanh.f32 %v7299_v61  ;;  %v1460_v15 = vsel %vm1459_vm2, %v6672_v48, %v1456_v26  ;;  %v6435_v48 = vld [vmem:[#allocation9 + $0xc4] sm:$0xf]  ;;  %2027 = vmatpush.bf16.msrb.mxu3 %v5506_v6  ;;  %v5485_v26 = vld [vmem:[#allocation9 + $0xa8] sm:$0xf]  ;;  %v5470_v9 = vor.u32 %v6430_v34, %v5469_v57  ;;  %v5474_v16 = vor.u32 %v6428_v2, %v5471_v3  ;;  %v6425_v22 = vld [vmem:[#allocation9 + $0x6c] sm:$0xf0] }
 0x27c   :  { %v1465_v19 = vsel %vm1462_vm3, %v1464_v55, %v1460_v15  ;;  %v5498_v43 = vor.u32 %v6435_v48, %v5495_v23  ;;  %v5486_v15 = vor.u32 %v6434_v62, %v5485_v26  ;;  %v6432_v55 = vld [vmem:[#allocation9 + $0xac] sm:$0xf]  ;;  %v421_v48 = vadd.f32 %v7225_v27, %v7203_v14  ;;  %v5447_v23 = vld [vmem:[#allocation9 + $0x70] sm:$0xf0]  ;;  %v5453_v0 = vld [vmem:[#allocation9 + $0x68] sm:$0xf] }
 0x27d   :  { %v6426_v5 = vld [vmem:[#allocation9 + $0x74] sm:$0xf0]  ;;  %v5450_v51 = vor.u32 %v6423_v41, %v5447_v23  ;;  %v6424_v6 = vld [vmem:[#allocation9 + $0x6c] sm:$0xf]  ;;  %v5455_v58 = vld [vmem:[#allocation9 + $0x78] sm:$0xf0]  ;;  %v479_v57 = vadd.f32 %v7229_v29, %v7215_v21 }
 0x27e   :  { %1988 = vmatpush.bf16.msrb.mxu0 %v5494_v49  ;;  %2001 = vmatpush.bf16.msrb.mxu1 %v5498_v43  ;;  %v5446_v49 = vor.u32 %v6425_v22, %v5445_v18  ;;  %v5454_v54 = vor.u32 %v6426_v5, %v5453_v0  ;;  %v5429_v25 = vld [vmem:[#allocation9 + $0x40] sm:$0xf]  ;;  %v6421_v60 = vld [vmem:[#allocation9 + $0x4c] sm:$0xf0]  ;;  %v6419_v27 = vld [vmem:[#allocation9 + $0x44] sm:$0xf] }
 0x27f   :  { %2015 = vmatpush.bf16.msrb.mxu2 %v5486_v15  ;;  %v5431_v15 = vld [vmem:[#allocation9 + $0x50] sm:$0xf0]  ;;  %v5439_v42 = vld [vmem:[#allocation9 + $0x58] sm:$0xf0]  ;;  %v6417_v13 = vld [vmem:[#allocation9 + $0x2c] sm:$0xf0] }
 0x280   :  { %v5415_v2 = vld [vmem:[#allocation9 + $0x30] sm:$0xf0]  ;;  %v5421_v3 = vld [vmem:[#allocation9 + $0x28] sm:$0xf]  ;;  %v6418_v41 = vld [vmem:[#allocation9 + $0x34] sm:$0xf0] }
 0x281   :  { %v6676_v17 = vpop.eup %6675  ;;  %v5422_v5 = vor.u32 %v6418_v41, %v5421_v3 }
 0x282   :  { %v1471_v7 = vmul.f32 %v6676_v17, %v1465_v19  ;;  %v5487_v17 = vld [vmem:[#allocation9 + $0xb8] sm:$0xf0]  ;;  %1989 = vmatpush.bf16.msrb.mxu0 %v5478_v24  ;;  %2002 = vmatpush.bf16.msrb.mxu1 %v5482_v63  ;;  %v5458_v24 = vor.u32 %v6424_v6, %v5455_v58  ;;  %v5430_v63 = vor.u32 %v6421_v60, %v5429_v25  ;;  %v5399_v6 = vld [vmem:[#allocation9 + $0x10] sm:$0xf0]  ;;  %v5405_v58 = vld [vmem:[#allocation9 + $0x8] sm:$0xf] }
 0x283   :  { %v5490_v19 = vor.u32 %v6432_v55, %v5487_v17  ;;  %2016 = vmatpush.bf16.msrb.mxu2 %v5470_v9  ;;  %v5434_v55 = vor.u32 %v6419_v27, %v5431_v15  ;;  %v5437_v17 = vld [vmem:[#allocation9 + $0x48] sm:$0xf]  ;;  %v6415_v9 = vld [vmem:[#allocation9 + $0x24] sm:$0xf]  ;;  %v6412_v25 = vld [vmem:[#allocation9 + $0xc] sm:$0xf] }
 0x284   :  { %v1472_v53 = vpack.c.bf16 %v1471_v7, %v1471_v7  ;;  %v5461_v7 = vld [vmem:[#allocation9 + $0x80] sm:$0xf]  ;;  %v5418_v22 = vor.u32 %v6415_v9, %v5415_v2  ;;  %v5407_v60 = vld [vmem:[#allocation9 + $0x18] sm:$0xf0] }
 0x285   :  { %2028 = vmatpush.bf16.msrb.mxu3 %v5490_v19  ;;  %v6422_v19 = vld [vmem:[#allocation9 + $0x54] sm:$0xf0]  ;;  %v5410_v15 = vor.u32 %v6412_v25, %v5407_v60 }
 0x286   :  { %1473 = vst [vmem:[#allocation2 + $0x8] sm:$0xf] %v1472_v53  ;;  %1678 = vmatmul.bf16.vlgmr.msra.gmra.mxu0 %v1472_v53  ;;  %1691 = vmatmul.bf16.vlgmr.msra.gmra.mxu1 %v1472_v53 }
 0x287   :  { %1704 = vmatmul.bf16.vlgmr.msra.gmra.mxu2 %v1472_v53  ;;  %1717 = vmatmul.bf16.vlgmr.msra.gmra.mxu3 %v1472_v53  ;;  %v6429_v53 = vld [vmem:[#allocation9 + $0x8c] sm:$0xf0] }
 0x288   :  { %v5462_v10 = vor.u32 %v6429_v53, %v5461_v7  ;;  %2003 = vmatpush.bf16.msrb.mxu1 %v5466_v1  ;;  %2017 = vmatpush.bf16.msrb.mxu2 %v5454_v54  ;;  %v6420_v7 = vld [vmem:[#allocation9 + $0x4c] sm:$0xf]  ;;  %v5438_v53 = vor.u32 %v6422_v19, %v5437_v17 }
 0x289   :  { %2029 = vmatpush.bf16.msrb.mxu3 %v5474_v16  ;;  %v5442_v34 = vor.u32 %v6420_v7, %v5439_v42 }
 0x28a   :  { %1990 = vmatpush.bf16.msrb.mxu0 %v5462_v10  ;;  %v5413_v10 = vld [vmem:[#allocation9 + $0x20] sm:$0xf] }
 0x28b   :  { %v5414_v1 = vor.u32 %v6417_v13, %v5413_v10 }
 0x28c   :  { %2004 = vmatpush.bf16.msrb.mxu1 %v5450_v51  ;;  %2018 = vmatpush.bf16.msrb.mxu2 %v5438_v53  ;;  %v6411_v51 = vld [vmem:[#allocation9 + $0x4] sm:$0xf]  ;;  %v450_v53 = vadd.f32 %v7227_v28, %v7213_v20 }
 0x28d   :  { %2030 = vmatpush.bf16.msrb.mxu3 %v5458_v24  ;;  %v5402_v24 = vor.u32 %v6411_v51, %v5399_v6 }
 0x28e   :  { %1991 = vmatpush.bf16.msrb.mxu0 %v5446_v49 }
 0x290   :  { %2005 = vmatpush.bf16.msrb.mxu1 %v5434_v55  ;;  %2019 = vmatpush.bf16.msrb.mxu2 %v5422_v5 }
 0x291   :  { %2031 = vmatpush.bf16.msrb.mxu3 %v5442_v34 }
 0x292   :  { %1992 = vmatpush.bf16.msrb.mxu0 %v5430_v63 }
 0x294   :  { %2006 = vmatpush.bf16.msrb.mxu1 %v5418_v22 }
 0x296   :  { %1993 = vmatpush.bf16.msrb.mxu0 %v5414_v1 }
 0x298   :  { %2007 = vmatpush.bf16.msrb.mxu1 %v5402_v24 }
 0x303   :  { %v1679_v43 = vpop.f32.mrf.mxu0  ;;  %v1692_v52 = vpop.f32.mrf.mxu1 }
 0x304   :  { %v1722_v8 = vadd.f32 %v1679_v43, %v392_v45  ;;  %v1723_v59 = vadd.f32 %v1692_v52, %v421_v48  ;;  %v6416_v45 = vld [vmem:[#allocation9 + $0x2c] sm:$0xf]  ;;  %v5423_v48 = vld [vmem:[#allocation9 + $0x38] sm:$0xf0]  ;;  %v5397_v43 = vld [vmem:[#allocation9] sm:$0xf] }
 0x305   :  { %v5426_v29 = vor.u32 %v6416_v45, %v5423_v48  ;;  %v6413_v52 = vld [vmem:[#allocation9 + $0xc] sm:$0xf0] }
 0x306   :  { %v5392_v26 = vmul.f32 -1.442695, %v1722_v8  ;;  %v5393_v62 = vmul.f32 -1.442695, %v1723_v59  ;;  %v5398_v54 = vor.u32 %v6413_v52, %v5397_v43  ;;  %v6414_v8 = vld [vmem:[#allocation9 + $0x14] sm:$0xf0] }
 0x307   :  { %2032 = vmatpush.bf16.msrb.mxu3 %v5426_v29 }
 0x308   :  { %6677 = vpow2.f32 %v5392_v26  ;;  %v5406_v26 = vor.u32 %v6414_v8, %v5405_v58  ;;  %1994 = vmatpush.bf16.msrb.mxu0 %v5398_v54 }
 0x309   :  { %6679 = vpow2.f32 %v5393_v62 }
 0x30a   :  { %v1705_v16 = vpop.f32.mrf.mxu2  ;;  %v1718_v18 = vpop.f32.mrf.mxu3  ;;  %2020 = vmatpush.bf16.msrb.mxu2 %v5406_v26 }
 0x30b   :  { %v1725_v49 = vadd.f32 %v1718_v18, %v479_v57  ;;  %v1681_v23 = vpop.f32.mrf.mxu0  ;;  %v1694_v0 = vpop.f32.mrf.mxu1  ;;  %2033 = vmatpush.bf16.msrb.mxu3 %v5410_v15  ;;  %v1724_v13 = vadd.f32 %v1705_v16, %v450_v53 }
 0x30d   :  { %v5394_v59 = vmul.f32 -1.442695, %v1725_v49 }
 0x30e   :  { %v6678_v27 = vpop.eup %6677 }
 0x30f   :  { %v6680_v62 = vpop.eup %6679  ;;  %v1729_v63 = vadd.f32 1.0, %v6678_v27  ;;  %6681 = vpow2.f32 %v5394_v59 }
 0x310   :  { %v1748_v55 = vadd.f32 1.0, %v6680_v62 }
 0x311   :  { %6683 = vrcp.f32 %v1729_v63  ;;  %v1741_v3 = vand.u32 2147483648, %v1729_v63  ;;  %v1739_v41 = vand.u32 2147483647, %v1729_v63  ;;  %vm1735_vm6 = vweird.f32 %v1729_v63 }
 0x312   :  { %6685 = vrcp.f32 %v1748_v55  ;;  %v1707_v17 = vpop.f32.mrf.mxu2  ;;  %v1720_v19 = vpop.f32.mrf.mxu3  ;;  %v1760_v18 = vand.u32 2147483648, %v1748_v55  ;;  %v1758_v48 = vand.u32 2147483647, %v1748_v55  ;;  %vm1754_vm7 = vweird.f32 %v1748_v55 }
 0x313   :  { %v1742_v16 = vor.u32 1.1754944e-38, %v1741_v3  ;;  %vm1740_vm10 = vcmp.eq.f32.partialorder %v1739_v41, 8.507059e+37  ;;  %v6473_v19 = vld [vmem:[#allocation9 + $0xec] sm:$0xf0]  ;;  %v5624_v3 = vld [vmem:[#allocation9 + $0xc0] sm:$0xf] }
 0x314   :  { %v1761_v5 = vor.u32 1.1754944e-38, %v1760_v18  ;;  %vm1759_vm11 = vcmp.eq.f32.partialorder %v1758_v48, 8.507059e+37  ;;  %v6469_v18 = vld [vmem:[#allocation9 + $0xcc] sm:$0xf0]  ;;  %v5632_v48 = vld [vmem:[#allocation9 + $0xc8] sm:$0xf] }
 0x315   :  { %v6682_v7 = vpop.eup %6681  ;;  %v5625_v41 = vor.u32 %v6469_v18, %v5624_v3  ;;  %v6458_v3 = vld [vmem:[#allocation9 + $0x74] sm:$0xf0] }
 0x316   :  { %v1768_v42 = vadd.f32 1.0, %v6682_v7  ;;  %v6471_v7 = vld [vmem:[#allocation9 + $0xe4] sm:$0xf] }
 0x317   :  { %v6684_v10 = vpop.eup %6683 }
 0x318   :  { %v6686_v57 = vpop.eup %6685  ;;  %v1731_v34 = vmul.f32 %v6684_v10, %v1729_v63  ;;  %6687 = vrcp.f32 %v1768_v42  ;;  %vm1736_vm4 = vweird.f32 %v6684_v10  ;;  %v1780_v60 = vand.u32 2147483648, %v1768_v42 }
 0x319   :  { %v1750_v1 = vmul.f32 %v6686_v57, %v1748_v55  ;;  %6689 = vtanh.f32 %v1724_v13  ;;  %vm1755_vm5 = vweird.f32 %v6686_v57  ;;  %vm1737_vm8 = vmor %vm1735_vm6, %vm1736_vm4  ;;  %vm1774_vm13 = vweird.f32 %v1768_v42  ;;  %v5648_v13 = vld [vmem:[#allocation9 + $0xe8] sm:$0xf] }
 0x31a   :  { %v1732_v9 = vsub.f32 1.0, %v1731_v34  ;;  %vm1756_vm9 = vmor %vm1754_vm7, %vm1755_vm5  ;;  %v1778_v27 = vand.u32 2147483647, %v1768_v42  ;;  %v1781_v62 = vor.u32 1.1754944e-38, %v1780_v60  ;;  %v5618_v60 = vld [vmem:[#allocation9 + $0xb8] sm:$0xf0] }
 0x31b   :  { %v1751_v2 = vsub.f32 1.0, %v1750_v1  ;;  %v6472_v1 = vld [vmem:[#allocation9 + $0xec] sm:$0xf] }
 0x31c   :  { %v1733_v22 = vmul.f32 %v6684_v10, %v1732_v9  ;;  %vm1779_vm15 = vcmp.eq.f32.partialorder %v1778_v27, 8.507059e+37  ;;  %v5650_v9 = vld [vmem:[#allocation9 + $0xf8] sm:$0xf0] }
 0x31d   :  { %v1752_v45 = vmul.f32 %v6686_v57, %v1751_v2  ;;  %v5653_v2 = vor.u32 %v6472_v1, %v5650_v9  ;;  %v5578_v9 = vld [vmem:[#allocation9 + $0x70] sm:$0xf0] }
 0x31e   :  { %v6688_v49 = vpop.eup %6687  ;;  %v1734_v28 = vadd.f32 %v6684_v10, %v1733_v22  ;;  %v6467_v22 = vld [vmem:[#allocation9 + $0xc4] sm:$0xf] }
 0x31f   :  { %v1753_v23 = vadd.f32 %v6686_v57, %v1752_v45  ;;  %v1770_v0 = vmul.f32 %v6688_v49, %v1768_v42  ;;  %v6690_v43 = vpop.eup %6689  ;;  %vm1775_vm12 = vweird.f32 %v6688_v49  ;;  %v6474_v42 = vld [vmem:[#allocation9 + $0xf4] sm:$0xf0]  ;;  %2343 = vmatpush.bf16.msra.mxu3 %v5653_v2  ;;  %v5626_v45 = vld [vmem:[#allocation9 + $0xd0] sm:$0xf0]  ;;  %v5584_v2 = vld [vmem:[#allocation9 + $0x68] sm:$0xf] }
 0x320   :  { %v1738_v29 = vsel %vm1737_vm8, %v6684_v10, %v1734_v28  ;;  %vm1776_vm14 = vmor %vm1774_vm13, %vm1775_vm12  ;;  %v5642_v10 = vld [vmem:[#allocation9 + $0xf0] sm:$0xf0]  ;;  %v5649_v34 = vor.u32 %v6474_v42, %v5648_v13  ;;  %v5629_v28 = vor.u32 %v6467_v22, %v5626_v45  ;;  %v5576_v42 = vld [vmem:[#allocation9 + $0x60] sm:$0xf]  ;;  %v5585_v45 = vor.u32 %v6458_v3, %v5584_v2 }
 0x321   :  { %v1743_v52 = vsel %vm1740_vm10, %v1742_v16, %v1738_v29  ;;  %v1757_v51 = vsel %vm1756_vm9, %v6686_v57, %v1753_v23  ;;  %v1771_v54 = vsub.f32 1.0, %v1770_v0  ;;  %v5645_v57 = vor.u32 %v6471_v7, %v5642_v10  ;;  %v6468_v23 = vld [vmem:[#allocation9 + $0xcc] sm:$0xf]  ;;  %v5634_v0 = vld [vmem:[#allocation9 + $0xd8] sm:$0xf0] }
 0x322   :  { %v1762_v6 = vsel %vm1759_vm11, %v1761_v5, %v1757_v51  ;;  %v1785_v58 = vmul.f32 %v6690_v43, %v1743_v52  ;;  %2330 = vmatpush.bf16.msra.mxu2 %v5649_v34  ;;  %v5637_v5 = vor.u32 %v6468_v23, %v5634_v0  ;;  %v5608_v29 = vld [vmem:[#allocation9 + $0xa0] sm:$0xf]  ;;  %v6465_v43 = vld [vmem:[#allocation9 + $0xac] sm:$0xf0]  ;;  %v6463_v52 = vld [vmem:[#allocation9 + $0xa4] sm:$0xf] }
 0x323   :  { %v1784_v8 = vmul.f32 %v1762_v6, %v7299_v61  ;;  %v1772_v59 = vmul.f32 %v6688_v49, %v1771_v54  ;;  %v5640_v61 = vld [vmem:[#allocation9 + $0xe0] sm:$0xf]  ;;  %2317 = vmatpush.bf16.msra.mxu1 %v5645_v57  ;;  %v5609_v51 = vor.u32 %v6465_v43, %v5608_v29  ;;  %v5610_v54 = vld [vmem:[#allocation9 + $0xb0] sm:$0xf0]  ;;  %v5616_v6 = vld [vmem:[#allocation9 + $0xa8] sm:$0xf] }
 0x324   :  { %v5641_v53 = vor.u32 %v6473_v19, %v5640_v61  ;;  %2344 = vmatpush.bf16.msra.mxu3 %v5637_v5  ;;  %v6462_v61 = vld [vmem:[#allocation9 + $0x94] sm:$0xf0]  ;;  %v5602_v10 = vld [vmem:[#allocation9 + $0x98] sm:$0xf0]  ;;  %v6457_v57 = vld [vmem:[#allocation9 + $0x6c] sm:$0xf0] }
 0x325   :  { %v7311_v24 = vadd.f32 %v1785_v58, %v1784_v8  ;;  %v1773_v25 = vadd.f32 %v6688_v49, %v1772_v59  ;;  %v6466_v58 = vld [vmem:[#allocation9 + $0xb4] sm:$0xf0]  ;;  %v5613_v8 = vor.u32 %v6463_v52, %v5610_v54  ;;  %v6455_v34 = vld [vmem:[#allocation9 + $0x64] sm:$0xf]  ;;  %v5577_v1 = vor.u32 %v6457_v57, %v5576_v42  ;;  %v5560_v0 = vld [vmem:[#allocation9 + $0x40] sm:$0xf] }
 0x326   :  { %2304 = vmatpush.bf16.msra.mxu0 %v5641_v53  ;;  %v5617_v59 = vor.u32 %v6466_v58, %v5616_v6  ;;  %v6460_v53 = vld [vmem:[#allocation9 + $0x8c] sm:$0xf]  ;;  %v6453_v5 = vld [vmem:[#allocation9 + $0x4c] sm:$0xf0]  ;;  %v6451_v29 = vld [vmem:[#allocation9 + $0x44] sm:$0xf] }
 0x327   :  { %6691 = vtanh.f32 %v7311_v24  ;;  %v1777_v26 = vsel %vm1776_vm14, %v6688_v49, %v1773_v25  ;;  %v6470_v49 = vld [vmem:[#allocation9 + $0xd4] sm:$0xf0]  ;;  %2318 = vmatpush.bf16.msra.mxu1 %v5629_v28  ;;  %v6464_v25 = vld [vmem:[#allocation9 + $0xac] sm:$0xf]  ;;  %v5605_v13 = vor.u32 %v6460_v53, %v5602_v10  ;;  %v5562_v54 = vld [vmem:[#allocation9 + $0x50] sm:$0xf0] }
 0x328   :  { %v1782_v15 = vsel %vm1779_vm15, %v1781_v62, %v1777_v26  ;;  %v5633_v16 = vor.u32 %v6470_v49, %v5632_v48  ;;  %v5621_v27 = vor.u32 %v6464_v25, %v5618_v60  ;;  %v5592_v26 = vld [vmem:[#allocation9 + $0x80] sm:$0xf]  ;;  %v6461_v62 = vld [vmem:[#allocation9 + $0x8c] sm:$0xf0]  ;;  %v6456_v48 = vld [vmem:[#allocation9 + $0x6c] sm:$0xf]  ;;  %v5565_v6 = vor.u32 %v6451_v29, %v5562_v54 }
 0x329   :  { %v5586_v49 = vld [vmem:[#allocation9 + $0x78] sm:$0xf0]  ;;  %v5568_v58 = vld [vmem:[#allocation9 + $0x48] sm:$0xf]  ;;  %v5544_v25 = vld [vmem:[#allocation9 + $0x20] sm:$0xf] }
 0x32a   :  { %2305 = vmatpush.bf16.msra.mxu0 %v5625_v41  ;;  %2331 = vmatpush.bf16.msra.mxu2 %v5633_v16  ;;  %v5581_v41 = vor.u32 %v6455_v34, %v5578_v9  ;;  %v5589_v23 = vor.u32 %v6456_v48, %v5586_v49  ;;  %v6449_v60 = vld [vmem:[#allocation9 + $0x2c] sm:$0xf0]  ;;  %v5554_v53 = vld [vmem:[#allocation9 + $0x38] sm:$0xf0]  ;;  %v6443_v2 = vld [vmem:[#allocation9 + $0x4] sm:$0xf] }
 0x32b   :  { %2319 = vmatpush.bf16.msra.mxu1 %v5613_v8  ;;  %2345 = vmatpush.bf16.msra.mxu3 %v5621_v27  ;;  %v6454_v8 = vld [vmem:[#allocation9 + $0x54] sm:$0xf0]  ;;  %v6445_v9 = vld [vmem:[#allocation9 + $0xc] sm:$0xf0]  ;;  %v6444_v49 = vld [vmem:[#allocation9 + $0xc] sm:$0xf] }
 0x32d   :  { %v6692_v63 = vpop.eup %6691 }
 0x32e   :  { %v1788_v55 = vmul.f32 %v6692_v63, %v1782_v15  ;;  %2306 = vmatpush.bf16.msra.mxu0 %v5609_v51  ;;  %2332 = vmatpush.bf16.msra.mxu2 %v5617_v59  ;;  %v6459_v63 = vld [vmem:[#allocation9 + $0x84] sm:$0xf]  ;;  %v5593_v15 = vor.u32 %v6461_v62, %v5592_v26  ;;  %v5561_v51 = vor.u32 %v6453_v5, %v5560_v0  ;;  %v6452_v59 = vld [vmem:[#allocation9 + $0x4c] sm:$0xf] }
 0x32f   :  { %2346 = vmatpush.bf16.msra.mxu3 %v5605_v13  ;;  %v5545_v26 = vor.u32 %v6449_v60, %v5544_v25  ;;  %v6447_v62 = vld [vmem:[#allocation9 + $0x24] sm:$0xf] }
 0x330   :  { %v1789_v17 = vpack.c.bf16 %v1788_v55, %v1788_v55  ;;  %v5594_v55 = vld [vmem:[#allocation9 + $0x90] sm:$0xf0] }
 0x331   :  { %v5597_v19 = vor.u32 %v6459_v63, %v5594_v55  ;;  %v5546_v63 = vld [vmem:[#allocation9 + $0x30] sm:$0xf0] }
 0x332   :  { %1790 = vst [vmem:[#allocation2 + $0xc] sm:$0xf] %v1789_v17  ;;  %1995 = vmatmul.bf16.vlgmr.msrb.gmra.mxu0 %v1789_v17  ;;  %2008 = vmatmul.bf16.vlgmr.msrb.gmra.mxu1 %v1789_v17 }
 0x333   :  { %2021 = vmatmul.bf16.vlgmr.msrb.gmra.mxu2 %v1789_v17  ;;  %2034 = vmatmul.bf16.vlgmr.msrb.gmra.mxu3 %v1789_v17  ;;  %v5600_v17 = vld [vmem:[#allocation9 + $0x88] sm:$0xf] }
 0x334   :  { %v5601_v7 = vor.u32 %v6462_v61, %v5600_v17  ;;  %2307 = vmatpush.bf16.msra.mxu0 %v5593_v15  ;;  %2320 = vmatpush.bf16.msra.mxu1 %v5597_v19  ;;  %v5552_v15 = vld [vmem:[#allocation9 + $0x28] sm:$0xf]  ;;  %v5549_v61 = vor.u32 %v6447_v62, %v5546_v63  ;;  %v6450_v19 = vld [vmem:[#allocation9 + $0x34] sm:$0xf0] }
 0x335   :  { %2347 = vmatpush.bf16.msra.mxu3 %v5589_v23  ;;  %v5553_v57 = vor.u32 %v6450_v19, %v5552_v15 }
 0x336   :  { %2333 = vmatpush.bf16.msra.mxu2 %v5601_v7  ;;  %v6448_v7 = vld [vmem:[#allocation9 + $0x2c] sm:$0xf] }
 0x337   :  { %v5557_v34 = vor.u32 %v6448_v7, %v5554_v53 }
 0x338   :  { %2308 = vmatpush.bf16.msra.mxu0 %v5577_v1  ;;  %2321 = vmatpush.bf16.msra.mxu1 %v5581_v41  ;;  %v5528_v1 = vld [vmem:[#allocation9] sm:$0xf]  ;;  %v6446_v41 = vld [vmem:[#allocation9 + $0x14] sm:$0xf0] }
 0x339   :  { %v5529_v3 = vor.u32 %v6445_v9, %v5528_v1 }
 0x33a   :  { %2334 = vmatpush.bf16.msra.mxu2 %v5585_v45 }
 0x33c   :  { %2309 = vmatpush.bf16.msra.mxu0 %v5561_v51  ;;  %2322 = vmatpush.bf16.msra.mxu1 %v5565_v6 }
 0x340   :  { %2310 = vmatpush.bf16.msra.mxu0 %v5545_v26  ;;  %2323 = vmatpush.bf16.msra.mxu1 %v5549_v61 }
 0x344   :  { %2311 = vmatpush.bf16.msra.mxu0 %v5529_v3 }
 0x3af   :  { %v1996_v18 = vpop.f32.mrf.mxu0  ;;  %v2009_v22 = vpop.f32.mrf.mxu1 }
 0x3b0   :  { %v2039_v28 = vadd.f32 %v1996_v18, %v7232_v31  ;;  %v2040_v16 = vadd.f32 %v2009_v22, %v7235_v33  ;;  %v5569_v31 = vor.u32 %v6454_v8, %v5568_v58  ;;  %v5570_v33 = vld [vmem:[#allocation9 + $0x58] sm:$0xf0]  ;;  %v5530_v18 = vld [vmem:[#allocation9 + $0x10] sm:$0xf0]  ;;  %v5536_v22 = vld [vmem:[#allocation9 + $0x8] sm:$0xf] }
 0x3b1   :  { %v5573_v27 = vor.u32 %v6452_v59, %v5570_v33  ;;  %v5533_v48 = vor.u32 %v6443_v2, %v5530_v18 }
 0x3b2   :  { %v5523_v43 = vmul.f32 -1.442695, %v2039_v28  ;;  %v5524_v52 = vmul.f32 -1.442695, %v2040_v16  ;;  %2335 = vmatpush.bf16.msra.mxu2 %v5569_v31  ;;  %v5538_v28 = vld [vmem:[#allocation9 + $0x18] sm:$0xf0] }
 0x3b3   :  { %2348 = vmatpush.bf16.msra.mxu3 %v5573_v27  ;;  %v5541_v5 = vor.u32 %v6444_v49, %v5538_v28  ;;  %2324 = vmatpush.bf16.msra.mxu1 %v5533_v48 }
 0x3b4   :  { %6693 = vpow2.f32 %v5523_v43 }
 0x3b5   :  { %6695 = vpow2.f32 %v5524_v52 }
 0x3b6   :  { %v2022_v55 = vpop.f32.mrf.mxu2  ;;  %v2035_v17 = vpop.f32.mrf.mxu3  ;;  %2336 = vmatpush.bf16.msra.mxu2 %v5553_v57 }
 0x3b7   :  { %v2042_v10 = vadd.f32 %v2035_v17, %v7243_v38  ;;  %v1998_v13 = vpop.f32.mrf.mxu0  ;;  %v2011_v42 = vpop.f32.mrf.mxu1  ;;  %v5537_v38 = vor.u32 %v6446_v41, %v5536_v22  ;;  %2349 = vmatpush.bf16.msra.mxu3 %v5557_v34  ;;  %v2041_v58 = vadd.f32 %v2022_v55, %v7238_v35 }
 0x3b9   :  { %v5525_v45 = vmul.f32 -1.442695, %v2042_v10 }
 0x3ba   :  { %v6694_v16 = vpop.eup %6693  ;;  %2337 = vmatpush.bf16.msra.mxu2 %v5537_v38 }
 0x3bb   :  { %v6696_v23 = vpop.eup %6695  ;;  %v2046_v0 = vadd.f32 1.0, %v6694_v16  ;;  %6697 = vpow2.f32 %v5525_v45  ;;  %2350 = vmatpush.bf16.msra.mxu3 %v5541_v5 }
 0x3bc   :  { %v2065_v29 = vadd.f32 1.0, %v6696_v23  ;;  %v6505_v23 = vld [vmem:[#allocation9 + $0xec] sm:$0xf0] }
 0x3bd   :  { %6699 = vrcp.f32 %v2046_v0  ;;  %v2058_v60 = vand.u32 2147483648, %v2046_v0  ;;  %v2056_v62 = vand.u32 2147483647, %v2046_v0  ;;  %vm2052_vm2 = vweird.f32 %v2046_v0 }
 0x3be   :  { %6701 = vrcp.f32 %v2065_v29  ;;  %v2024_v43 = vpop.f32.mrf.mxu2  ;;  %v2037_v52 = vpop.f32.mrf.mxu3  ;;  %v2077_v27 = vand.u32 2147483648, %v2065_v29  ;;  %v2075_v15 = vand.u32 2147483647, %v2065_v29  ;;  %vm2071_vm3 = vweird.f32 %v2065_v29 }
 0x3bf   :  { %v2059_v35 = vor.u32 1.1754944e-38, %v2058_v60  ;;  %vm2057_vm6 = vcmp.eq.f32.partialorder %v2056_v62, 8.507059e+37  ;;  %v5779_v43 = vld [vmem:[#allocation9 + $0xe8] sm:$0xf]  ;;  %v6506_v52 = vld [vmem:[#allocation9 + $0xf4] sm:$0xf0] }
 0x3c0   :  { %v2078_v7 = vor.u32 1.1754944e-38, %v2077_v27  ;;  %vm2076_vm7 = vcmp.eq.f32.partialorder %v2075_v15, 8.507059e+37  ;;  %v5757_v60 = vld [vmem:[#allocation9 + $0xd0] sm:$0xf0]  ;;  %v5763_v27 = vld [vmem:[#allocation9 + $0xc8] sm:$0xf] }
 0x3c1   :  { %v6698_v51 = vpop.eup %6697  ;;  %v6500_v15 = vld [vmem:[#allocation9 + $0xcc] sm:$0xf] }
 0x3c2   :  { %v2085_v54 = vadd.f32 1.0, %v6698_v51 }
 0x3c3   :  { %v6700_v6 = vpop.eup %6699 }
 0x3c4   :  { %v6702_v8 = vpop.eup %6701  ;;  %v2048_v59 = vmul.f32 %v6700_v6, %v2046_v0  ;;  %6703 = vrcp.f32 %v2085_v54  ;;  %vm2053_vm0 = vweird.f32 %v6700_v6  ;;  %v2097_v22 = vand.u32 2147483648, %v2085_v54  ;;  %v6503_v0 = vld [vmem:[#allocation9 + $0xe4] sm:$0xf] }
 0x3c5   :  { %v2067_v31 = vmul.f32 %v6702_v8, %v2065_v29  ;;  %6705 = vtanh.f32 %v2041_v58  ;;  %vm2072_vm1 = vweird.f32 %v6702_v8  ;;  %vm2054_vm4 = vmor %vm2052_vm2, %vm2053_vm0  ;;  %vm2091_vm9 = vweird.f32 %v2085_v54  ;;  %v5773_v29 = vld [vmem:[#allocation9 + $0xf0] sm:$0xf0]  ;;  %v5781_v58 = vld [vmem:[#allocation9 + $0xf8] sm:$0xf0] }
 0x3c6   :  { %v2049_v33 = vsub.f32 1.0, %v2048_v59  ;;  %vm2073_vm5 = vmor %vm2071_vm3, %vm2072_vm1  ;;  %v2095_v41 = vand.u32 2147483647, %v2085_v54  ;;  %v2098_v48 = vor.u32 1.1754944e-38, %v2097_v22  ;;  %v5776_v51 = vor.u32 %v6503_v0, %v5773_v29  ;;  %v5755_v59 = vld [vmem:[#allocation9 + $0xc0] sm:$0xf] }
 0x3c7   :  { %v2068_v25 = vsub.f32 1.0, %v2067_v31  ;;  %v6501_v31 = vld [vmem:[#allocation9 + $0xcc] sm:$0xf0]  ;;  %v6491_v22 = vld [vmem:[#allocation9 + $0x84] sm:$0xf] }
 0x3c8   :  { %v2050_v26 = vmul.f32 %v6700_v6, %v2049_v33  ;;  %vm2096_vm11 = vcmp.eq.f32.partialorder %v2095_v41, 8.507059e+37  ;;  %2634 = vmatpush.bf16.msrb.mxu1 %v5776_v51  ;;  %v6499_v33 = vld [vmem:[#allocation9 + $0xc4] sm:$0xf]  ;;  %v5707_v0 = vld [vmem:[#allocation9 + $0x60] sm:$0xf] }
 0x3c9   :  { %v2069_v63 = vmul.f32 %v6702_v8, %v2068_v25  ;;  %v5756_v25 = vor.u32 %v6501_v31, %v5755_v59  ;;  %v5760_v62 = vor.u32 %v6499_v33, %v5757_v60  ;;  %v6487_v29 = vld [vmem:[#allocation9 + $0x64] sm:$0xf]  ;;  %v5717_v60 = vld [vmem:[#allocation9 + $0x78] sm:$0xf0] }
 0x3ca   :  { %v6704_v17 = vpop.eup %6703  ;;  %v2051_v61 = vadd.f32 %v6700_v6, %v2050_v26  ;;  %v6502_v26 = vld [vmem:[#allocation9 + $0xd4] sm:$0xf0] }
 0x3cb   :  { %v2070_v55 = vadd.f32 %v6702_v8, %v2069_v63  ;;  %v2087_v19 = vmul.f32 %v6704_v17, %v2085_v54  ;;  %v6706_v10 = vpop.eup %6705  ;;  %vm2092_vm8 = vweird.f32 %v6704_v17  ;;  %v5780_v54 = vor.u32 %v6506_v52, %v5779_v43 }
 0x3cc   :  { %v2055_v53 = vsel %vm2054_vm4, %v6700_v6, %v2051_v61  ;;  %vm2093_vm10 = vmor %vm2091_vm9, %vm2092_vm8  ;;  %v6504_v6 = vld [vmem:[#allocation9 + $0xec] sm:$0xf]  ;;  %v5764_v63 = vor.u32 %v6502_v26, %v5763_v27  ;;  %2635 = vmatpush.bf16.msrb.mxu1 %v5760_v62  ;;  %v397_v43 = vadd.f32 %v7240_v37, %v7199_v12  ;;  %v426_v52 = vadd.f32 %v7245_v39, %v7203_v14  ;;  %v5691_v37 = vld [vmem:[#allocation9 + $0x40] sm:$0xf] }
 0x3cd   :  { %v2060_v13 = vsel %vm2057_vm6, %v2059_v35, %v2055_v53  ;;  %v2074_v42 = vsel %vm2073_vm5, %v6702_v8, %v2070_v55  ;;  %v2088_v57 = vsub.f32 1.0, %v2087_v19  ;;  %v5784_v8 = vor.u32 %v6504_v6, %v5781_v58  ;;  %2647 = vmatpush.bf16.msrb.mxu2 %v5780_v54  ;;  %v5739_v35 = vld [vmem:[#allocation9 + $0xa0] sm:$0xf]  ;;  %v6497_v55 = vld [vmem:[#allocation9 + $0xac] sm:$0xf0] }
 0x3ce   :  { %v2079_v34 = vsel %vm2076_vm7, %v2078_v7, %v2074_v42  ;;  %v2102_v1 = vmul.f32 %v6706_v10, %v2060_v13  ;;  %v6495_v19 = vld [vmem:[#allocation9 + $0xa4] sm:$0xf]  ;;  %v5740_v7 = vor.u32 %v6497_v55, %v5739_v35  ;;  %v5741_v53 = vld [vmem:[#allocation9 + $0xb0] sm:$0xf0]  ;;  %v5747_v10 = vld [vmem:[#allocation9 + $0xa8] sm:$0xf] }
 0x3cf   :  { %v2101_v9 = vmul.f32 %v2079_v34, %v7311_v24  ;;  %v2089_v2 = vmul.f32 %v6704_v17, %v2088_v57  ;;  %v5771_v24 = vld [vmem:[#allocation9 + $0xe0] sm:$0xf]  ;;  %2660 = vmatpush.bf16.msrb.mxu3 %v5784_v8  ;;  %v6498_v13 = vld [vmem:[#allocation9 + $0xb4] sm:$0xf0]  ;;  %v5744_v42 = vor.u32 %v6495_v19, %v5741_v53  ;;  %v6496_v34 = vld [vmem:[#allocation9 + $0xac] sm:$0xf] }
 0x3d0   :  { %v5772_v5 = vor.u32 %v6505_v23, %v5771_v24  ;;  %v5748_v57 = vor.u32 %v6498_v13, %v5747_v10  ;;  %v5733_v24 = vld [vmem:[#allocation9 + $0x98] sm:$0xf0]  ;;  %v5709_v54 = vld [vmem:[#allocation9 + $0x70] sm:$0xf0]  ;;  %v5715_v6 = vld [vmem:[#allocation9 + $0x68] sm:$0xf] }
 0x3d1   :  { %v7319_v3 = vadd.f32 %v2102_v1, %v2101_v9  ;;  %v2090_v18 = vadd.f32 %v6704_v17, %v2089_v2  ;;  %2648 = vmatpush.bf16.msrb.mxu2 %v5764_v63  ;;  %v5749_v1 = vld [vmem:[#allocation9 + $0xb8] sm:$0xf0]  ;;  %2636 = vmatpush.bf16.msrb.mxu1 %v5744_v42  ;;  %v5723_v2 = vld [vmem:[#allocation9 + $0x80] sm:$0xf]  ;;  %v6490_v58 = vld [vmem:[#allocation9 + $0x74] sm:$0xf0]  ;;  %v5712_v31 = vor.u32 %v6487_v29, %v5709_v54 }
 0x3d2   :  { %2621 = vmatpush.bf16.msrb.mxu0 %v5772_v5  ;;  %v5752_v9 = vor.u32 %v6496_v34, %v5749_v1  ;;  %v6489_v5 = vld [vmem:[#allocation9 + $0x6c] sm:$0xf0]  ;;  %v5716_v33 = vor.u32 %v6490_v58, %v5715_v6  ;;  %v6483_v39 = vld [vmem:[#allocation9 + $0x44] sm:$0xf]  ;;  %v5693_v35 = vld [vmem:[#allocation9 + $0x50] sm:$0xf0]  ;;  %v484_v34 = vadd.f32 %v7249_v44, %v7215_v21 }
 0x3d3   :  { %6707 = vtanh.f32 %v7319_v3  ;;  %v2094_v45 = vsel %vm2093_vm10, %v6704_v17, %v2090_v18  ;;  %v5765_v17 = vld [vmem:[#allocation9 + $0xd8] sm:$0xf0]  ;;  %v6493_v18 = vld [vmem:[#allocation9 + $0x8c] sm:$0xf0]  ;;  %v5708_v51 = vor.u32 %v6489_v5, %v5707_v0  ;;  %v5696_v55 = vor.u32 %v6483_v39, %v5693_v35  ;;  %v5699_v19 = vld [vmem:[#allocation9 + $0x48] sm:$0xf] }
 0x3d4   :  { %v2099_v28 = vsel %vm2096_vm11, %v2098_v48, %v2094_v45  ;;  %v5768_v61 = vor.u32 %v6500_v15, %v5765_v17  ;;  %v5724_v41 = vor.u32 %v6493_v18, %v5723_v2  ;;  %v5725_v45 = vld [vmem:[#allocation9 + $0x90] sm:$0xf0]  ;;  %v5731_v48 = vld [vmem:[#allocation9 + $0x88] sm:$0xf]  ;;  %v6485_v63 = vld [vmem:[#allocation9 + $0x4c] sm:$0xf0] }
 0x3d5   :  { %2649 = vmatpush.bf16.msrb.mxu2 %v5748_v57  ;;  %v6484_v53 = vld [vmem:[#allocation9 + $0x4c] sm:$0xf]  ;;  %v5701_v13 = vld [vmem:[#allocation9 + $0x58] sm:$0xf0]  ;;  %v5675_v42 = vld [vmem:[#allocation9 + $0x20] sm:$0xf] }
 0x3d6   :  { %2622 = vmatpush.bf16.msrb.mxu0 %v5756_v25  ;;  %2661 = vmatpush.bf16.msrb.mxu3 %v5768_v61  ;;  %v6488_v25 = vld [vmem:[#allocation9 + $0x6c] sm:$0xf]  ;;  %v5692_v61 = vor.u32 %v6485_v63, %v5691_v37  ;;  %v6481_v57 = vld [vmem:[#allocation9 + $0x2c] sm:$0xf0]  ;;  %v5704_v1 = vor.u32 %v6484_v53, %v5701_v13  ;;  %v6479_v2 = vld [vmem:[#allocation9 + $0x24] sm:$0xf] }
 0x3d7   :  { %v5720_v62 = vor.u32 %v6488_v25, %v5717_v60  ;;  %v5677_v18 = vld [vmem:[#allocation9 + $0x30] sm:$0xf0]  ;;  %v5659_v5 = vld [vmem:[#allocation9] sm:$0xf]  ;;  %v6477_v29 = vld [vmem:[#allocation9 + $0xc] sm:$0xf0] }
 0x3d8   :  { %v5667_v54 = vld [vmem:[#allocation9 + $0x8] sm:$0xf]  ;;  %v6478_v6 = vld [vmem:[#allocation9 + $0x14] sm:$0xf0] }
 0x3d9   :  { %v6708_v49 = vpop.eup %6707  ;;  %v5668_v25 = vor.u32 %v6478_v6, %v5667_v54 }
 0x3da   :  { %v2105_v16 = vmul.f32 %v6708_v49, %v2099_v28  ;;  %2623 = vmatpush.bf16.msrb.mxu0 %v5740_v7  ;;  %2662 = vmatpush.bf16.msrb.mxu3 %v5752_v9  ;;  %v6494_v49 = vld [vmem:[#allocation9 + $0x94] sm:$0xf0]  ;;  %v5728_v28 = vor.u32 %v6491_v22, %v5725_v45  ;;  %v5676_v9 = vor.u32 %v6481_v57, %v5675_v42  ;;  %v5683_v22 = vld [vmem:[#allocation9 + $0x28] sm:$0xf] }
 0x3db   :  { %v6486_v7 = vld [vmem:[#allocation9 + $0x54] sm:$0xf0] }
 0x3dc   :  { %v2106_v38 = vpack.c.bf16 %v2105_v16, %v2105_v16  ;;  %v5732_v16 = vor.u32 %v6494_v49, %v5731_v48  ;;  %2637 = vmatpush.bf16.msrb.mxu1 %v5728_v28  ;;  %v5700_v10 = vor.u32 %v6486_v7, %v5699_v19  ;;  %v5680_v48 = vor.u32 %v6479_v2, %v5677_v18  ;;  %v6482_v49 = vld [vmem:[#allocation9 + $0x34] sm:$0xf0]  ;;  %v6480_v28 = vld [vmem:[#allocation9 + $0x2c] sm:$0xf] }
 0x3dd   :  { %v5684_v0 = vor.u32 %v6482_v49, %v5683_v22 }
 0x3de   :  { %2107 = vst [vmem:[#allocation2 + $0x10] sm:$0xf] %v2106_v38  ;;  %2312 = vmatmul.bf16.vlgmr.msra.gmra.mxu0 %v2106_v38  ;;  %2325 = vmatmul.bf16.vlgmr.msra.gmra.mxu1 %v2106_v38 }
 0x3df   :  { %2338 = vmatmul.bf16.vlgmr.msra.gmra.mxu2 %v2106_v38  ;;  %2351 = vmatmul.bf16.vlgmr.msra.gmra.mxu3 %v2106_v38  ;;  %v6492_v38 = vld [vmem:[#allocation9 + $0x8c] sm:$0xf] }
 0x3e0   :  { %2624 = vmatpush.bf16.msrb.mxu0 %v5724_v41  ;;  %v5736_v23 = vor.u32 %v6492_v38, %v5733_v24  ;;  %2650 = vmatpush.bf16.msrb.mxu2 %v5732_v16  ;;  %v5685_v16 = vld [vmem:[#allocation9 + $0x38] sm:$0xf0] }
 0x3e1   :  { %2638 = vmatpush.bf16.msrb.mxu1 %v5712_v31  ;;  %v5688_v44 = vor.u32 %v6480_v28, %v5685_v16  ;;  %v5669_v31 = vld [vmem:[#allocation9 + $0x18] sm:$0xf0] }
 0x3e2   :  { %2663 = vmatpush.bf16.msrb.mxu3 %v5736_v23 }
 0x3e4   :  { %2625 = vmatpush.bf16.msrb.mxu0 %v5708_v51  ;;  %2651 = vmatpush.bf16.msrb.mxu2 %v5716_v33  ;;  %v5661_v51 = vld [vmem:[#allocation9 + $0x10] sm:$0xf0] }
 0x3e5   :  { %2639 = vmatpush.bf16.msrb.mxu1 %v5696_v55 }
 0x3e6   :  { %2664 = vmatpush.bf16.msrb.mxu3 %v5720_v62 }
 0x3e8   :  { %2626 = vmatpush.bf16.msrb.mxu0 %v5692_v61  ;;  %2652 = vmatpush.bf16.msrb.mxu2 %v5700_v10 }
 0x3e9   :  { %2640 = vmatpush.bf16.msrb.mxu1 %v5680_v48 }
 0x3ea   :  { %2665 = vmatpush.bf16.msrb.mxu3 %v5704_v1 }
 0x3ec   :  { %2627 = vmatpush.bf16.msrb.mxu0 %v5676_v9  ;;  %2653 = vmatpush.bf16.msrb.mxu2 %v5684_v0 }
 0x3ee   :  { %2666 = vmatpush.bf16.msrb.mxu3 %v5688_v44 }
 0x3f0   :  { %2654 = vmatpush.bf16.msrb.mxu2 %v5668_v25 }
 0x45b   :  { %v2313_v8 = vpop.f32.mrf.mxu0  ;;  %v2326_v59 = vpop.f32.mrf.mxu1 }
 0x45c   :  { %v2356_v27 = vadd.f32 %v2313_v8, %v397_v43  ;;  %v2357_v26 = vadd.f32 %v2326_v59, %v426_v52  ;;  %v6475_v43 = vld [vmem:[#allocation9 + $0x4] sm:$0xf]  ;;  %v5660_v52 = vor.u32 %v6477_v29, %v5659_v5  ;;  %v6476_v59 = vld [vmem:[#allocation9 + $0xc] sm:$0xf] }
 0x45d   :  { %v5664_v8 = vor.u32 %v6475_v43, %v5661_v51 }
 0x45e   :  { %v5654_v15 = vmul.f32 -1.442695, %v2356_v27  ;;  %v5655_v17 = vmul.f32 -1.442695, %v2357_v26  ;;  %v5672_v26 = vor.u32 %v6476_v59, %v5669_v31  ;;  %2628 = vmatpush.bf16.msrb.mxu0 %v5660_v52  ;;  %v6537_v31 = vld [vmem:[#allocation9 + $0xec] sm:$0xf0] }
 0x45f   :  { %2641 = vmatpush.bf16.msrb.mxu1 %v5664_v8 }
 0x460   :  { %6709 = vpow2.f32 %v5654_v15  ;;  %2667 = vmatpush.bf16.msrb.mxu3 %v5672_v26  ;;  %v455_v15 = vadd.f32 %v7247_v40, %v7213_v20  ;;  %v6538_v26 = vld [vmem:[#allocation9 + $0xf4] sm:$0xf0] }
 0x461   :  { %6711 = vpow2.f32 %v5655_v17 }
 0x462   :  { %v2339_v41 = vpop.f32.mrf.mxu2  ;;  %v2352_v45 = vpop.f32.mrf.mxu3 }
 0x463   :  { %v2359_v38 = vadd.f32 %v2352_v45, %v484_v34  ;;  %v2315_v24 = vpop.f32.mrf.mxu0  ;;  %v2328_v23 = vpop.f32.mrf.mxu1  ;;  %v2358_v35 = vadd.f32 %v2339_v41, %v455_v15 }
 0x465   :  { %v5656_v58 = vmul.f32 -1.442695, %v2359_v38 }
 0x466   :  { %v6710_v33 = vpop.eup %6709 }
 0x467   :  { %v6712_v60 = vpop.eup %6711  ;;  %v2363_v27 = vadd.f32 1.0, %v6710_v33  ;;  %6713 = vpow2.f32 %v5656_v58  ;;  %v6535_v33 = vld [vmem:[#allocation9 + $0xe4] sm:$0xf] }
 0x468   :  { %v2382_v62 = vadd.f32 1.0, %v6712_v60  ;;  %v5904_v60 = vld [vmem:[#allocation9 + $0xf0] sm:$0xf0] }
 0x469   :  { %6715 = vrcp.f32 %v2363_v27  ;;  %v2375_v13 = vand.u32 2147483648, %v2363_v27  ;;  %v2373_v34 = vand.u32 2147483647, %v2363_v27  ;;  %vm2369_vm14 = vweird.f32 %v2363_v27 }
 0x46a   :  { %6717 = vrcp.f32 %v2382_v62  ;;  %v2341_v37 = vpop.f32.mrf.mxu2  ;;  %v2354_v63 = vpop.f32.mrf.mxu3  ;;  %v2394_v42 = vand.u32 2147483648, %v2382_v62  ;;  %v2392_v9 = vand.u32 2147483647, %v2382_v62  ;;  %vm2388_vm15 = vweird.f32 %v2382_v62 }
 0x46b   :  { %v2376_v18 = vor.u32 1.1754944e-38, %v2375_v13  ;;  %vm2374_vm2 = vcmp.eq.f32.partialorder %v2373_v34, 8.507059e+37  ;;  %v6536_v63 = vld [vmem:[#allocation9 + $0xec] sm:$0xf] }
 0x46c   :  { %v2395_v45 = vor.u32 1.1754944e-38, %v2394_v42  ;;  %vm2393_vm3 = vcmp.eq.f32.partialorder %v2392_v9, 8.507059e+37  ;;  %v6532_v42 = vld [vmem:[#allocation9 + $0xcc] sm:$0xf]  ;;  %v6529_v9 = vld [vmem:[#allocation9 + $0xac] sm:$0xf0] }
 0x46d   :  { %v6714_v39 = vpop.eup %6713 }
 0x46e   :  { %v2402_v17 = vadd.f32 1.0, %v6714_v39  ;;  %v5912_v39 = vld [vmem:[#allocation9 + $0xf8] sm:$0xf0] }
 0x46f   :  { %v6716_v61 = vpop.eup %6715  ;;  %v5915_v15 = vor.u32 %v6536_v63, %v5912_v39  ;;  %v5822_v39 = vld [vmem:[#allocation9 + $0x40] sm:$0xf] }
 0x470   :  { %v6718_v55 = vpop.eup %6717  ;;  %v2365_v19 = vmul.f32 %v6716_v61, %v2363_v27  ;;  %6719 = vrcp.f32 %v2402_v17  ;;  %vm2370_vm12 = vweird.f32 %v6716_v61  ;;  %v2414_v43 = vand.u32 2147483648, %v2402_v17  ;;  %v5910_v27 = vld [vmem:[#allocation9 + $0xe8] sm:$0xf] }
 0x471   :  { %v2384_v7 = vmul.f32 %v6718_v55, %v2382_v62  ;;  %6721 = vtanh.f32 %v2358_v35  ;;  %vm2389_vm13 = vweird.f32 %v6718_v55  ;;  %vm2371_vm0 = vmor %vm2369_vm14, %vm2370_vm12  ;;  %vm2408_vm5 = vweird.f32 %v2402_v17  ;;  %2977 = vmatpush.bf16.msra.mxu3 %v5915_v15  ;;  %v6531_v35 = vld [vmem:[#allocation9 + $0xc4] sm:$0xf]  ;;  %v6517_v15 = vld [vmem:[#allocation9 + $0x4c] sm:$0xf0] }
 0x472   :  { %v2366_v53 = vsub.f32 1.0, %v2365_v19  ;;  %vm2390_vm1 = vmor %vm2388_vm15, %vm2389_vm13  ;;  %v2412_v52 = vand.u32 2147483647, %v2402_v17  ;;  %v2415_v54 = vor.u32 1.1754944e-38, %v2414_v43  ;;  %v5907_v62 = vor.u32 %v6535_v33, %v5904_v60  ;;  %v5888_v19 = vld [vmem:[#allocation9 + $0xd0] sm:$0xf0] }
 0x473   :  { %v2385_v10 = vsub.f32 1.0, %v2384_v7  ;;  %v5911_v37 = vor.u32 %v6538_v26, %v5910_v27  ;;  %v5894_v7 = vld [vmem:[#allocation9 + $0xc8] sm:$0xf]  ;;  %v6526_v43 = vld [vmem:[#allocation9 + $0x94] sm:$0xf0] }
 0x474   :  { %v2367_v57 = vmul.f32 %v6716_v61, %v2366_v53  ;;  %vm2413_vm7 = vcmp.eq.f32.partialorder %v2412_v52, 8.507059e+37  ;;  %2951 = vmatpush.bf16.msra.mxu1 %v5907_v62  ;;  %v6534_v53 = vld [vmem:[#allocation9 + $0xd4] sm:$0xf0]  ;;  %v5840_v33 = vld [vmem:[#allocation9 + $0x70] sm:$0xf0] }
 0x475   :  { %v2386_v1 = vmul.f32 %v6718_v55, %v2385_v10  ;;  %2964 = vmatpush.bf16.msra.mxu2 %v5911_v37  ;;  %v5891_v10 = vor.u32 %v6531_v35, %v5888_v19  ;;  %v5895_v13 = vor.u32 %v6534_v53, %v5894_v7  ;;  %v6522_v60 = vld [vmem:[#allocation9 + $0x74] sm:$0xf0]  ;;  %v6520_v62 = vld [vmem:[#allocation9 + $0x6c] sm:$0xf]  ;;  %v5848_v37 = vld [vmem:[#allocation9 + $0x78] sm:$0xf0] }
 0x476   :  { %v6720_v2 = vpop.eup %6719  ;;  %v2368_v40 = vadd.f32 %v6716_v61, %v2367_v57  ;;  %v5896_v57 = vld [vmem:[#allocation9 + $0xd8] sm:$0xf0]  ;;  %v5851_v63 = vor.u32 %v6520_v62, %v5848_v37  ;;  %v5824_v35 = vld [vmem:[#allocation9 + $0x50] sm:$0xf0]  ;;  %v6518_v19 = vld [vmem:[#allocation9 + $0x54] sm:$0xf0] }
 0x477   :  { %v2387_v22 = vadd.f32 %v6718_v55, %v2386_v1  ;;  %v2404_v41 = vmul.f32 %v6720_v2, %v2402_v17  ;;  %v6722_v49 = vpop.eup %6721  ;;  %vm2409_vm4 = vweird.f32 %v6720_v2  ;;  %v5886_v17 = vld [vmem:[#allocation9 + $0xc0] sm:$0xf]  ;;  %v5899_v34 = vor.u32 %v6532_v42, %v5896_v57  ;;  %v6572_v62 = vld [vmem:[#allocation12 + $0xec] sm:$0xf] }
 0x478   :  { %v2372_v48 = vsel %vm2371_vm0, %v6716_v61, %v2368_v40  ;;  %vm2410_vm6 = vmor %vm2408_vm5, %vm2409_vm4  ;;  %v6533_v61 = vld [vmem:[#allocation9 + $0xcc] sm:$0xf0]  ;;  %2952 = vmatpush.bf16.msra.mxu1 %v5891_v10  ;;  %v5870_v1 = vld [vmem:[#allocation9 + $0xa0] sm:$0xf] }
 0x479   :  { %v2377_v28 = vsel %vm2374_vm2, %v2376_v18, %v2372_v48  ;;  %v2391_v16 = vsel %vm2390_vm1, %v6718_v55, %v2387_v22  ;;  %v2405_v38 = vsub.f32 1.0, %v2404_v41  ;;  %v5887_v55 = vor.u32 %v6533_v61, %v5886_v17  ;;  %2965 = vmatpush.bf16.msra.mxu2 %v5895_v13  ;;  %2978 = vmatpush.bf16.msra.mxu3 %v5899_v34  ;;  %v5872_v18 = vld [vmem:[#allocation9 + $0xb0] sm:$0xf0]  ;;  %v5878_v22 = vld [vmem:[#allocation9 + $0xa8] sm:$0xf] }
 0x47a   :  { %v2396_v24 = vsel %vm2393_vm3, %v2395_v45, %v2391_v16  ;;  %v2419_v23 = vmul.f32 %v6722_v49, %v2377_v28  ;;  %v5871_v40 = vor.u32 %v6529_v9, %v5870_v1  ;;  %v6530_v41 = vld [vmem:[#allocation9 + $0xb4] sm:$0xf0]  ;;  %v6528_v49 = vld [vmem:[#allocation9 + $0xac] sm:$0xf]  ;;  %v5880_v28 = vld [vmem:[#allocation9 + $0xb8] sm:$0xf0]  ;;  %v5823_v61 = vor.u32 %v6517_v15, %v5822_v39 }
 0x47b   :  { %v2418_v0 = vmul.f32 %v2396_v24, %v7319_v3  ;;  %v2406_v44 = vmul.f32 %v6720_v2, %v2405_v38  ;;  %v5902_v3 = vld [vmem:[#allocation9 + $0xe0] sm:$0xf]  ;;  %v5879_v48 = vor.u32 %v6530_v41, %v5878_v22  ;;  %v5883_v16 = vor.u32 %v6528_v49, %v5880_v28  ;;  %v6525_v24 = vld [vmem:[#allocation9 + $0x8c] sm:$0xf0]  ;;  %v6515_v17 = vld [vmem:[#allocation9 + $0x44] sm:$0xf] }
 0x47c   :  { %v5903_v25 = vor.u32 %v6537_v31, %v5902_v3  ;;  %v5854_v38 = vld [vmem:[#allocation9 + $0x80] sm:$0xf]  ;;  %v6519_v3 = vld [vmem:[#allocation9 + $0x64] sm:$0xf]  ;;  %v5827_v7 = vor.u32 %v6515_v17, %v5824_v35  ;;  %v6516_v10 = vld [vmem:[#allocation9 + $0x4c] sm:$0xf] }
 0x47d   :  { %v7331_v5 = vadd.f32 %v2419_v23, %v2418_v0  ;;  %v2407_v29 = vadd.f32 %v6720_v2, %v2406_v44  ;;  %2966 = vmatpush.bf16.msra.mxu2 %v5879_v48  ;;  %v6523_v23 = vld [vmem:[#allocation9 + $0x84] sm:$0xf]  ;;  %2979 = vmatpush.bf16.msra.mxu3 %v5883_v16  ;;  %v5855_v0 = vor.u32 %v6525_v24, %v5854_v38  ;;  %v5856_v44 = vld [vmem:[#allocation9 + $0x90] sm:$0xf0]  ;;  %v5832_v13 = vld [vmem:[#allocation9 + $0x58] sm:$0xf0] }
 0x47e   :  { %2938 = vmatpush.bf16.msra.mxu0 %v5903_v25  ;;  %v5859_v52 = vor.u32 %v6523_v23, %v5856_v44  ;;  %v5846_v25 = vld [vmem:[#allocation9 + $0x68] sm:$0xf]  ;;  %v5843_v27 = vor.u32 %v6519_v3, %v5840_v33  ;;  %v5835_v42 = vor.u32 %v6516_v10, %v5832_v13  ;;  %v5806_v57 = vld [vmem:[#allocation9 + $0x20] sm:$0xf]  ;;  %v6513_v34 = vld [vmem:[#allocation9 + $0x2c] sm:$0xf0] }
 0x47f   :  { %6723 = vtanh.f32 %v7331_v5  ;;  %v2411_v51 = vsel %vm2410_vm6, %v6720_v2, %v2407_v29  ;;  %v6527_v2 = vld [vmem:[#allocation9 + $0xa4] sm:$0xf]  ;;  %v5862_v29 = vld [vmem:[#allocation9 + $0x88] sm:$0xf]  ;;  %v5847_v26 = vor.u32 %v6522_v60, %v5846_v25  ;;  %v5807_v9 = vor.u32 %v6513_v34, %v5806_v57  ;;  %v5816_v48 = vld [vmem:[#allocation9 + $0x38] sm:$0xf0] }
 0x480   :  { %v2416_v58 = vsel %vm2413_vm7, %v2415_v54, %v2411_v51  ;;  %v5875_v45 = vor.u32 %v6527_v2, %v5872_v18  ;;  %v5863_v51 = vor.u32 %v6526_v43, %v5862_v29  ;;  %v6524_v54 = vld [vmem:[#allocation9 + $0x8c] sm:$0xf]  ;;  %v6511_v1 = vld [vmem:[#allocation9 + $0x24] sm:$0xf]  ;;  %v5808_v2 = vld [vmem:[#allocation9 + $0x30] sm:$0xf0] }
 0x481   :  { %v6514_v18 = vld [vmem:[#allocation9 + $0x34] sm:$0xf0]  ;;  %v5811_v22 = vor.u32 %v6511_v1, %v5808_v2  ;;  %v5790_v28 = vld [vmem:[#allocation9] sm:$0xf]  ;;  %v6509_v16 = vld [vmem:[#allocation9 + $0xc] sm:$0xf0] }
 0x482   :  { %2939 = vmatpush.bf16.msra.mxu0 %v5887_v55  ;;  %2953 = vmatpush.bf16.msra.mxu1 %v5875_v45  ;;  %v5830_v55 = vld [vmem:[#allocation9 + $0x48] sm:$0xf]  ;;  %v6512_v45 = vld [vmem:[#allocation9 + $0x2c] sm:$0xf]  ;;  %v6507_v38 = vld [vmem:[#allocation9 + $0x4] sm:$0xf]  ;;  %v5791_v24 = vor.u32 %v6509_v16, %v5790_v28 }
 0x483   :  { %2967 = vmatpush.bf16.msra.mxu2 %v5863_v51  ;;  %v5831_v53 = vor.u32 %v6518_v19, %v5830_v55  ;;  %v5819_v49 = vor.u32 %v6512_v45, %v5816_v48  ;;  %v5792_v23 = vld [vmem:[#allocation9 + $0x10] sm:$0xf0]  ;;  %v6510_v44 = vld [vmem:[#allocation9 + $0x14] sm:$0xf0]  ;;  %v5800_v51 = vld [vmem:[#allocation9 + $0x18] sm:$0xf0] }
 0x484   :  { %v5795_v29 = vor.u32 %v6507_v38, %v5792_v23  ;;  %v6571_v3 = vld [vmem:[#allocation12 + $0xe4] sm:$0xf]  ;;  %v6059_v39 = vld [vmem:[#allocation12 + $0xf8] sm:$0xf0]  ;;  %v6033_v15 = vld [vmem:[#allocation12 + $0xc0] sm:$0xf] }
 0x485   :  { %v6724_v6 = vpop.eup %6723  ;;  %v6569_v17 = vld [vmem:[#allocation12 + $0xcc] sm:$0xf0]  ;;  %v6062_v55 = vor.u32 %v6572_v62, %v6059_v39  ;;  %v6043_v57 = vld [vmem:[#allocation12 + $0xd8] sm:$0xf0]  ;;  %v6017_v34 = vld [vmem:[#allocation12 + $0xa0] sm:$0xf] }
 0x486   :  { %v2422_v8 = vmul.f32 %v6724_v6, %v2416_v58  ;;  %2940 = vmatpush.bf16.msra.mxu0 %v5871_v40  ;;  %v5864_v6 = vld [vmem:[#allocation9 + $0x98] sm:$0xf0]  ;;  %2954 = vmatpush.bf16.msra.mxu1 %v5859_v52  ;;  %v5814_v40 = vld [vmem:[#allocation9 + $0x28] sm:$0xf]  ;;  %v6508_v52 = vld [vmem:[#allocation9 + $0xc] sm:$0xf]  ;;  %v6034_v19 = vor.u32 %v6569_v17, %v6033_v15 }
 0x487   :  { %v5867_v58 = vor.u32 %v6524_v54, %v5864_v6  ;;  %2968 = vmatpush.bf16.msra.mxu2 %v5847_v26  ;;  %v5815_v41 = vor.u32 %v6514_v18, %v5814_v40  ;;  %v6049_v54 = vld [vmem:[#allocation12 + $0xe0] sm:$0xf]  ;;  %v6574_v26 = vld [vmem:[#allocation12 + $0xf4] sm:$0xf0]  ;;  %v6563_v2 = vld [vmem:[#allocation12 + $0xa4] sm:$0xf] }
 0x488   :  { %v2423_v59 = vpack.c.bf16 %v2422_v8, %v2422_v8  ;;  %v5838_v8 = vld [vmem:[#allocation9 + $0x60] sm:$0xf]  ;;  %v6019_v40 = vld [vmem:[#allocation12 + $0xb0] sm:$0xf0]  ;;  %v6025_v45 = vld [vmem:[#allocation12 + $0xa8] sm:$0xf] }
 0x489   :  { %2980 = vmatpush.bf16.msra.mxu3 %v5867_v58  ;;  %v6566_v48 = vld [vmem:[#allocation12 + $0xb4] sm:$0xf0]  ;;  %v5985_v62 = vld [vmem:[#allocation12 + $0x60] sm:$0xf]  ;;  %v6557_v39 = vld [vmem:[#allocation12 + $0x6c] sm:$0xf0] }
 0x48a   :  { %2424 = vst [vmem:[#allocation2 + $0x14] sm:$0xf] %v2423_v59  ;;  %2629 = vmatmul.bf16.vlgmr.msrb.gmra.mxu0 %v2423_v59  ;;  %2642 = vmatmul.bf16.vlgmr.msrb.gmra.mxu1 %v2423_v59  ;;  %v6026_v23 = vor.u32 %v6566_v48, %v6025_v45  ;;  %v5986_v15 = vor.u32 %v6557_v39, %v5985_v62  ;;  %v6555_v17 = vld [vmem:[#allocation12 + $0x64] sm:$0xf]  ;;  %v6554_v45 = vld [vmem:[#allocation12 + $0x54] sm:$0xf0] }
 0x48b   :  { %2655 = vmatmul.bf16.vlgmr.msrb.gmra.mxu2 %v2423_v59  ;;  %2668 = vmatmul.bf16.vlgmr.msrb.gmra.mxu3 %v2423_v59  ;;  %v6521_v59 = vld [vmem:[#allocation9 + $0x6c] sm:$0xf0]  ;;  %v6545_v39 = vld [vmem:[#allocation12 + $0xc] sm:$0xf0] }
 0x48c   :  { %2941 = vmatpush.bf16.msra.mxu0 %v5855_v0  ;;  %v5839_v31 = vor.u32 %v6521_v59, %v5838_v8  ;;  %2955 = vmatpush.bf16.msra.mxu1 %v5843_v27  ;;  %v5798_v0 = vld [vmem:[#allocation9 + $0x8] sm:$0xf]  ;;  %v5803_v8 = vor.u32 %v6508_v52, %v5800_v51  ;;  %v6573_v59 = vld [vmem:[#allocation12 + $0xec] sm:$0xf0]  ;;  %v6057_v27 = vld [vmem:[#allocation12 + $0xe8] sm:$0xf] }
 0x48d   :  { %2981 = vmatpush.bf16.msra.mxu3 %v5851_v63  ;;  %2969 = vmatpush.bf16.msra.mxu2 %v5831_v53  ;;  %v5799_v43 = vor.u32 %v6510_v44, %v5798_v0  ;;  %v6050_v60 = vor.u32 %v6573_v59, %v6049_v54  ;;  %v6058_v63 = vor.u32 %v6574_v26, %v6057_v27  ;;  %v6570_v53 = vld [vmem:[#allocation12 + $0xd4] sm:$0xf0]  ;;  %v6027_v0 = vld [vmem:[#allocation12 + $0xb8] sm:$0xf0]  ;;  %v6001_v44 = vld [vmem:[#allocation12 + $0x80] sm:$0xf] }
 0x48e   :  { %v6559_v52 = vld [vmem:[#allocation12 + $0x84] sm:$0xf]  ;;  %v6003_v51 = vld [vmem:[#allocation12 + $0x90] sm:$0xf0]  ;;  %v6009_v54 = vld [vmem:[#allocation12 + $0x88] sm:$0xf] }
 0x490   :  { %2942 = vmatpush.bf16.msra.mxu0 %v5839_v31  ;;  %2956 = vmatpush.bf16.msra.mxu1 %v5827_v7  ;;  %v6051_v31 = vld [vmem:[#allocation12 + $0xf0] sm:$0xf0]  ;;  %v6041_v7 = vld [vmem:[#allocation12 + $0xc8] sm:$0xf] }
 0x491   :  { %2982 = vmatpush.bf16.msra.mxu3 %v5835_v42  ;;  %2970 = vmatpush.bf16.msra.mxu2 %v5815_v41  ;;  %v6054_v37 = vor.u32 %v6571_v3, %v6051_v31  ;;  %v6042_v13 = vor.u32 %v6570_v53, %v6041_v7  ;;  %v6568_v42 = vld [vmem:[#allocation12 + $0xcc] sm:$0xf]  ;;  %v6011_v3 = vld [vmem:[#allocation12 + $0x98] sm:$0xf0] }
 0x492   :  { %v6046_v1 = vor.u32 %v6568_v42, %v6043_v57  ;;  %v5969_v42 = vld [vmem:[#allocation12 + $0x40] sm:$0xf] }
 0x494   :  { %2943 = vmatpush.bf16.msra.mxu0 %v5823_v61  ;;  %2957 = vmatpush.bf16.msra.mxu1 %v5811_v22 }
 0x495   :  { %2983 = vmatpush.bf16.msra.mxu3 %v5819_v49  ;;  %2971 = vmatpush.bf16.msra.mxu2 %v5799_v43  ;;  %v6564_v49 = vld [vmem:[#allocation12 + $0xac] sm:$0xf] }
 0x496   :  { %v6030_v43 = vor.u32 %v6564_v49, %v6027_v0  ;;  %v5979_v49 = vld [vmem:[#allocation12 + $0x58] sm:$0xf0] }
 0x498   :  { %2944 = vmatpush.bf16.msra.mxu0 %v5807_v9  ;;  %2958 = vmatpush.bf16.msra.mxu1 %v5795_v29  ;;  %v6565_v9 = vld [vmem:[#allocation12 + $0xac] sm:$0xf0] }
 0x499   :  { %2984 = vmatpush.bf16.msra.mxu3 %v5803_v8  ;;  %3351 = vmatpush.bf16.msrb.mxu2 %v6058_v63  ;;  %v6018_v41 = vor.u32 %v6565_v9, %v6017_v34  ;;  %v6561_v29 = vld [vmem:[#allocation12 + $0x8c] sm:$0xf0]  ;;  %v6560_v8 = vld [vmem:[#allocation12 + $0x8c] sm:$0xf]  ;;  %v6551_v9 = vld [vmem:[#allocation12 + $0x44] sm:$0xf] }
 0x49a   :  { %v6014_v26 = vor.u32 %v6560_v8, %v6011_v3 }
 0x49c   :  { %2945 = vmatpush.bf16.msra.mxu0 %v5791_v24  ;;  %3322 = vmatpush.bf16.msrb.mxu1 %v6054_v37  ;;  %v6022_v24 = vor.u32 %v6563_v2, %v6019_v40 }
 0x49d   :  { %3380 = vmatpush.bf16.msrb.mxu3 %v6062_v55  ;;  %3352 = vmatpush.bf16.msrb.mxu2 %v6042_v13  ;;  %v5995_v13 = vld [vmem:[#allocation12 + $0x78] sm:$0xf0] }
 0x4a0   :  { %3293 = vmatpush.bf16.msrb.mxu0 %v6050_v60 }
 0x4a1   :  { %3381 = vmatpush.bf16.msrb.mxu3 %v6046_v1  ;;  %3353 = vmatpush.bf16.msrb.mxu2 %v6026_v23  ;;  %v6553_v1 = vld [vmem:[#allocation12 + $0x4c] sm:$0xf0] }
 0x4a2   :  { %v5970_v40 = vor.u32 %v6553_v1, %v5969_v42  ;;  %v6549_v23 = vld [vmem:[#allocation12 + $0x2c] sm:$0xf0]  ;;  %v6544_v42 = vld [vmem:[#allocation12 + $0xc] sm:$0xf] }
 0x4a4   :  { %3294 = vmatpush.bf16.msrb.mxu0 %v6034_v19  ;;  %v5993_v19 = vld [vmem:[#allocation12 + $0x68] sm:$0xf] }
 0x4a5   :  { %3382 = vmatpush.bf16.msrb.mxu3 %v6030_v43 }
 0x4a8   :  { %3295 = vmatpush.bf16.msrb.mxu0 %v6018_v41  ;;  %v5977_v41 = vld [vmem:[#allocation12 + $0x48] sm:$0xf] }
 0x4a9   :  { %3383 = vmatpush.bf16.msrb.mxu3 %v6014_v26 }
 0x507   :  { %v2630_v6 = vpop.f32.mrf.mxu0  ;;  %v2643_v58 = vpop.f32.mrf.mxu1 }
 0x508   :  { %v2673_v33 = vadd.f32 %v2630_v6, %v7252_v50  ;;  %v2674_v25 = vadd.f32 %v2643_v58, %v7255_v56  ;;  %v6567_v50 = vld [vmem:[#allocation12 + $0xc4] sm:$0xf]  ;;  %v6035_v56 = vld [vmem:[#allocation12 + $0xd0] sm:$0xf0]  ;;  %v6562_v58 = vld [vmem:[#allocation12 + $0x94] sm:$0xf0] }
 0x509   :  { %v6038_v10 = vor.u32 %v6567_v50, %v6035_v56  ;;  %v6010_v60 = vor.u32 %v6562_v58, %v6009_v54  ;;  %v6558_v50 = vld [vmem:[#allocation12 + $0x74] sm:$0xf0] }
 0x50a   :  { %v5785_v61 = vmul.f32 -1.442695, %v2673_v33  ;;  %v5786_v35 = vmul.f32 -1.442695, %v2674_v25  ;;  %v6006_v25 = vor.u32 %v6559_v52, %v6003_v51  ;;  %v5994_v53 = vor.u32 %v6558_v50, %v5993_v19  ;;  %v6547_v52 = vld [vmem:[#allocation12 + $0x24] sm:$0xf] }
 0x50b   :  { %3323 = vmatpush.bf16.msrb.mxu1 %v6038_v10  ;;  %3354 = vmatpush.bf16.msrb.mxu2 %v6010_v60  ;;  %v6556_v10 = vld [vmem:[#allocation12 + $0x6c] sm:$0xf]  ;;  %v5955_v51 = vld [vmem:[#allocation12 + $0x30] sm:$0xf0]  ;;  %v5963_v60 = vld [vmem:[#allocation12 + $0x38] sm:$0xf0] }
 0x50c   :  { %6725 = vpow2.f32 %v5785_v61  ;;  %v5987_v61 = vld [vmem:[#allocation12 + $0x70] sm:$0xf0]  ;;  %v5998_v34 = vor.u32 %v6556_v10, %v5995_v13  ;;  %v5958_v3 = vor.u32 %v6547_v52, %v5955_v51  ;;  %v5945_v19 = vld [vmem:[#allocation12 + $0x8] sm:$0xf]  ;;  %v6546_v50 = vld [vmem:[#allocation12 + $0x14] sm:$0xf0]  ;;  %v402_v52 = vadd.f32 %v7260_v36, %v7199_v12 }
 0x50d   :  { %6727 = vpow2.f32 %v5786_v35  ;;  %v5990_v55 = vor.u32 %v6555_v17, %v5987_v61  ;;  %v431_v51 = vadd.f32 %v7265_v47, %v7203_v14  ;;  %v6179_v47 = vld [vmem:[#allocation13 + $0xf0] sm:$0xf0] }
 0x50e   :  { %v2656_v18 = vpop.f32.mrf.mxu2  ;;  %v2669_v22 = vpop.f32.mrf.mxu3  ;;  %3384 = vmatpush.bf16.msrb.mxu3 %v5998_v34  ;;  %v5947_v34 = vld [vmem:[#allocation12 + $0x18] sm:$0xf0] }
 0x50f   :  { %v2676_v28 = vadd.f32 %v2669_v22, %v7263_v46  ;;  %v2632_v16 = vpop.f32.mrf.mxu0  ;;  %v2645_v38 = vpop.f32.mrf.mxu1  ;;  %v6002_v46 = vor.u32 %v6561_v29, %v6001_v44  ;;  %3324 = vmatpush.bf16.msrb.mxu1 %v6022_v24  ;;  %v2675_v7 = vadd.f32 %v2656_v18, %v7258_v32  ;;  %3355 = vmatpush.bf16.msrb.mxu2 %v5994_v53  ;;  %v5971_v22 = vld [vmem:[#allocation12 + $0x50] sm:$0xf0]  ;;  %v6552_v18 = vld [vmem:[#allocation12 + $0x4c] sm:$0xf] }
 0x510   :  { %v5974_v44 = vor.u32 %v6551_v9, %v5971_v22  ;;  %v5978_v29 = vor.u32 %v6554_v45, %v5977_v41  ;;  %v5982_v43 = vor.u32 %v6552_v18, %v5979_v49  ;;  %v5946_v9 = vor.u32 %v6546_v50, %v5945_v19  ;;  %v6161_v19 = vld [vmem:[#allocation13 + $0xc0] sm:$0xf]  ;;  %v6601_v50 = vld [vmem:[#allocation13 + $0xcc] sm:$0xf0] }
 0x511   :  { %v5787_v6 = vmul.f32 -1.442695, %v2676_v28  ;;  %3296 = vmatpush.bf16.msrb.mxu0 %v6002_v46  ;;  %v5953_v28 = vld [vmem:[#allocation12 + $0x20] sm:$0xf]  ;;  %v5950_v45 = vor.u32 %v6544_v42, %v5947_v34  ;;  %v6600_v42 = vld [vmem:[#allocation13 + $0xcc] sm:$0xf] }
 0x512   :  { %v6726_v59 = vpop.eup %6725  ;;  %v5954_v8 = vor.u32 %v6549_v23, %v5953_v28  ;;  %3385 = vmatpush.bf16.msrb.mxu3 %v5982_v43  ;;  %v6540_v43 = vld [vmem:[#allocation2 + $0x8] sm:$0xff] }
 0x513   :  { %v6728_v31 = vpop.eup %6727  ;;  %v7337_v33 = vadd.f32 1.0, %v6726_v59  ;;  %6729 = vpow2.f32 %v5787_v6  ;;  %3325 = vmatpush.bf16.msrb.mxu1 %v6006_v25  ;;  %v5961_v59 = vld [vmem:[#allocation12 + $0x28] sm:$0xf]  ;;  %3356 = vmatpush.bf16.msrb.mxu2 %v5978_v29  ;;  %v6548_v25 = vld [vmem:[#allocation12 + $0x2c] sm:$0xf]  ;;  %v6539_v29 = vld [vmem:[#allocation2] sm:$0xff] }
 0x514   :  { %v7339_v27 = vadd.f32 1.0, %v6728_v31  ;;  %v6550_v31 = vld [vmem:[#allocation12 + $0x34] sm:$0xf0] }
 0x515   :  { %6731 = vrcp.f32 %v7337_v33  ;;  %v2690_v35 = vand.u32 2147483647, %v7337_v33  ;;  %3297 = vmatpush.bf16.msrb.mxu0 %v5986_v15  ;;  %v2692_v24 = vand.u32 2147483648, %v7337_v33  ;;  %v5962_v62 = vor.u32 %v6550_v31, %v5961_v59  ;;  %v6543_v15 = vld [vmem:[#allocation12 + $0x4] sm:$0xf] }
 0x516   :  { %6733 = vrcp.f32 %v7339_v27  ;;  %v2658_v37 = vpop.f32.mrf.mxu2  ;;  %v2671_v63 = vpop.f32.mrf.mxu3  ;;  %v2711_v38 = vand.u32 2147483648, %v7339_v27  ;;  %v2709_v58 = vand.u32 2147483647, %v7339_v27  ;;  %vm2705_vm11 = vweird.f32 %v7339_v27 }
 0x517   :  { %3326 = vmatpush.bf16.msrb.mxu1 %v5990_v55  ;;  %vm7358_vm8 = vcmp.eq.f32.partialorder %v2690_v35, 8.507059e+37  ;;  %v5966_v37 = vor.u32 %v6548_v25, %v5963_v60  ;;  %v5937_v63 = vld [vmem:[#allocation12] sm:$0xf]  ;;  %vm2686_vm12 = vweird.f32 %v7337_v33  ;;  %v5939_v55 = vld [vmem:[#allocation12 + $0x10] sm:$0xf0]  ;;  %v2693_v53 = vor.u32 1.1754944e-38, %v2692_v24  ;;  %3357 = vmatpush.bf16.msrb.mxu2 %v5962_v62 }
 0x518   :  { %v5938_v35 = vor.u32 %v6545_v39, %v5937_v63  ;;  %vm2710_vm15 = vcmp.eq.f32.partialorder %v2709_v58, 8.507059e+37  ;;  %v5942_v1 = vor.u32 %v6543_v15, %v5939_v55  ;;  %v6177_v60 = vld [vmem:[#allocation13 + $0xe0] sm:$0xf]  ;;  %v6603_v62 = vld [vmem:[#allocation13 + $0xe4] sm:$0xf] }
 0x519   :  { %v6730_v56 = vpop.eup %6729  ;;  %3298 = vmatpush.bf16.msrb.mxu0 %v5970_v40  ;;  %3386 = vmatpush.bf16.msrb.mxu3 %v5966_v37  ;;  %v6604_v63 = vld [vmem:[#allocation13 + $0xec] sm:$0xf]  ;;  %v6187_v39 = vld [vmem:[#allocation13 + $0xf8] sm:$0xf0]  ;;  %v7397_v15 = vor.u32 %v6603_v62, %v6179_v47  ;;  %v6589_v62 = vld [vmem:[#allocation13 + $0x6c] sm:$0xf0] }
 0x51a   :  { %v7345_v57 = vadd.f32 1.0, %v6730_v56 }
 0x51b   :  { %v7347_v2 = vpop.eup %6731  ;;  %3327 = vmatpush.bf16.msrb.mxu1 %v5974_v44  ;;  %3358 = vmatpush.bf16.msrb.mxu2 %v5946_v9  ;;  %v6169_v9 = vld [vmem:[#allocation13 + $0xc8] sm:$0xf] }
 0x51c   :  { %v7349_v48 = vpop.eup %6733  ;;  %v2682_v32 = vmul.f32 %v7347_v2, %v7337_v33  ;;  %6735 = vrcp.f32 %v7345_v57  ;;  %vm2687_vm9 = vweird.f32 %v7347_v2  ;;  %vm2725_vm1 = vweird.f32 %v7345_v57 }
 0x51d   :  { %v2701_v16 = vmul.f32 %v7349_v48, %v7339_v27  ;;  %6737 = vtanh.f32 %v2675_v7  ;;  %vm2706_vm10 = vweird.f32 %v7349_v48  ;;  %3299 = vmatpush.bf16.msrb.mxu0 %v5954_v8  ;;  %v2712_v7 = vor.u32 1.1754944e-38, %v2711_v38  ;;  %vm2688_vm13 = vmor %vm2686_vm12, %vm2687_vm9  ;;  %3387 = vmatpush.bf16.msrb.mxu3 %v5950_v45  ;;  %v6145_v45 = vld [vmem:[#allocation13 + $0xa0] sm:$0xf] }
 0x51e   :  { %v2683_v0 = vsub.f32 1.0, %v2682_v32  ;;  %vm2707_vm14 = vmor %vm2705_vm11, %vm2706_vm10 }
 0x51f   :  { %v2702_v54 = vsub.f32 1.0, %v2701_v16  ;;  %3328 = vmatpush.bf16.msrb.mxu1 %v5958_v3  ;;  %v2729_v16 = vand.u32 2147483647, %v7345_v57  ;;  %v489_v3 = vadd.f32 %v7273_v30, %v7215_v21  ;;  %v6606_v21 = vld [vmem:[#allocation13 + $0xf4] sm:$0xf0] }
 0x520   :  { %v2684_v46 = vmul.f32 %v7347_v2, %v2683_v0 }
 0x521   :  { %v2703_v26 = vmul.f32 %v7349_v48, %v2702_v54  ;;  %3300 = vmatpush.bf16.msrb.mxu0 %v5938_v35  ;;  %vm2730_vm3 = vcmp.eq.f32.partialorder %v2729_v16, 8.507059e+37 }
 0x522   :  { %v6736_v17 = vpop.eup %6735  ;;  %v2685_v61 = vadd.f32 %v7347_v2, %v2684_v46 }
 0x523   :  { %v6738_v56 = vpop.eup %6737  ;;  %v2704_v10 = vadd.f32 %v7349_v48, %v2703_v26  ;;  %v2721_v13 = vmul.f32 %v6736_v17, %v7345_v57  ;;  %3329 = vmatpush.bf16.msrb.mxu1 %v5942_v1  ;;  %vm2726_vm0 = vweird.f32 %v6736_v17  ;;  %v6605_v26 = vld [vmem:[#allocation13 + $0xec] sm:$0xf0]  ;;  %v6171_v1 = vld [vmem:[#allocation13 + $0xd8] sm:$0xf0] }
 0x524   :  { %v2689_v33 = vsel %vm2688_vm13, %v7347_v2, %v2685_v61  ;;  %vm2727_vm2 = vmor %vm2725_vm1, %vm2726_vm0  ;;  %v7395_v14 = vor.u32 %v6605_v26, %v6177_v60  ;;  %v6185_v61 = vld [vmem:[#allocation13 + $0xe8] sm:$0xf]  ;;  %v6598_v60 = vld [vmem:[#allocation13 + $0xb4] sm:$0xf0] }
 0x525   :  { %v2694_v40 = vsel %vm7358_vm8, %v2693_v53, %v2689_v33  ;;  %v2708_v22 = vsel %vm2707_vm14, %v7349_v48, %v2704_v10  ;;  %v2722_v41 = vsub.f32 1.0, %v2721_v13  ;;  %v2731_v48 = vand.u32 2147483648, %v7345_v57  ;;  %v6541_v57 = vld [vmem:[#allocation2 + $0x10] sm:$0xff]  ;;  %v6163_v13 = vld [vmem:[#allocation13 + $0xd0] sm:$0xf0] }
 0x526   :  { %v2713_v32 = vsel %vm2710_vm15, %v2712_v7, %v2708_v22  ;;  %v2736_v18 = vmul.f32 %v6738_v56, %v2694_v40  ;;  %v7402_v35 = vor.u32 %v6606_v21, %v6185_v61  ;;  %v6599_v56 = vld [vmem:[#allocation13 + $0xc4] sm:$0xf]  ;;  %v7408_v10 = vor.u32 %v6601_v50, %v6161_v19  ;;  %v6602_v40 = vld [vmem:[#allocation13 + $0xd4] sm:$0xf0]  ;;  %v6113_v26 = vld [vmem:[#allocation13 + $0x60] sm:$0xf] }
 0x527   :  { %v2735_v27 = vmul.f32 %v2713_v32, %v7331_v5  ;;  %v2723_v49 = vmul.f32 %v6736_v17, %v2722_v41  ;;  %v2732_v24 = vor.u32 1.1754944e-38, %v2731_v48  ;;  %v7413_v33 = vor.u32 %v6599_v56, %v6163_v13  ;;  %v6115_v21 = vld [vmem:[#allocation13 + $0x70] sm:$0xf0]  ;;  %v6091_v50 = vld [vmem:[#allocation13 + $0x38] sm:$0xf0] }
 0x528   :  { %v460_v32 = vadd.f32 %v7269_v11, %v7213_v20  ;;  %v7424_v48 = vor.u32 %v6602_v40, %v6169_v9  ;;  %v6155_v20 = vld [vmem:[#allocation13 + $0xb8] sm:$0xf0]  ;;  %v6129_v11 = vld [vmem:[#allocation13 + $0x80] sm:$0xf] }
 0x529   :  { %v7383_v2 = vadd.f32 %v2736_v18, %v2735_v27  ;;  %v2724_v28 = vadd.f32 %v6736_v17, %v2723_v49  ;;  %v7422_v27 = vor.u32 %v6600_v42, %v6171_v1  ;;  %v6597_v49 = vld [vmem:[#allocation13 + $0xac] sm:$0xf0]  ;;  %v6137_v42 = vld [vmem:[#allocation13 + $0x88] sm:$0xf]  ;;  %v6594_v1 = vld [vmem:[#allocation13 + $0x94] sm:$0xf0] }
 0x52a   :  { %v6097_v9 = vld [vmem:[#allocation13 + $0x40] sm:$0xf] }
 0x52b   :  { %6739 = vtanh.f32 %v7383_v2  ;;  %v2728_v38 = vsel %vm2727_vm2, %v6736_v17, %v2724_v28  ;;  %v7399_v17 = vor.u32 %v6604_v63, %v6187_v39  ;;  %v6595_v28 = vld [vmem:[#allocation13 + $0xa4] sm:$0xf] }
 0x52c   :  { %v2733_v23 = vsel %vm2730_vm3, %v2732_v24, %v2728_v38  ;;  %v6147_v38 = vld [vmem:[#allocation13 + $0xb0] sm:$0xf0]  ;;  %v6596_v24 = vld [vmem:[#allocation13 + $0xac] sm:$0xf] }
 0x531   :  { %v6740_v5 = vpop.eup %6739 }
 0x532   :  { %v2739_v0 = vmul.f32 %v6740_v5, %v2733_v23 }
 0x534   :  { %v2740_v44 = vpack.c.bf16 %v2739_v0, %v2739_v0  ;;  %v7428_v0 = vor.u32 %v6597_v49, %v6145_v45  ;;  %v7484_v45 = vor.u32 %v6594_v1, %v6137_v42  ;;  %v6099_v49 = vld [vmem:[#allocation13 + $0x50] sm:$0xf0]  ;;  %v6577_v42 = vld [vmem:[#allocation13 + $0xc] sm:$0xf0]  ;;  %v6089_v1 = vld [vmem:[#allocation13 + $0x28] sm:$0xf] }
 0x536   :  { %2741 = vst [vmem:[#allocation2 + $0x18] sm:$0xf] %v2740_v44  ;;  %2946 = vmatmul.bf16.vlgmr.msra.gmra.mxu0 %v2740_v44  ;;  %2959 = vmatmul.bf16.vlgmr.msra.gmra.mxu1 %v2740_v44 }
 0x537   :  { %2972 = vmatmul.bf16.vlgmr.msra.gmra.mxu2 %v2740_v44  ;;  %2985 = vmatmul.bf16.vlgmr.msra.gmra.mxu3 %v2740_v44  ;;  %v7430_v44 = vor.u32 %v6595_v28, %v6147_v38  ;;  %v6584_v38 = vld [vmem:[#allocation13 + $0x4c] sm:$0xf] }
 0x538   :  { %3637 = vmatpush.bf16.msra.mxu0 %v7395_v14  ;;  %3650 = vmatpush.bf16.msra.mxu1 %v7397_v15 }
 0x539   :  { %3676 = vmatpush.bf16.msra.mxu3 %v7399_v17  ;;  %3663 = vmatpush.bf16.msra.mxu2 %v7402_v35 }
 0x53c   :  { %3638 = vmatpush.bf16.msra.mxu0 %v7408_v10  ;;  %3651 = vmatpush.bf16.msra.mxu1 %v7413_v33 }
 0x53d   :  { %3677 = vmatpush.bf16.msra.mxu3 %v7422_v27  ;;  %3664 = vmatpush.bf16.msra.mxu2 %v7424_v48 }
 0x540   :  { %3639 = vmatpush.bf16.msra.mxu0 %v7428_v0  ;;  %3652 = vmatpush.bf16.msra.mxu1 %v7430_v44 }
 0x546   :  { %3301 = vmatmul.bf16.vlgmr.msrb.gmra.mxu0 %v6539_v29  ;;  %3330 = vmatmul.bf16.vlgmr.msrb.gmra.mxu1 %v6539_v29 }
 0x547   :  { %3359 = vmatmul.bf16.vlgmr.msrb.gmra.mxu2 %v6539_v29  ;;  %3388 = vmatmul.bf16.vlgmr.msrb.gmra.mxu3 %v6539_v29  ;;  %v6593_v29 = vld [vmem:[#allocation13 + $0x8c] sm:$0xf0] }
 0x556   :  { %3306 = vmatmul.bf16.gmra.mxu0 %v6540_v43  ;;  %3335 = vmatmul.bf16.gmra.mxu1 %v6540_v43 }
 0x557   :  { %3364 = vmatmul.bf16.gmra.mxu2 %v6540_v43  ;;  %3393 = vmatmul.bf16.gmra.mxu3 %v6540_v43 }
 0x566   :  { %3311 = vmatmul.bf16.gmra.mxu0 %v6541_v57  ;;  %3340 = vmatmul.bf16.gmra.mxu1 %v6541_v57 }
 0x567   :  { %3369 = vmatmul.bf16.gmra.mxu2 %v6541_v57  ;;  %3398 = vmatmul.bf16.gmra.mxu3 %v6541_v57 }
 0x5b3   :  { %v2947_v54 = vpop.f32.mrf.mxu0  ;;  %v2960_v6 = vpop.f32.mrf.mxu1 }
 0x5b4   :  { %v2990_v58 = vadd.f32 %v2947_v54, %v402_v52  ;;  %v2991_v8 = vadd.f32 %v2960_v6, %v431_v51  ;;  %v7436_v52 = vor.u32 %v6596_v24, %v6155_v20  ;;  %v6591_v51 = vld [vmem:[#allocation13 + $0x84] sm:$0xf]  ;;  %v6131_v54 = vld [vmem:[#allocation13 + $0x90] sm:$0xf0]  ;;  %v6107_v24 = vld [vmem:[#allocation13 + $0x58] sm:$0xf0] }
 0x5b6   :  { %v5916_v59 = vmul.f32 -1.442695, %v2990_v58  ;;  %v5917_v46 = vmul.f32 -1.442695, %v2991_v8  ;;  %v7442_v58 = vor.u32 %v6593_v29, %v6129_v11  ;;  %v7444_v8 = vor.u32 %v6591_v51, %v6131_v54  ;;  %3678 = vmatpush.bf16.msra.mxu3 %v7436_v52  ;;  %v6590_v51 = vld [vmem:[#allocation13 + $0x74] sm:$0xf0] }
 0x5b7   :  { %v6081_v54 = vld [vmem:[#allocation13 + $0x20] sm:$0xf]  ;;  %v6073_v29 = vld [vmem:[#allocation13 + $0x8] sm:$0xf] }
 0x5b8   :  { %6741 = vpow2.f32 %v5916_v59  ;;  %v6592_v59 = vld [vmem:[#allocation13 + $0x8c] sm:$0xf]  ;;  %3640 = vmatpush.bf16.msra.mxu0 %v7442_v58  ;;  %3653 = vmatpush.bf16.msra.mxu1 %v7444_v8 }
 0x5b9   :  { %6743 = vpow2.f32 %v5917_v46  ;;  %v6139_v46 = vld [vmem:[#allocation13 + $0x98] sm:$0xf0] }
 0x5ba   :  { %v2973_v31 = vpop.f32.mrf.mxu2  ;;  %v2986_v25 = vpop.f32.mrf.mxu3  ;;  %v7461_v39 = vor.u32 %v6592_v59, %v6139_v46 }
 0x5bb   :  { %v2993_v12 = vadd.f32 %v2986_v25, %v489_v3  ;;  %v2949_v36 = vpop.f32.mrf.mxu0  ;;  %v2962_v37 = vpop.f32.mrf.mxu1  ;;  %v2992_v23 = vadd.f32 %v2973_v31, %v460_v32  ;;  %v6153_v3 = vld [vmem:[#allocation13 + $0xa8] sm:$0xf]  ;;  %v6585_v32 = vld [vmem:[#allocation13 + $0x4c] sm:$0xf0] }
 0x5bc   :  { %v6587_v37 = vld [vmem:[#allocation13 + $0x64] sm:$0xf]  ;;  %v7463_v61 = vor.u32 %v6598_v60, %v6153_v3  ;;  %3679 = vmatpush.bf16.msra.mxu3 %v7461_v39 }
 0x5bd   :  { %v5918_v30 = vmul.f32 -1.442695, %v2993_v12  ;;  %v6579_v60 = vld [vmem:[#allocation13 + $0x24] sm:$0xf] }
 0x5be   :  { %v6742_v55 = vpop.eup %6741  ;;  %3665 = vmatpush.bf16.msra.mxu2 %v7463_v61 }
 0x5bf   :  { %v6744_v7 = vpop.eup %6743  ;;  %v7406_v53 = vadd.f32 1.0, %v6742_v55  ;;  %6745 = vpow2.f32 %v5918_v30  ;;  %v6588_v30 = vld [vmem:[#allocation13 + $0x6c] sm:$0xf] }
 0x5c0   :  { %v7411_v34 = vadd.f32 1.0, %v6744_v7  ;;  %v7473_v7 = vor.u32 %v6589_v62, %v6113_v26  ;;  %v6083_v26 = vld [vmem:[#allocation13 + $0x30] sm:$0xf0] }
 0x5c1   :  { %6747 = vrcp.f32 %v7406_v53  ;;  %v3007_v18 = vand.u32 2147483647, %v7406_v53  ;;  %v3009_v16 = vand.u32 2147483648, %v7406_v53  ;;  %vm3003_vm5 = vweird.f32 %v7406_v53 }
 0x5c2   :  { %6749 = vrcp.f32 %v7411_v34  ;;  %v2975_v22 = vpop.f32.mrf.mxu2  ;;  %v2988_v41 = vpop.f32.mrf.mxu3  ;;  %v3028_v43 = vand.u32 2147483648, %v7411_v34  ;;  %v3026_v36 = vand.u32 2147483647, %v7411_v34  ;;  %vm3022_vm9 = vweird.f32 %v7411_v34  ;;  %3641 = vmatpush.bf16.msra.mxu0 %v7473_v7  ;;  %3666 = vmatpush.bf16.msra.mxu2 %v7484_v45 }
 0x5c3   :  { %vm7457_vm6 = vcmp.eq.f32.partialorder %v3007_v18, 8.507059e+37  ;;  %v3010_v56 = vor.u32 1.1754944e-38, %v3009_v16  ;;  %v7480_v22 = vor.u32 %v6587_v37, %v6115_v21  ;;  %v6583_v18 = vld [vmem:[#allocation13 + $0x44] sm:$0xf]  ;;  %v6105_v37 = vld [vmem:[#allocation13 + $0x48] sm:$0xf] }
 0x5c4   :  { %v3029_v19 = vor.u32 1.1754944e-38, %v3028_v43  ;;  %vm7497_vm11 = vcmp.eq.f32.partialorder %v3026_v36, 8.507059e+37  ;;  %v7505_v43 = vor.u32 %v6585_v32, %v6097_v9  ;;  %v7511_v46 = vor.u32 %v6583_v18, %v6099_v49  ;;  %v6067_v32 = vld [vmem:[#allocation13 + $0x10] sm:$0xf0]  ;;  %v6582_v18 = vld [vmem:[#allocation13 + $0x34] sm:$0xf0] }
 0x5c5   :  { %v6746_v5 = vpop.eup %6745  ;;  %3654 = vmatpush.bf16.msra.mxu1 %v7480_v22 }
 0x5c6   :  { %v7434_v57 = vadd.f32 1.0, %v6746_v5  ;;  %v6121_v5 = vld [vmem:[#allocation13 + $0x68] sm:$0xf]  ;;  %3642 = vmatpush.bf16.msra.mxu0 %v7505_v43 }
 0x5c7   :  { %v7438_v6 = vpop.eup %6747  ;;  %v7513_v3 = vor.u32 %v6590_v51, %v6121_v5 }
 0x5c8   :  { %v7446_v31 = vpop.eup %6749  ;;  %v2999_v25 = vmul.f32 %v7438_v6, %v7406_v53  ;;  %vm3004_vm4 = vweird.f32 %v7438_v6  ;;  %6751 = vrcp.f32 %v7434_v57  ;;  %v6123_v53 = vld [vmem:[#allocation13 + $0x78] sm:$0xf0]  ;;  %vm3042_vm13 = vweird.f32 %v7434_v57 }
 0x5c9   :  { %v3018_v12 = vmul.f32 %v7446_v31, %v7411_v34  ;;  %6753 = vtanh.f32 %v2992_v23  ;;  %vm7467_vm7 = vmor %vm3003_vm5, %vm3004_vm4  ;;  %vm3023_vm8 = vweird.f32 %v7446_v31  ;;  %v7482_v41 = vor.u32 %v6588_v30, %v6123_v53  ;;  %3655 = vmatpush.bf16.msra.mxu1 %v7511_v46  ;;  %3667 = vmatpush.bf16.msra.mxu2 %v7513_v3 }
 0x5ca   :  { %v3000_v47 = vsub.f32 1.0, %v2999_v25  ;;  %vm7492_vm10 = vmor %vm3022_vm9, %vm3023_vm8  ;;  %v6581_v25 = vld [vmem:[#allocation13 + $0x2c] sm:$0xf0]  ;;  %v7532_v53 = vor.u32 %v6579_v60, %v6083_v26 }
 0x5cb   :  { %v3019_v55 = vsub.f32 1.0, %v3018_v12  ;;  %3680 = vmatpush.bf16.msra.mxu3 %v7482_v41 }
 0x5cc   :  { %v3001_v13 = vmul.f32 %v7438_v6, %v3000_v47  ;;  %v6586_v47 = vld [vmem:[#allocation13 + $0x54] sm:$0xf0] }
 0x5cd   :  { %v3020_v40 = vmul.f32 %v7446_v31, %v3019_v55  ;;  %v6580_v55 = vld [vmem:[#allocation13 + $0x2c] sm:$0xf]  ;;  %3656 = vmatpush.bf16.msra.mxu1 %v7532_v53 }
 0x5ce   :  { %v7486_v28 = vpop.eup %6751  ;;  %v3002_v16 = vadd.f32 %v7438_v6, %v3001_v13  ;;  %v7534_v13 = vor.u32 %v6586_v47, %v6105_v37  ;;  %v3389_v37 = vpop.f32.mrf.mxu3 }
 0x5cf   :  { %v6754_v23 = vpop.eup %6753  ;;  %v3021_v11 = vadd.f32 %v7446_v31, %v3020_v40  ;;  %v3038_v34 = vmul.f32 %v7486_v28, %v7434_v57  ;;  %v6575_v40 = vld [vmem:[#allocation13 + $0x4] sm:$0xf]  ;;  %vm3043_vm12 = vweird.f32 %v7486_v28 }
 0x5d0   :  { %v3006_v59 = vsel %vm7467_vm7, %v7438_v6, %v3002_v16  ;;  %v7521_v6 = vor.u32 %v6584_v38, %v6107_v24  ;;  %v6576_v16 = vld [vmem:[#allocation13 + $0xc] sm:$0xf]  ;;  %v6075_v38 = vld [vmem:[#allocation13 + $0x18] sm:$0xf0]  ;;  %v3048_v24 = vand.u32 2147483648, %v7434_v57  ;;  %3668 = vmatpush.bf16.msra.mxu2 %v7534_v13  ;;  %v7549_v20 = vor.u32 %v6575_v40, %v6067_v32  ;;  %vm3044_vm14 = vmor %vm3042_vm13, %vm3043_vm12 }
 0x5d1   :  { %v3011_v62 = vsel %vm7457_vm6, %v3010_v56, %v3006_v59  ;;  %v3025_v12 = vsel %vm7492_vm10, %v7446_v31, %v3021_v11  ;;  %v3039_v36 = vsub.f32 1.0, %v3038_v34  ;;  %v7528_v31 = vor.u32 %v6581_v25, %v6081_v54  ;;  %v6578_v34 = vld [vmem:[#allocation13 + $0x14] sm:$0xf0] }
 0x5d2   :  { %v3030_v21 = vsel %vm7497_vm11, %v3029_v19, %v3025_v12  ;;  %v3053_v30 = vmul.f32 %v6754_v23, %v3011_v62  ;;  %v6065_v19 = vld [vmem:[#allocation13] sm:$0xf]  ;;  %3681 = vmatpush.bf16.msra.mxu3 %v7521_v6  ;;  %v3046_v23 = vand.u32 2147483647, %v7434_v57  ;;  %v7551_v11 = vor.u32 %v6582_v18, %v6089_v1  ;;  %3657 = vmatpush.bf16.msra.mxu1 %v7549_v20  ;;  %v3331_v12 = vpop.f32.mrf.mxu1 }
 0x5d3   :  { %v3052_v63 = vmul.f32 %v3030_v21, %v7383_v2  ;;  %v3040_v56 = vmul.f32 %v7486_v28, %v3039_v36  ;;  %v7537_v2 = vor.u32 %v6580_v55, %v6091_v50  ;;  %3643 = vmatpush.bf16.msra.mxu0 %v7528_v31  ;;  %v7543_v5 = vor.u32 %v6577_v42, %v6065_v19  ;;  %v3360_v36 = vpop.f32.mrf.mxu2 }
 0x5d4   :  { %v7554_v51 = vor.u32 %v6576_v16, %v6075_v38  ;;  %v3049_v59 = vor.u32 1.1754944e-38, %v3048_v24  ;;  %vm3047_vm15 = vcmp.eq.f32.partialorder %v3046_v23, 8.507059e+37  ;;  %3669 = vmatpush.bf16.msra.mxu2 %v7551_v11  ;;  %v7560_v57 = vor.u32 %v6578_v34, %v6073_v29 }
 0x5d5   :  { %v3054_v9 = vadd.f32 %v3053_v30, %v3052_v63  ;;  %v3041_v49 = vadd.f32 %v7486_v28, %v3040_v56 }
 0x5d6   :  { %3682 = vmatpush.bf16.msra.mxu3 %v7537_v2  ;;  %3774 = vmatpush.bf16.msrb.mxu1 %v7397_v15  ;;  %v7638_v55 = vpop.f32.mrf.mxu3 }
 0x5d7   :  { %6755 = vtanh.f32 %v3054_v9  ;;  %v3045_v54 = vsel %vm3044_vm14, %v7486_v28, %v3041_v49  ;;  %3644 = vmatpush.bf16.msra.mxu0 %v7543_v5 }
 0x5d8   :  { %v3050_v60 = vsel %vm3047_vm15, %v3049_v59, %v3045_v54  ;;  %3670 = vmatpush.bf16.msra.mxu2 %v7560_v57 }
 0x5da   :  { %3683 = vmatpush.bf16.msra.mxu3 %v7554_v51  ;;  %3775 = vmatpush.bf16.msrb.mxu1 %v7413_v33  ;;  %v7634_v21 = vpop.f32.mrf.mxu1 }
 0x5db   :  { %3761 = vmatpush.bf16.msrb.mxu0 %v7395_v14  ;;  %v7636_v30 = vpop.f32.mrf.mxu2 }
 0x5dc   :  { %3787 = vmatpush.bf16.msrb.mxu2 %v7402_v35  ;;  %7975 = vst [vmem:[#allocation22_spill] sm:$0xff] %v7636_v30 }
 0x5dd   :  { %v6756_v25 = vpop.eup %6755 }
 0x5de   :  { %v3056_v26 = vmul.f32 %v6756_v25, %v3050_v60  ;;  %3800 = vmatpush.bf16.msrb.mxu3 %v7399_v17  ;;  %3776 = vmatpush.bf16.msrb.mxu1 %v7430_v44  ;;  %v7646_v19 = vpop.f32.mrf.mxu3  ;;  %v3099_v60 = vld [vmem:[%s7959_s6] sm:$0xf] }
 0x5df   :  { %3762 = vmatpush.bf16.msrb.mxu0 %v7408_v10  ;;  %7979 = vst [vmem:[#allocation26_spill] sm:$0xff] %v7646_v19 }
 0x5e0   :  { %v3057_v28 = vpack.c.bf16 %v3056_v26, %v3056_v26  ;;  %3788 = vmatpush.bf16.msrb.mxu2 %v7424_v48 }
 0x5e2   :  { %3058 = vst [vmem:[#allocation2 + $0x1c] sm:$0xf] %v3057_v28  ;;  %3801 = vmatpush.bf16.msrb.mxu3 %v7422_v27  ;;  %3777 = vmatpush.bf16.msrb.mxu1 %v7444_v8  ;;  %v7642_v63 = vpop.f32.mrf.mxu1 }
 0x5e3   :  { %3763 = vmatpush.bf16.msrb.mxu0 %v7428_v0  ;;  %7977 = vst [vmem:[#allocation24_spill] sm:$0xff] %v7642_v63  ;;  %v7644_v56 = vpop.f32.mrf.mxu2 }
 0x5e4   :  { %3789 = vmatpush.bf16.msrb.mxu2 %v7463_v61  ;;  %7978 = vst [vmem:[#allocation25_spill] sm:$0xff] %v7644_v56 }
 0x5e6   :  { %3802 = vmatpush.bf16.msrb.mxu3 %v7436_v52  ;;  %3778 = vmatpush.bf16.msrb.mxu1 %v7480_v22  ;;  %v7654_v40 = vpop.f32.mrf.mxu3 }
 0x5e7   :  { %3764 = vmatpush.bf16.msrb.mxu0 %v7442_v58  ;;  %7983 = vst [vmem:[#allocation30_spill] sm:$0xff] %v7654_v40 }
 0x5e8   :  { %3790 = vmatpush.bf16.msrb.mxu2 %v7484_v45 }
 0x5e9   :  { %v6542_v62 = vld [vmem:[#allocation2 + $0x18] sm:$0xff] }
 0x5ea   :  { %3803 = vmatpush.bf16.msrb.mxu3 %v7461_v39  ;;  %3316 = vmatmul.bf16.gmra.mxu0 %v6542_v62  ;;  %v7650_v1 = vpop.f32.mrf.mxu1 }
 0x5eb   :  { %3345 = vmatmul.bf16.gmra.mxu1 %v6542_v62  ;;  %3374 = vmatmul.bf16.gmra.mxu2 %v6542_v62  ;;  %7981 = vst [vmem:[#allocation28_spill] sm:$0xff] %v7650_v1  ;;  %v7652_v9 = vpop.f32.mrf.mxu2 }
 0x5ec   :  { %3403 = vmatmul.bf16.gmra.mxu3 %v6542_v62  ;;  %3765 = vmatpush.bf16.msrb.mxu0 %v7473_v7  ;;  %7982 = vst [vmem:[#allocation29_spill] sm:$0xff] %v7652_v9  ;;  %v7687_v62 = vperm.slane %v3099_v60, 0 }
 0x5ed   :  { %3791 = vmatpush.bf16.msrb.mxu2 %v7513_v3  ;;  %3779 = vmatpush.bf16.msrb.mxu1 %v7511_v46 }
 0x5ee   :  { %3804 = vmatpush.bf16.msrb.mxu3 %v7482_v41  ;;  %v7662_v16 = vpop.f32.mrf.mxu3 }
 0x5ef   :  { %7987 = vst [vmem:[#allocation34_spill] sm:$0xff] %v7662_v16  ;;  %v7697_v16 = vperm.slane %v3099_v60, 3 }
 0x5f0   :  { %3766 = vmatpush.bf16.msrb.mxu0 %v7505_v43 }
 0x5f1   :  { %3792 = vmatpush.bf16.msrb.mxu2 %v7534_v13  ;;  %3780 = vmatpush.bf16.msrb.mxu1 %v7532_v53 }
 0x5f2   :  { %3805 = vmatpush.bf16.msrb.mxu3 %v7521_v6  ;;  %v7658_v18 = vpop.f32.mrf.mxu1 }
 0x5f3   :  { %7985 = vst [vmem:[#allocation32_spill] sm:$0xff] %v7658_v18  ;;  %v7660_v49 = vpop.f32.mrf.mxu2  ;;  %v3390_v18 = vadd.f32 %v3389_v37, %v7697_v16 }
 0x5f4   :  { %3767 = vmatpush.bf16.msrb.mxu0 %v7528_v31  ;;  %7986 = vst [vmem:[#allocation33_spill] sm:$0xff] %v7660_v49 }
 0x5f5   :  { %3793 = vmatpush.bf16.msrb.mxu2 %v7551_v11  ;;  %3781 = vmatpush.bf16.msrb.mxu1 %v7549_v20 }
 0x5f6   :  { %3806 = vmatpush.bf16.msrb.mxu3 %v7537_v2  ;;  %v7670_v29 = vpop.f32.mrf.mxu3 }
 0x5f7   :  { %7991 = vst [vmem:[#allocation38_spill] sm:$0xff] %v7670_v29 }
 0x5f8   :  { %3768 = vmatpush.bf16.msrb.mxu0 %v7543_v5 }
 0x5f9   :  { %3794 = vmatpush.bf16.msrb.mxu2 %v7560_v57 }
 0x5fa   :  { %3807 = vmatpush.bf16.msrb.mxu3 %v7554_v51  ;;  %3645 = vmatmul.bf16.vlgmr.msra.gmra.mxu0 %v7098_v4  ;;  %v7666_v24 = vpop.f32.mrf.mxu1 }
 0x5fb   :  { %3658 = vmatmul.bf16.vlgmr.msra.gmra.mxu1 %v7098_v4  ;;  %3671 = vmatmul.bf16.vlgmr.msra.gmra.mxu2 %v7098_v4  ;;  %7989 = vst [vmem:[#allocation36_spill] sm:$0xff] %v7666_v24  ;;  %v7668_v23 = vpop.f32.mrf.mxu2 }
 0x5fc   :  { %3684 = vmatmul.bf16.vlgmr.msra.gmra.mxu3 %v7098_v4  ;;  %3885 = vmatpush.bf16.msra.mxu0 %v7395_v14  ;;  %v3302_v4 = vpop.f32.mrf.mxu0  ;;  %7990 = vst [vmem:[#allocation37_spill] sm:$0xff] %v7668_v23  ;;  %v7689_v23 = vperm.slane %v3099_v60, 1 }
 0x5fd   :  { %3898 = vmatpush.bf16.msra.mxu1 %v7397_v15  ;;  %3911 = vmatpush.bf16.msra.mxu2 %v7402_v35 }
 0x5fe   :  { %3924 = vmatpush.bf16.msra.mxu3 %v7399_v17 }
 0x600   :  { %3886 = vmatpush.bf16.msra.mxu0 %v7408_v10 }
 0x601   :  { %3899 = vmatpush.bf16.msra.mxu1 %v7413_v33  ;;  %3912 = vmatpush.bf16.msra.mxu2 %v7424_v48 }
 0x602   :  { %3925 = vmatpush.bf16.msra.mxu3 %v7422_v27 }
 0x604   :  { %3887 = vmatpush.bf16.msra.mxu0 %v7428_v0  ;;  %v7632_v47 = vpop.f32.mrf.mxu0 }
 0x605   :  { %3900 = vmatpush.bf16.msra.mxu1 %v7430_v44  ;;  %3913 = vmatpush.bf16.msra.mxu2 %v7463_v61 }
 0x606   :  { %3926 = vmatpush.bf16.msra.mxu3 %v7436_v52 }
 0x608   :  { %3888 = vmatpush.bf16.msra.mxu0 %v7442_v58 }
 0x609   :  { %3901 = vmatpush.bf16.msra.mxu1 %v7444_v8  ;;  %3914 = vmatpush.bf16.msra.mxu2 %v7484_v45 }
 0x60a   :  { %3927 = vmatpush.bf16.msra.mxu3 %v7461_v39 }
 0x60c   :  { %3889 = vmatpush.bf16.msra.mxu0 %v7473_v7  ;;  %v7640_v50 = vpop.f32.mrf.mxu0 }
 0x60d   :  { %3902 = vmatpush.bf16.msra.mxu1 %v7480_v22  ;;  %3915 = vmatpush.bf16.msra.mxu2 %v7513_v3  ;;  %7976 = vst [vmem:[#allocation23_spill] sm:$0xff] %v7640_v50 }
 0x60e   :  { %3928 = vmatpush.bf16.msra.mxu3 %v7482_v41 }
 0x610   :  { %3890 = vmatpush.bf16.msra.mxu0 %v7505_v43 }
 0x611   :  { %3903 = vmatpush.bf16.msra.mxu1 %v7511_v46  ;;  %3916 = vmatpush.bf16.msra.mxu2 %v7534_v13 }
 0x612   :  { %3929 = vmatpush.bf16.msra.mxu3 %v7521_v6 }
 0x614   :  { %3891 = vmatpush.bf16.msra.mxu0 %v7528_v31  ;;  %v7648_v42 = vpop.f32.mrf.mxu0 }
 0x615   :  { %3904 = vmatpush.bf16.msra.mxu1 %v7532_v53  ;;  %3917 = vmatpush.bf16.msra.mxu2 %v7551_v11  ;;  %7980 = vst [vmem:[#allocation27_spill] sm:$0xff] %v7648_v42 }
 0x616   :  { %3930 = vmatpush.bf16.msra.mxu3 %v7537_v2 }
 0x618   :  { %3892 = vmatpush.bf16.msra.mxu0 %v7543_v5 }
 0x619   :  { %3905 = vmatpush.bf16.msra.mxu1 %v7549_v20  ;;  %3918 = vmatpush.bf16.msra.mxu2 %v7560_v57 }
 0x61a   :  { %3931 = vmatpush.bf16.msra.mxu3 %v7554_v51 }
 0x61c   :  { %v7656_v32 = vpop.f32.mrf.mxu0 }
 0x61d   :  { %7984 = vst [vmem:[#allocation31_spill] sm:$0xff] %v7656_v32 }
 0x624   :  { %v7664_v38 = vpop.f32.mrf.mxu0 }
 0x625   :  { %7988 = vst [vmem:[#allocation35_spill] sm:$0xff] %v7664_v38 }
 0x667   :  { %v7672_v34 = vpop.f32.mrf.mxu0 }
 0x668   :  { %7992 = vst [vmem:[#allocation39_spill] sm:$0xff] %v7672_v34  ;;  %v7674_v54 = vpop.f32.mrf.mxu1  ;;  %v3303_v34 = vadd.f32 %v3302_v4, %v7687_v62 }
 0x669   :  { %7993 = vst [vmem:[#allocation40_spill] sm:$0xff] %v7674_v54  ;;  %v3332_v54 = vadd.f32 %v3331_v12, %v7689_v23 }
 0x66e   :  { %v7676_v59 = vpop.f32.mrf.mxu2 }
 0x66f   :  { %7994 = vst [vmem:[#allocation41_spill] sm:$0xff] %v7676_v59  ;;  %v7678_v25 = vpop.f32.mrf.mxu3  ;;  %v7683_v26 = vpop.f32.mrf.mxu0 }
 0x670   :  { %7995 = vst [vmem:[#allocation42_spill] sm:$0xff] %v7678_v25  ;;  %v7685_v28 = vpop.f32.mrf.mxu1 }
 0x671   :  { %7996 = vst [vmem:[#allocation43_spill] sm:$0xff] %v7683_v26 }
 0x672   :  { %7997 = vst [vmem:[#allocation44_spill] sm:$0xff] %v7685_v28 }
 0x676   :  { %v7693_v29 = vpop.f32.mrf.mxu2 }
 0x677   :  { %7998 = vst [vmem:[#allocation45_spill] sm:$0xff] %v7693_v29  ;;  %v7695_v59 = vpop.f32.mrf.mxu3  ;;  %v3646_v25 = vpop.f32.mrf.mxu0 }
 0x678   :  { %7999 = vst [vmem:[#allocation46_spill] sm:$0xff] %v7695_v59  ;;  %v3659_v24 = vpop.f32.mrf.mxu1  ;;  %v3689_v38 = vadd.f32 %v3646_v25, %v3303_v34 }
 0x679   :  { %v3690_v49 = vadd.f32 %v3659_v24, %v3332_v54  ;;  %v7700_v24 = vperm.slane %v3099_v60, 2 }
 0x67a   :  { %v6191_v26 = vmul.f32 -1.442695, %v3689_v38 }
 0x67b   :  { %v6192_v28 = vmul.f32 -1.442695, %v3690_v49  ;;  %8000 = vst [vmem:[#allocation47_spill] sm:$0xff] %v7700_v24  ;;  %v3361_v37 = vadd.f32 %v3360_v36, %v7700_v24 }
 0x67c   :  { %6757 = vpow2.f32 %v6191_v26 }
 0x67d   :  { %6759 = vpow2.f32 %v6192_v28 }
 0x67e   :  { %v3672_v32 = vpop.f32.mrf.mxu2 }
 0x67f   :  { %v3685_v4 = vpop.f32.mrf.mxu3  ;;  %v3648_v12 = vpop.f32.mrf.mxu0 }
 0x680   :  { %v3692_v9 = vadd.f32 %v3685_v4, %v3390_v18  ;;  %v3661_v40 = vpop.f32.mrf.mxu1  ;;  %v3691_v18 = vadd.f32 %v3672_v32, %v3361_v37 }
 0x682   :  { %v6193_v29 = vmul.f32 -1.442695, %v3692_v9  ;;  %v6758_v1 = vpop.eup %6757 }
 0x683   :  { %v6760_v59 = vpop.eup %6759  ;;  %v3696_v42 = vadd.f32 1.0, %v6758_v1 }
 0x684   :  { %6761 = vpow2.f32 %v6193_v29  ;;  %v3715_v34 = vadd.f32 1.0, %v6760_v59 }
 0x685   :  { %6763 = vrcp.f32 %v3696_v42  ;;  %v3708_v29 = vand.u32 2147483648, %v3696_v42  ;;  %v3706_v12 = vand.u32 2147483647, %v3696_v42  ;;  %vm3702_vm2 = vweird.f32 %v3696_v42 }
 0x686   :  { %6765 = vrcp.f32 %v3715_v34  ;;  %v3674_v38 = vpop.f32.mrf.mxu2  ;;  %v3727_v59 = vand.u32 2147483648, %v3715_v34  ;;  %vm3721_vm3 = vweird.f32 %v3715_v34 }
 0x687   :  { %v3687_v49 = vpop.f32.mrf.mxu3  ;;  %v3725_v38 = vand.u32 2147483647, %v3715_v34  ;;  %v3709_v32 = vor.u32 1.1754944e-38, %v3708_v29  ;;  %vm3707_vm5 = vcmp.eq.f32.partialorder %v3706_v12, 8.507059e+37 }
 0x688   :  { %v3728_v19 = vor.u32 1.1754944e-38, %v3727_v59 }
 0x689   :  { %vm3726_vm7 = vcmp.eq.f32.partialorder %v3725_v38, 8.507059e+37 }
 0x68a   :  { %v6762_v54 = vpop.eup %6761 }
 0x68b   :  { %v3735_v25 = vadd.f32 1.0, %v6762_v54  ;;  %v6764_v26 = vpop.eup %6763 }
 0x68c   :  { %v6766_v28 = vpop.eup %6765  ;;  %v3698_v40 = vmul.f32 %v6764_v26, %v3696_v42  ;;  %vm3703_vm0 = vweird.f32 %v6764_v26 }
 0x68d   :  { %6767 = vrcp.f32 %v3735_v25  ;;  %v3717_v9 = vmul.f32 %v6766_v28, %v3715_v34  ;;  %vm3722_vm1 = vweird.f32 %v6766_v28  ;;  %vm3704_vm4 = vmor %vm3702_vm2, %vm3703_vm0  ;;  %v3747_v34 = vand.u32 2147483648, %v3735_v25 }
 0x68e   :  { %v3699_v4 = vsub.f32 1.0, %v3698_v40  ;;  %6769 = vtanh.f32 %v3691_v18  ;;  %vm3723_vm6 = vmor %vm3721_vm3, %vm3722_vm1  ;;  %vm3741_vm9 = vweird.f32 %v3735_v25 }
 0x68f   :  { %v3718_v1 = vsub.f32 1.0, %v3717_v9  ;;  %v3748_v59 = vor.u32 1.1754944e-38, %v3747_v34 }
 0x690   :  { %v3700_v60 = vmul.f32 %v6764_v26, %v3699_v4 }
 0x691   :  { %v3719_v49 = vmul.f32 %v6766_v28, %v3718_v1 }
 0x692   :  { %v3701_v36 = vadd.f32 %v6764_v26, %v3700_v60 }
 0x693   :  { %v6768_v56 = vpop.eup %6767  ;;  %v3720_v54 = vadd.f32 %v6766_v28, %v3719_v49 }
 0x694   :  { %v3737_v37 = vmul.f32 %v6768_v56, %v3735_v25  ;;  %v3705_v40 = vsel %vm3704_vm4, %v6764_v26, %v3701_v36  ;;  %v6770_v18 = vpop.eup %6769  ;;  %vm3742_vm8 = vweird.f32 %v6768_v56  ;;  %v3745_v26 = vand.u32 2147483647, %v3735_v25 }
 0x695   :  { %v3710_v9 = vsel %vm3707_vm5, %v3709_v32, %v3705_v40  ;;  %v3724_v4 = vsel %vm3723_vm6, %v6766_v28, %v3720_v54  ;;  %vm3743_vm10 = vmor %vm3741_vm9, %vm3742_vm8  ;;  %v3392_v32 = vadd.f32 %v7638_v55, %v7697_v16 }
 0x696   :  { %v3738_v63 = vsub.f32 1.0, %v3737_v37  ;;  %v3729_v1 = vsel %vm3726_vm7, %v3728_v19, %v3724_v4  ;;  %v3752_v50 = vmul.f32 %v6770_v18, %v3710_v9  ;;  %vm3746_vm11 = vcmp.eq.f32.partialorder %v3745_v26, 8.507059e+37 }
 0x697   :  { %v3751_v30 = vmul.f32 0.0, %v3729_v1 }
 0x698   :  { %v3739_v24 = vmul.f32 %v6768_v56, %v3738_v63 }
 0x699   :  { %v7703_v60 = vadd.f32 %v3752_v50, %v3751_v30  ;;  %v3305_v30 = vadd.f32 %v7632_v47, %v7687_v62  ;;  %v3334_v50 = vadd.f32 %v7634_v21, %v7689_v23 }
 0x69a   :  { %v3740_v42 = vadd.f32 %v6768_v56, %v3739_v24 }
 0x69b   :  { %6771 = vtanh.f32 %v7703_v60 }
 0x69c   :  { %v3744_v29 = vsel %vm3743_vm10, %v6768_v56, %v3740_v42 }
 0x69d   :  { %v3749_v12 = vsel %vm3746_vm11, %v3748_v59, %v3744_v29  ;;  %v8001_v59 = vld [vmem:[#allocation47_spill] sm:$0xff] }
 0x6a1   :  { %v6772_v28 = vpop.eup %6771 }
 0x6a2   :  { %v3755_v49 = vmul.f32 %v6772_v28, %v3749_v12  ;;  %v8002_v28 = vld [vmem:[#allocation22_spill] sm:$0xff] }
 0x6a3   :  { %v3363_v55 = vadd.f32 %v8002_v28, %v8001_v59 }
 0x6a4   :  { %v3760_v19 = vpack.c.bf16 %v3755_v49, %v3755_v49 }
 0x6a6   :  { %3769 = vmatmul.bf16.vlgmr.msrb.gmra.mxu0 %v3760_v19  ;;  %3782 = vmatmul.bf16.vlgmr.msrb.gmra.mxu1 %v3760_v19 }
 0x6a7   :  { %3795 = vmatmul.bf16.vlgmr.msrb.gmra.mxu2 %v3760_v19  ;;  %3808 = vmatmul.bf16.vlgmr.msrb.gmra.mxu3 %v3760_v19 }
 0x6a8   :  { %4009 = vmatpush.bf16.msrb.mxu0 %v7395_v14  ;;  %4022 = vmatpush.bf16.msrb.mxu1 %v7397_v15 }
 0x6a9   :  { %4035 = vmatpush.bf16.msrb.mxu2 %v7402_v35  ;;  %4048 = vmatpush.bf16.msrb.mxu3 %v7399_v17 }
 0x6ac   :  { %4010 = vmatpush.bf16.msrb.mxu0 %v7408_v10  ;;  %4023 = vmatpush.bf16.msrb.mxu1 %v7413_v33 }
 0x6ad   :  { %4036 = vmatpush.bf16.msrb.mxu2 %v7424_v48  ;;  %4049 = vmatpush.bf16.msrb.mxu3 %v7422_v27 }
 0x6b0   :  { %4011 = vmatpush.bf16.msrb.mxu0 %v7428_v0  ;;  %4024 = vmatpush.bf16.msrb.mxu1 %v7430_v44 }
 0x6b1   :  { %4037 = vmatpush.bf16.msrb.mxu2 %v7463_v61  ;;  %4050 = vmatpush.bf16.msrb.mxu3 %v7436_v52 }
 0x6b4   :  { %4012 = vmatpush.bf16.msrb.mxu0 %v7442_v58  ;;  %4025 = vmatpush.bf16.msrb.mxu1 %v7444_v8 }
 0x6b5   :  { %4038 = vmatpush.bf16.msrb.mxu2 %v7484_v45  ;;  %4051 = vmatpush.bf16.msrb.mxu3 %v7461_v39 }
 0x6b8   :  { %4013 = vmatpush.bf16.msrb.mxu0 %v7473_v7  ;;  %4026 = vmatpush.bf16.msrb.mxu1 %v7480_v22 }
 0x6b9   :  { %4039 = vmatpush.bf16.msrb.mxu2 %v7513_v3  ;;  %4052 = vmatpush.bf16.msrb.mxu3 %v7482_v41 }
 0x6bc   :  { %4014 = vmatpush.bf16.msrb.mxu0 %v7505_v43  ;;  %4027 = vmatpush.bf16.msrb.mxu1 %v7511_v46 }
 0x6bd   :  { %4040 = vmatpush.bf16.msrb.mxu2 %v7534_v13  ;;  %4053 = vmatpush.bf16.msrb.mxu3 %v7521_v6 }
 0x6c0   :  { %4015 = vmatpush.bf16.msrb.mxu0 %v7528_v31  ;;  %4028 = vmatpush.bf16.msrb.mxu1 %v7532_v53 }
 0x6c1   :  { %4041 = vmatpush.bf16.msrb.mxu2 %v7551_v11  ;;  %4054 = vmatpush.bf16.msrb.mxu3 %v7537_v2 }
 0x6c4   :  { %4016 = vmatpush.bf16.msrb.mxu0 %v7543_v5  ;;  %4029 = vmatpush.bf16.msrb.mxu1 %v7549_v20 }
 0x6c5   :  { %4042 = vmatpush.bf16.msrb.mxu2 %v7560_v57  ;;  %4055 = vmatpush.bf16.msrb.mxu3 %v7554_v51 }
 0x723   :  { %v3770_v63 = vpop.f32.mrf.mxu0  ;;  %v3783_v56 = vpop.f32.mrf.mxu1 }
 0x724   :  { %v3813_v24 = vadd.f32 %v3770_v63, %v3305_v30  ;;  %v3814_v25 = vadd.f32 %v3783_v56, %v3334_v50 }
 0x726   :  { %v6194_v38 = vmul.f32 -1.442695, %v3813_v24  ;;  %v6195_v36 = vmul.f32 -1.442695, %v3814_v25 }
 0x728   :  { %6773 = vpow2.f32 %v6194_v38 }
 0x729   :  { %6775 = vpow2.f32 %v6195_v36 }
 0x72a   :  { %v3796_v54 = vpop.f32.mrf.mxu2  ;;  %v3809_v37 = vpop.f32.mrf.mxu3 }
 0x72b   :  { %v3816_v40 = vadd.f32 %v3809_v37, %v3392_v32  ;;  %v3772_v18 = vpop.f32.mrf.mxu0  ;;  %v3785_v9 = vpop.f32.mrf.mxu1  ;;  %v3815_v19 = vadd.f32 %v3796_v54, %v3363_v55 }
 0x72d   :  { %v6196_v47 = vmul.f32 -1.442695, %v3816_v40 }
 0x72e   :  { %v6774_v4 = vpop.eup %6773 }
 0x72f   :  { %v6776_v1 = vpop.eup %6775  ;;  %v3820_v21 = vadd.f32 1.0, %v6774_v4  ;;  %6777 = vpow2.f32 %v6196_v47 }
 0x730   :  { %v3839_v42 = vadd.f32 1.0, %v6776_v1 }
 0x731   :  { %6779 = vrcp.f32 %v3820_v21  ;;  %v3832_v25 = vand.u32 2147483648, %v3820_v21  ;;  %v3830_v32 = vand.u32 2147483647, %v3820_v21  ;;  %vm3826_vm14 = vweird.f32 %v3820_v21 }
 0x732   :  { %6781 = vrcp.f32 %v3839_v42  ;;  %v3798_v34 = vpop.f32.mrf.mxu2  ;;  %v3811_v26 = vpop.f32.mrf.mxu3  ;;  %v3851_v38 = vand.u32 2147483648, %v3839_v42  ;;  %v3849_v40 = vand.u32 2147483647, %v3839_v42  ;;  %vm3845_vm15 = vweird.f32 %v3839_v42 }
 0x733   :  { %v3833_v54 = vor.u32 1.1754944e-38, %v3832_v25  ;;  %vm3831_vm2 = vcmp.eq.f32.partialorder %v3830_v32, 8.507059e+37 }
 0x734   :  { %v3852_v1 = vor.u32 1.1754944e-38, %v3851_v38  ;;  %vm3850_vm3 = vcmp.eq.f32.partialorder %v3849_v40, 8.507059e+37  ;;  %v8004_v40 = vld [vmem:[#allocation24_spill] sm:$0xff] }
 0x735   :  { %v6778_v29 = vpop.eup %6777 }
 0x736   :  { %v3859_v12 = vadd.f32 1.0, %v6778_v29 }
 0x737   :  { %v6780_v49 = vpop.eup %6779 }
 0x738   :  { %v6782_v30 = vpop.eup %6781  ;;  %v3822_v50 = vmul.f32 %v6780_v49, %v3820_v21  ;;  %6783 = vrcp.f32 %v3859_v12  ;;  %vm3827_vm12 = vweird.f32 %v6780_v49  ;;  %vm3865_vm5 = vweird.f32 %v3859_v12 }
 0x739   :  { %v3841_v63 = vmul.f32 %v6782_v30, %v3839_v42  ;;  %6785 = vtanh.f32 %v3815_v19  ;;  %vm3846_vm13 = vweird.f32 %v6782_v30  ;;  %vm3828_vm0 = vmor %vm3826_vm14, %vm3827_vm12 }
 0x73a   :  { %v3823_v56 = vsub.f32 1.0, %v3822_v50  ;;  %vm3847_vm1 = vmor %vm3845_vm15, %vm3846_vm13 }
 0x73b   :  { %v3842_v24 = vsub.f32 1.0, %v3841_v63 }
 0x73c   :  { %v3824_v36 = vmul.f32 %v6780_v49, %v3823_v56 }
 0x73d   :  { %v3843_v37 = vmul.f32 %v6782_v30, %v3842_v24  ;;  %v3871_v24 = vand.u32 2147483648, %v3859_v12 }
 0x73e   :  { %v6784_v18 = vpop.eup %6783  ;;  %v3825_v9 = vadd.f32 %v6780_v49, %v3824_v36 }
 0x73f   :  { %v3844_v47 = vadd.f32 %v6782_v30, %v3843_v37  ;;  %v3861_v4 = vmul.f32 %v6784_v18, %v3859_v12  ;;  %v6786_v26 = vpop.eup %6785  ;;  %vm3866_vm4 = vweird.f32 %v6784_v18  ;;  %v3872_v38 = vor.u32 1.1754944e-38, %v3871_v24 }
 0x740   :  { %v3829_v34 = vsel %vm3828_vm0, %v6780_v49, %v3825_v9  ;;  %v3869_v49 = vand.u32 2147483647, %v3859_v12  ;;  %vm3867_vm6 = vmor %vm3865_vm5, %vm3866_vm4 }
 0x741   :  { %v3834_v29 = vsel %vm3831_vm2, %v3833_v54, %v3829_v34  ;;  %v3848_v28 = vsel %vm3847_vm1, %v6782_v30, %v3844_v47  ;;  %v3862_v55 = vsub.f32 1.0, %v3861_v4 }
 0x742   :  { %v3853_v19 = vsel %vm3850_vm3, %v3852_v1, %v3848_v28  ;;  %v3876_v50 = vmul.f32 %v6786_v26, %v3834_v29  ;;  %vm3870_vm7 = vcmp.eq.f32.partialorder %v3869_v49, 8.507059e+37  ;;  %v8005_v26 = vld [vmem:[#allocation26_spill] sm:$0xff] }
 0x743   :  { %v3875_v63 = vmul.f32 %v3853_v19, %v7703_v60  ;;  %v3863_v56 = vmul.f32 %v6784_v18, %v3862_v55  ;;  %v8003_v60 = vld [vmem:[#allocation23_spill] sm:$0xff]  ;;  %v3395_v29 = vadd.f32 %v8005_v26, %v7697_v16 }
 0x744   :  { %v3308_v12 = vadd.f32 %v8003_v60, %v7687_v62 }
 0x745   :  { %v7747_v21 = vadd.f32 %v3876_v50, %v3875_v63  ;;  %v3864_v42 = vadd.f32 %v6784_v18, %v3863_v56 }
 0x747   :  { %6787 = vtanh.f32 %v7747_v21  ;;  %v3868_v25 = vsel %vm3867_vm6, %v6784_v18, %v3864_v42  ;;  %v3337_v18 = vadd.f32 %v8004_v40, %v7689_v23 }
 0x748   :  { %v3873_v36 = vsel %vm3870_vm7, %v3872_v38, %v3868_v25 }
 0x74d   :  { %v6788_v30 = vpop.eup %6787 }
 0x74e   :  { %v3879_v32 = vmul.f32 %v6788_v30, %v3873_v36 }
 0x750   :  { %v3884_v37 = vpack.c.bf16 %v3879_v32, %v3879_v32  ;;  %v8006_v32 = vld [vmem:[#allocation25_spill] sm:$0xff] }
 0x752   :  { %3893 = vmatmul.bf16.vlgmr.msra.gmra.mxu0 %v3884_v37  ;;  %3906 = vmatmul.bf16.vlgmr.msra.gmra.mxu1 %v3884_v37 }
 0x753   :  { %3919 = vmatmul.bf16.vlgmr.msra.gmra.mxu2 %v3884_v37  ;;  %3932 = vmatmul.bf16.vlgmr.msra.gmra.mxu3 %v3884_v37  ;;  %v3366_v37 = vadd.f32 %v8006_v32, %v8001_v59 }
 0x754   :  { %4133 = vmatpush.bf16.msra.mxu0 %v7395_v14  ;;  %4146 = vmatpush.bf16.msra.mxu1 %v7397_v15 }
 0x755   :  { %4159 = vmatpush.bf16.msra.mxu2 %v7402_v35  ;;  %4172 = vmatpush.bf16.msra.mxu3 %v7399_v17 }
 0x758   :  { %4134 = vmatpush.bf16.msra.mxu0 %v7408_v10  ;;  %4147 = vmatpush.bf16.msra.mxu1 %v7413_v33 }
 0x759   :  { %4160 = vmatpush.bf16.msra.mxu2 %v7424_v48  ;;  %4173 = vmatpush.bf16.msra.mxu3 %v7422_v27 }
 0x75c   :  { %4135 = vmatpush.bf16.msra.mxu0 %v7428_v0  ;;  %4148 = vmatpush.bf16.msra.mxu1 %v7430_v44 }
 0x75d   :  { %4161 = vmatpush.bf16.msra.mxu2 %v7463_v61  ;;  %4174 = vmatpush.bf16.msra.mxu3 %v7436_v52 }
 0x760   :  { %4136 = vmatpush.bf16.msra.mxu0 %v7442_v58  ;;  %4149 = vmatpush.bf16.msra.mxu1 %v7444_v8 }
 0x761   :  { %4162 = vmatpush.bf16.msra.mxu2 %v7484_v45  ;;  %4175 = vmatpush.bf16.msra.mxu3 %v7461_v39 }
 0x764   :  { %4137 = vmatpush.bf16.msra.mxu0 %v7473_v7  ;;  %4150 = vmatpush.bf16.msra.mxu1 %v7480_v22 }
 0x765   :  { %4163 = vmatpush.bf16.msra.mxu2 %v7513_v3  ;;  %4176 = vmatpush.bf16.msra.mxu3 %v7482_v41 }
 0x768   :  { %4138 = vmatpush.bf16.msra.mxu0 %v7505_v43  ;;  %4151 = vmatpush.bf16.msra.mxu1 %v7511_v46 }
 0x769   :  { %4164 = vmatpush.bf16.msra.mxu2 %v7534_v13  ;;  %4177 = vmatpush.bf16.msra.mxu3 %v7521_v6 }
 0x76c   :  { %4139 = vmatpush.bf16.msra.mxu0 %v7528_v31  ;;  %4152 = vmatpush.bf16.msra.mxu1 %v7532_v53 }
 0x76d   :  { %4165 = vmatpush.bf16.msra.mxu2 %v7551_v11  ;;  %4178 = vmatpush.bf16.msra.mxu3 %v7537_v2 }
 0x770   :  { %4140 = vmatpush.bf16.msra.mxu0 %v7543_v5  ;;  %4153 = vmatpush.bf16.msra.mxu1 %v7549_v20 }
 0x771   :  { %4166 = vmatpush.bf16.msra.mxu2 %v7560_v57  ;;  %4179 = vmatpush.bf16.msra.mxu3 %v7554_v51 }
 0x7cf   :  { %v3894_v9 = vpop.f32.mrf.mxu0  ;;  %v3907_v54 = vpop.f32.mrf.mxu1 }
 0x7d0   :  { %v3937_v47 = vadd.f32 %v3894_v9, %v3308_v12  ;;  %v3938_v4 = vadd.f32 %v3907_v54, %v3337_v18 }
 0x7d2   :  { %v6197_v1 = vmul.f32 -1.442695, %v3937_v47  ;;  %v6198_v34 = vmul.f32 -1.442695, %v3938_v4 }
 0x7d4   :  { %6789 = vpow2.f32 %v6197_v1 }
 0x7d5   :  { %6791 = vpow2.f32 %v6198_v34 }
 0x7d6   :  { %v3920_v28 = vpop.f32.mrf.mxu2  ;;  %v3933_v55 = vpop.f32.mrf.mxu3 }
 0x7d7   :  { %v3940_v19 = vadd.f32 %v3933_v55, %v3395_v29  ;;  %v3896_v50 = vpop.f32.mrf.mxu0  ;;  %v3909_v63 = vpop.f32.mrf.mxu1  ;;  %v3939_v40 = vadd.f32 %v3920_v28, %v3366_v37 }
 0x7d9   :  { %v6199_v56 = vmul.f32 -1.442695, %v3940_v19 }
 0x7da   :  { %v6790_v42 = vpop.eup %6789 }
 0x7db   :  { %v6792_v24 = vpop.eup %6791  ;;  %v3944_v49 = vadd.f32 1.0, %v6790_v42  ;;  %6793 = vpow2.f32 %v6199_v56 }
 0x7dc   :  { %v3963_v25 = vadd.f32 1.0, %v6792_v24 }
 0x7dd   :  { %6795 = vrcp.f32 %v3944_v49  ;;  %v3956_v1 = vand.u32 2147483648, %v3944_v49  ;;  %v3954_v29 = vand.u32 2147483647, %v3944_v49  ;;  %vm3950_vm10 = vweird.f32 %v3944_v49 }
 0x7de   :  { %6797 = vrcp.f32 %v3963_v25  ;;  %v3922_v38 = vpop.f32.mrf.mxu2  ;;  %v3935_v30 = vpop.f32.mrf.mxu3  ;;  %v3975_v34 = vand.u32 2147483648, %v3963_v25  ;;  %v3973_v19 = vand.u32 2147483647, %v3963_v25  ;;  %vm3969_vm11 = vweird.f32 %v3963_v25 }
 0x7df   :  { %v3957_v28 = vor.u32 1.1754944e-38, %v3956_v1  ;;  %vm3955_vm14 = vcmp.eq.f32.partialorder %v3954_v29, 8.507059e+37 }
 0x7e0   :  { %v3976_v24 = vor.u32 1.1754944e-38, %v3975_v34  ;;  %vm3974_vm15 = vcmp.eq.f32.partialorder %v3973_v19, 8.507059e+37  ;;  %v8008_v19 = vld [vmem:[#allocation28_spill] sm:$0xff] }
 0x7e1   :  { %v6794_v36 = vpop.eup %6793 }
 0x7e2   :  { %v3983_v60 = vadd.f32 1.0, %v6794_v36 }
 0x7e3   :  { %v6796_v12 = vpop.eup %6795 }
 0x7e4   :  { %v6798_v18 = vpop.eup %6797  ;;  %v3946_v9 = vmul.f32 %v6796_v12, %v3944_v49  ;;  %6799 = vrcp.f32 %v3983_v60  ;;  %vm3951_vm8 = vweird.f32 %v6796_v12  ;;  %vm3989_vm1 = vweird.f32 %v3983_v60 }
 0x7e5   :  { %v3965_v54 = vmul.f32 %v6798_v18, %v3963_v25  ;;  %6801 = vtanh.f32 %v3939_v40  ;;  %vm3970_vm9 = vweird.f32 %v6798_v18  ;;  %vm3952_vm12 = vmor %vm3950_vm10, %vm3951_vm8 }
 0x7e6   :  { %v3947_v47 = vsub.f32 1.0, %v3946_v9  ;;  %vm3971_vm13 = vmor %vm3969_vm11, %vm3970_vm9 }
 0x7e7   :  { %v3966_v4 = vsub.f32 1.0, %v3965_v54 }
 0x7e8   :  { %v3948_v26 = vmul.f32 %v6796_v12, %v3947_v47 }
 0x7e9   :  { %v3967_v55 = vmul.f32 %v6798_v18, %v3966_v4  ;;  %v3995_v4 = vand.u32 2147483648, %v3983_v60 }
 0x7ea   :  { %v6800_v50 = vpop.eup %6799  ;;  %v3949_v63 = vadd.f32 %v6796_v12, %v3948_v26 }
 0x7eb   :  { %v3968_v56 = vadd.f32 %v6798_v18, %v3967_v55  ;;  %v3985_v42 = vmul.f32 %v6800_v50, %v3983_v60  ;;  %v6802_v30 = vpop.eup %6801  ;;  %vm3990_vm0 = vweird.f32 %v6800_v50  ;;  %v3996_v34 = vor.u32 1.1754944e-38, %v3995_v4 }
 0x7ec   :  { %v3953_v38 = vsel %vm3952_vm12, %v6796_v12, %v3949_v63  ;;  %v3993_v12 = vand.u32 2147483647, %v3983_v60  ;;  %vm3991_vm2 = vmor %vm3989_vm1, %vm3990_vm0 }
 0x7ed   :  { %v3958_v36 = vsel %vm3955_vm14, %v3957_v28, %v3953_v38  ;;  %v3972_v32 = vsel %vm3971_vm13, %v6798_v18, %v3968_v56  ;;  %v3986_v37 = vsub.f32 1.0, %v3985_v42 }
 0x7ee   :  { %v3977_v40 = vsel %vm3974_vm15, %v3976_v24, %v3972_v32  ;;  %v4000_v9 = vmul.f32 %v6802_v30, %v3958_v36  ;;  %vm3994_vm3 = vcmp.eq.f32.partialorder %v3993_v12, 8.507059e+37  ;;  %v8009_v30 = vld [vmem:[#allocation30_spill] sm:$0xff] }
 0x7ef   :  { %v3999_v54 = vmul.f32 %v3977_v40, %v7747_v21  ;;  %v3987_v47 = vmul.f32 %v6800_v50, %v3986_v37  ;;  %v8007_v21 = vld [vmem:[#allocation27_spill] sm:$0xff]  ;;  %v3397_v36 = vadd.f32 %v8009_v30, %v7697_v16 }
 0x7f0   :  { %v3310_v60 = vadd.f32 %v8007_v21, %v7687_v62 }
 0x7f1   :  { %v7791_v49 = vadd.f32 %v4000_v9, %v3999_v54  ;;  %v3988_v25 = vadd.f32 %v6800_v50, %v3987_v47 }
 0x7f3   :  { %6803 = vtanh.f32 %v7791_v49  ;;  %v3992_v1 = vsel %vm3991_vm2, %v6800_v50, %v3988_v25  ;;  %v3339_v50 = vadd.f32 %v8008_v19, %v7689_v23 }
 0x7f4   :  { %v3997_v26 = vsel %vm3994_vm3, %v3996_v34, %v3992_v1 }
 0x7f9   :  { %v6804_v18 = vpop.eup %6803 }
 0x7fa   :  { %v4003_v29 = vmul.f32 %v6804_v18, %v3997_v26 }
 0x7fc   :  { %v4008_v55 = vpack.c.bf16 %v4003_v29, %v4003_v29  ;;  %v8010_v29 = vld [vmem:[#allocation29_spill] sm:$0xff] }
 0x7fe   :  { %4017 = vmatmul.bf16.vlgmr.msrb.gmra.mxu0 %v4008_v55  ;;  %4030 = vmatmul.bf16.vlgmr.msrb.gmra.mxu1 %v4008_v55 }
 0x7ff   :  { %4043 = vmatmul.bf16.vlgmr.msrb.gmra.mxu2 %v4008_v55  ;;  %4056 = vmatmul.bf16.vlgmr.msrb.gmra.mxu3 %v4008_v55  ;;  %v3368_v55 = vadd.f32 %v8010_v29, %v8001_v59 }
 0x800   :  { %4257 = vmatpush.bf16.msrb.mxu0 %v7395_v14  ;;  %4270 = vmatpush.bf16.msrb.mxu1 %v7397_v15 }
 0x801   :  { %4283 = vmatpush.bf16.msrb.mxu2 %v7402_v35  ;;  %4296 = vmatpush.bf16.msrb.mxu3 %v7399_v17 }
 0x804   :  { %4258 = vmatpush.bf16.msrb.mxu0 %v7408_v10  ;;  %4271 = vmatpush.bf16.msrb.mxu1 %v7413_v33 }
 0x805   :  { %4284 = vmatpush.bf16.msrb.mxu2 %v7424_v48  ;;  %4297 = vmatpush.bf16.msrb.mxu3 %v7422_v27 }
 0x808   :  { %4259 = vmatpush.bf16.msrb.mxu0 %v7428_v0  ;;  %4272 = vmatpush.bf16.msrb.mxu1 %v7430_v44 }
 0x809   :  { %4285 = vmatpush.bf16.msrb.mxu2 %v7463_v61  ;;  %4298 = vmatpush.bf16.msrb.mxu3 %v7436_v52 }
 0x80c   :  { %4260 = vmatpush.bf16.msrb.mxu0 %v7442_v58  ;;  %4273 = vmatpush.bf16.msrb.mxu1 %v7444_v8 }
 0x80d   :  { %4286 = vmatpush.bf16.msrb.mxu2 %v7484_v45  ;;  %4299 = vmatpush.bf16.msrb.mxu3 %v7461_v39 }
 0x810   :  { %4261 = vmatpush.bf16.msrb.mxu0 %v7473_v7  ;;  %4274 = vmatpush.bf16.msrb.mxu1 %v7480_v22 }
 0x811   :  { %4287 = vmatpush.bf16.msrb.mxu2 %v7513_v3  ;;  %4300 = vmatpush.bf16.msrb.mxu3 %v7482_v41 }
 0x814   :  { %4262 = vmatpush.bf16.msrb.mxu0 %v7505_v43  ;;  %4275 = vmatpush.bf16.msrb.mxu1 %v7511_v46 }
 0x815   :  { %4288 = vmatpush.bf16.msrb.mxu2 %v7534_v13  ;;  %4301 = vmatpush.bf16.msrb.mxu3 %v7521_v6 }
 0x818   :  { %4263 = vmatpush.bf16.msrb.mxu0 %v7528_v31  ;;  %4276 = vmatpush.bf16.msrb.mxu1 %v7532_v53 }
 0x819   :  { %4289 = vmatpush.bf16.msrb.mxu2 %v7551_v11  ;;  %4302 = vmatpush.bf16.msrb.mxu3 %v7537_v2 }
 0x81c   :  { %4264 = vmatpush.bf16.msrb.mxu0 %v7543_v5  ;;  %4277 = vmatpush.bf16.msrb.mxu1 %v7549_v20 }
 0x81d   :  { %4290 = vmatpush.bf16.msrb.mxu2 %v7560_v57  ;;  %4303 = vmatpush.bf16.msrb.mxu3 %v7554_v51 }
 0x87b   :  { %v4018_v63 = vpop.f32.mrf.mxu0  ;;  %v4031_v28 = vpop.f32.mrf.mxu1 }
 0x87c   :  { %v4061_v56 = vadd.f32 %v4018_v63, %v3310_v60  ;;  %v4062_v42 = vadd.f32 %v4031_v28, %v3339_v50 }
 0x87e   :  { %v6200_v24 = vmul.f32 -1.442695, %v4061_v56  ;;  %v6201_v38 = vmul.f32 -1.442695, %v4062_v42 }
 0x880   :  { %6805 = vpow2.f32 %v6200_v24 }
 0x881   :  { %6807 = vpow2.f32 %v6201_v38 }
 0x882   :  { %v4044_v32 = vpop.f32.mrf.mxu2  ;;  %v4057_v37 = vpop.f32.mrf.mxu3 }
 0x883   :  { %v4064_v40 = vadd.f32 %v4057_v37, %v3397_v36  ;;  %v4020_v9 = vpop.f32.mrf.mxu0  ;;  %v4033_v54 = vpop.f32.mrf.mxu1  ;;  %v4063_v19 = vadd.f32 %v4044_v32, %v3368_v55 }
 0x885   :  { %v6202_v47 = vmul.f32 -1.442695, %v4064_v40 }
 0x886   :  { %v6806_v25 = vpop.eup %6805 }
 0x887   :  { %v6808_v4 = vpop.eup %6807  ;;  %v4068_v12 = vadd.f32 1.0, %v6806_v25  ;;  %6809 = vpow2.f32 %v6202_v47 }
 0x888   :  { %v4087_v1 = vadd.f32 1.0, %v6808_v4 }
 0x889   :  { %6811 = vrcp.f32 %v4068_v12  ;;  %v4080_v24 = vand.u32 2147483648, %v4068_v12  ;;  %v4078_v36 = vand.u32 2147483647, %v4068_v12  ;;  %vm4074_vm6 = vweird.f32 %v4068_v12 }
 0x88a   :  { %6813 = vrcp.f32 %v4087_v1  ;;  %v4046_v34 = vpop.f32.mrf.mxu2  ;;  %v4059_v18 = vpop.f32.mrf.mxu3  ;;  %v4099_v38 = vand.u32 2147483648, %v4087_v1  ;;  %v4097_v40 = vand.u32 2147483647, %v4087_v1  ;;  %vm4093_vm7 = vweird.f32 %v4087_v1 }
 0x88b   :  { %v4081_v32 = vor.u32 1.1754944e-38, %v4080_v24  ;;  %vm4079_vm10 = vcmp.eq.f32.partialorder %v4078_v36, 8.507059e+37 }
 0x88c   :  { %v4100_v4 = vor.u32 1.1754944e-38, %v4099_v38  ;;  %vm4098_vm11 = vcmp.eq.f32.partialorder %v4097_v40, 8.507059e+37  ;;  %v8012_v40 = vld [vmem:[#allocation32_spill] sm:$0xff] }
 0x88d   :  { %v6810_v26 = vpop.eup %6809 }
 0x88e   :  { %v4107_v21 = vadd.f32 1.0, %v6810_v26 }
 0x88f   :  { %v6812_v60 = vpop.eup %6811 }
 0x890   :  { %v6814_v50 = vpop.eup %6813  ;;  %v4070_v63 = vmul.f32 %v6812_v60, %v4068_v12  ;;  %6815 = vrcp.f32 %v4107_v21  ;;  %vm4075_vm4 = vweird.f32 %v6812_v60  ;;  %vm4113_vm13 = vweird.f32 %v4107_v21 }
 0x891   :  { %v4089_v28 = vmul.f32 %v6814_v50, %v4087_v1  ;;  %6817 = vtanh.f32 %v4063_v19  ;;  %vm4094_vm5 = vweird.f32 %v6814_v50  ;;  %vm4076_vm8 = vmor %vm4074_vm6, %vm4075_vm4 }
 0x892   :  { %v4071_v56 = vsub.f32 1.0, %v4070_v63  ;;  %vm4095_vm9 = vmor %vm4093_vm7, %vm4094_vm5 }
 0x893   :  { %v4090_v42 = vsub.f32 1.0, %v4089_v28 }
 0x894   :  { %v4072_v30 = vmul.f32 %v6812_v60, %v4071_v56 }
 0x895   :  { %v4091_v37 = vmul.f32 %v6814_v50, %v4090_v42  ;;  %v4119_v42 = vand.u32 2147483648, %v4107_v21 }
 0x896   :  { %v6816_v9 = vpop.eup %6815  ;;  %v4073_v54 = vadd.f32 %v6812_v60, %v4072_v30 }
 0x897   :  { %v4092_v47 = vadd.f32 %v6814_v50, %v4091_v37  ;;  %v4109_v25 = vmul.f32 %v6816_v9, %v4107_v21  ;;  %v6818_v18 = vpop.eup %6817  ;;  %vm4114_vm12 = vweird.f32 %v6816_v9  ;;  %v4120_v38 = vor.u32 1.1754944e-38, %v4119_v42 }
 0x898   :  { %v4077_v34 = vsel %vm4076_vm8, %v6812_v60, %v4073_v54  ;;  %v4117_v60 = vand.u32 2147483647, %v4107_v21  ;;  %vm4115_vm14 = vmor %vm4113_vm13, %vm4114_vm12 }
 0x899   :  { %v4082_v26 = vsel %vm4079_vm10, %v4081_v32, %v4077_v34  ;;  %v4096_v29 = vsel %vm4095_vm9, %v6814_v50, %v4092_v47  ;;  %v4110_v55 = vsub.f32 1.0, %v4109_v25 }
 0x89a   :  { %v4101_v19 = vsel %vm4098_vm11, %v4100_v4, %v4096_v29  ;;  %v4124_v63 = vmul.f32 %v6818_v18, %v4082_v26  ;;  %vm4118_vm15 = vcmp.eq.f32.partialorder %v4117_v60, 8.507059e+37  ;;  %v8013_v18 = vld [vmem:[#allocation34_spill] sm:$0xff] }
 0x89b   :  { %v4123_v28 = vmul.f32 %v4101_v19, %v7791_v49  ;;  %v4111_v56 = vmul.f32 %v6816_v9, %v4110_v55  ;;  %v8011_v49 = vld [vmem:[#allocation31_spill] sm:$0xff]  ;;  %v3400_v26 = vadd.f32 %v8013_v18, %v7697_v16 }
 0x89c   :  { %v3313_v21 = vadd.f32 %v8011_v49, %v7687_v62 }
 0x89d   :  { %v7835_v12 = vadd.f32 %v4124_v63, %v4123_v28  ;;  %v4112_v1 = vadd.f32 %v6816_v9, %v4111_v56 }
 0x89f   :  { %6819 = vtanh.f32 %v7835_v12  ;;  %v4116_v24 = vsel %vm4115_vm14, %v6816_v9, %v4112_v1  ;;  %v3342_v9 = vadd.f32 %v8012_v40, %v7689_v23 }
 0x8a0   :  { %v4121_v30 = vsel %vm4118_vm15, %v4120_v38, %v4116_v24 }
 0x8a5   :  { %v6820_v50 = vpop.eup %6819 }
 0x8a6   :  { %v4127_v36 = vmul.f32 %v6820_v50, %v4121_v30 }
 0x8a8   :  { %v4132_v37 = vpack.c.bf16 %v4127_v36, %v4127_v36  ;;  %v8014_v36 = vld [vmem:[#allocation33_spill] sm:$0xff] }
 0x8aa   :  { %4141 = vmatmul.bf16.vlgmr.msra.gmra.mxu0 %v4132_v37  ;;  %4154 = vmatmul.bf16.vlgmr.msra.gmra.mxu1 %v4132_v37 }
 0x8ab   :  { %4167 = vmatmul.bf16.vlgmr.msra.gmra.mxu2 %v4132_v37  ;;  %4180 = vmatmul.bf16.vlgmr.msra.gmra.mxu3 %v4132_v37  ;;  %v3371_v37 = vadd.f32 %v8014_v36, %v8001_v59 }
 0x8ac   :  { %4381 = vmatpush.bf16.msra.mxu0 %v7395_v14  ;;  %4394 = vmatpush.bf16.msra.mxu1 %v7397_v15 }
 0x8ad   :  { %4407 = vmatpush.bf16.msra.mxu2 %v7402_v35  ;;  %4420 = vmatpush.bf16.msra.mxu3 %v7399_v17 }
 0x8b0   :  { %4382 = vmatpush.bf16.msra.mxu0 %v7408_v10  ;;  %4395 = vmatpush.bf16.msra.mxu1 %v7413_v33 }
 0x8b1   :  { %4408 = vmatpush.bf16.msra.mxu2 %v7424_v48  ;;  %4421 = vmatpush.bf16.msra.mxu3 %v7422_v27 }
 0x8b4   :  { %4383 = vmatpush.bf16.msra.mxu0 %v7428_v0  ;;  %4396 = vmatpush.bf16.msra.mxu1 %v7430_v44 }
 0x8b5   :  { %4409 = vmatpush.bf16.msra.mxu2 %v7463_v61  ;;  %4422 = vmatpush.bf16.msra.mxu3 %v7436_v52 }
 0x8b8   :  { %4384 = vmatpush.bf16.msra.mxu0 %v7442_v58  ;;  %4397 = vmatpush.bf16.msra.mxu1 %v7444_v8 }
 0x8b9   :  { %4410 = vmatpush.bf16.msra.mxu2 %v7484_v45  ;;  %4423 = vmatpush.bf16.msra.mxu3 %v7461_v39 }
 0x8bc   :  { %4385 = vmatpush.bf16.msra.mxu0 %v7473_v7  ;;  %4398 = vmatpush.bf16.msra.mxu1 %v7480_v22 }
 0x8bd   :  { %4411 = vmatpush.bf16.msra.mxu2 %v7513_v3  ;;  %4424 = vmatpush.bf16.msra.mxu3 %v7482_v41 }
 0x8c0   :  { %4386 = vmatpush.bf16.msra.mxu0 %v7505_v43  ;;  %4399 = vmatpush.bf16.msra.mxu1 %v7511_v46 }
 0x8c1   :  { %4412 = vmatpush.bf16.msra.mxu2 %v7534_v13  ;;  %4425 = vmatpush.bf16.msra.mxu3 %v7521_v6 }
 0x8c4   :  { %4387 = vmatpush.bf16.msra.mxu0 %v7528_v31  ;;  %4400 = vmatpush.bf16.msra.mxu1 %v7532_v53 }
 0x8c5   :  { %4413 = vmatpush.bf16.msra.mxu2 %v7551_v11  ;;  %4426 = vmatpush.bf16.msra.mxu3 %v7537_v2 }
 0x8c8   :  { %4388 = vmatpush.bf16.msra.mxu0 %v7543_v5  ;;  %4401 = vmatpush.bf16.msra.mxu1 %v7549_v20 }
 0x8c9   :  { %4414 = vmatpush.bf16.msra.mxu2 %v7560_v57  ;;  %4427 = vmatpush.bf16.msra.mxu3 %v7554_v51 }
 0x927   :  { %v4142_v54 = vpop.f32.mrf.mxu0  ;;  %v4155_v32 = vpop.f32.mrf.mxu1 }
 0x928   :  { %v4185_v47 = vadd.f32 %v4142_v54, %v3313_v21  ;;  %v4186_v25 = vadd.f32 %v4155_v32, %v3342_v9 }
 0x92a   :  { %v6203_v4 = vmul.f32 -1.442695, %v4185_v47  ;;  %v6204_v34 = vmul.f32 -1.442695, %v4186_v25 }
 0x92c   :  { %6821 = vpow2.f32 %v6203_v4 }
 0x92d   :  { %6823 = vpow2.f32 %v6204_v34 }
 0x92e   :  { %v4168_v29 = vpop.f32.mrf.mxu2  ;;  %v4181_v55 = vpop.f32.mrf.mxu3 }
 0x92f   :  { %v4188_v19 = vadd.f32 %v4181_v55, %v3400_v26  ;;  %v4144_v63 = vpop.f32.mrf.mxu0  ;;  %v4157_v28 = vpop.f32.mrf.mxu1  ;;  %v4187_v40 = vadd.f32 %v4168_v29, %v3371_v37 }
 0x931   :  { %v6205_v56 = vmul.f32 -1.442695, %v4188_v19 }
 0x932   :  { %v6822_v1 = vpop.eup %6821 }
 0x933   :  { %v6824_v42 = vpop.eup %6823  ;;  %v4192_v60 = vadd.f32 1.0, %v6822_v1  ;;  %6825 = vpow2.f32 %v6205_v56 }
 0x934   :  { %v4211_v24 = vadd.f32 1.0, %v6824_v42 }
 0x935   :  { %6827 = vrcp.f32 %v4192_v60  ;;  %v4204_v4 = vand.u32 2147483648, %v4192_v60  ;;  %v4202_v26 = vand.u32 2147483647, %v4192_v60  ;;  %vm4198_vm2 = vweird.f32 %v4192_v60 }
 0x936   :  { %6829 = vrcp.f32 %v4211_v24  ;;  %v4170_v38 = vpop.f32.mrf.mxu2  ;;  %v4183_v50 = vpop.f32.mrf.mxu3  ;;  %v4223_v34 = vand.u32 2147483648, %v4211_v24  ;;  %v4221_v19 = vand.u32 2147483647, %v4211_v24  ;;  %vm4217_vm3 = vweird.f32 %v4211_v24 }
 0x937   :  { %v4205_v29 = vor.u32 1.1754944e-38, %v4204_v4  ;;  %vm4203_vm6 = vcmp.eq.f32.partialorder %v4202_v26, 8.507059e+37 }
 0x938   :  { %v4224_v42 = vor.u32 1.1754944e-38, %v4223_v34  ;;  %vm4222_vm7 = vcmp.eq.f32.partialorder %v4221_v19, 8.507059e+37 }
 0x939   :  { %v6826_v30 = vpop.eup %6825 }
 0x93a   :  { %v4231_v49 = vadd.f32 1.0, %v6826_v30 }
 0x93b   :  { %v6828_v21 = vpop.eup %6827 }
 0x93c   :  { %v6830_v9 = vpop.eup %6829  ;;  %v4194_v54 = vmul.f32 %v6828_v21, %v4192_v60  ;;  %6831 = vrcp.f32 %v4231_v49  ;;  %vm4199_vm0 = vweird.f32 %v6828_v21  ;;  %vm4237_vm9 = vweird.f32 %v4231_v49 }
 0x93d   :  { %v4213_v32 = vmul.f32 %v6830_v9, %v4211_v24  ;;  %6833 = vtanh.f32 %v4187_v40  ;;  %vm4218_vm1 = vweird.f32 %v6830_v9  ;;  %vm4200_vm4 = vmor %vm4198_vm2, %vm4199_vm0 }
 0x93e   :  { %v4195_v47 = vsub.f32 1.0, %v4194_v54  ;;  %vm4219_vm5 = vmor %vm4217_vm3, %vm4218_vm1 }
 0x93f   :  { %v4214_v25 = vsub.f32 1.0, %v4213_v32 }
 0x940   :  { %v4196_v18 = vmul.f32 %v6828_v21, %v4195_v47 }
 0x941   :  { %v4215_v55 = vmul.f32 %v6830_v9, %v4214_v25  ;;  %v4243_v25 = vand.u32 2147483648, %v4231_v49 }
 0x942   :  { %v6832_v63 = vpop.eup %6831  ;;  %v4197_v28 = vadd.f32 %v6828_v21, %v4196_v18 }
 0x943   :  { %v4216_v56 = vadd.f32 %v6830_v9, %v4215_v55  ;;  %v4233_v1 = vmul.f32 %v6832_v63, %v4231_v49  ;;  %v6834_v50 = vpop.eup %6833  ;;  %vm4238_vm8 = vweird.f32 %v6832_v63  ;;  %v4244_v34 = vor.u32 1.1754944e-38, %v4243_v25 }
 0x944   :  { %v4201_v38 = vsel %vm4200_vm4, %v6828_v21, %v4197_v28  ;;  %v4241_v21 = vand.u32 2147483647, %v4231_v49  ;;  %vm4239_vm10 = vmor %vm4237_vm9, %vm4238_vm8 }
 0x945   :  { %v4206_v30 = vsel %vm4203_vm6, %v4205_v29, %v4201_v38  ;;  %v4220_v36 = vsel %vm4219_vm5, %v6830_v9, %v4216_v56  ;;  %v4234_v37 = vsub.f32 1.0, %v4233_v1 }
 0x946   :  { %v4225_v40 = vsel %vm4222_vm7, %v4224_v42, %v4220_v36  ;;  %v4248_v54 = vmul.f32 %v6834_v50, %v4206_v30  ;;  %vm4242_vm11 = vcmp.eq.f32.partialorder %v4241_v21, 8.507059e+37 }
 0x947   :  { %v4247_v32 = vmul.f32 %v4225_v40, %v7835_v12  ;;  %v4235_v47 = vmul.f32 %v6832_v63, %v4234_v37 }
 0x949   :  { %v7879_v60 = vadd.f32 %v4248_v54, %v4247_v32  ;;  %v4236_v24 = vadd.f32 %v6832_v63, %v4235_v47 }
 0x94b   :  { %6835 = vtanh.f32 %v7879_v60  ;;  %v4240_v4 = vsel %vm4239_vm10, %v6832_v63, %v4236_v24 }
 0x94c   :  { %v4245_v18 = vsel %vm4242_vm11, %v4244_v34, %v4240_v4 }
 0x951   :  { %v6836_v9 = vpop.eup %6835 }
 0x952   :  { %v4251_v26 = vmul.f32 %v6836_v9, %v4245_v18 }
 0x954   :  { %v4256_v55 = vpack.c.bf16 %v4251_v26, %v4251_v26 }
 0x956   :  { %4265 = vmatmul.bf16.vlgmr.msrb.gmra.mxu0 %v4256_v55  ;;  %4278 = vmatmul.bf16.vlgmr.msrb.gmra.mxu1 %v4256_v55 }
 0x957   :  { %4291 = vmatmul.bf16.vlgmr.msrb.gmra.mxu2 %v4256_v55  ;;  %4304 = vmatmul.bf16.vlgmr.msrb.gmra.mxu3 %v4256_v55 }
 0x958   :  { %4505 = vmatpush.bf16.msrb.mxu0 %v7395_v14  ;;  %4518 = vmatpush.bf16.msrb.mxu1 %v7397_v15  ;;  %v8015_v14 = vld [vmem:[#allocation35_spill] sm:$0xff] }
 0x959   :  { %4531 = vmatpush.bf16.msrb.mxu2 %v7402_v35  ;;  %4544 = vmatpush.bf16.msrb.mxu3 %v7399_v17  ;;  %v3315_v15 = vadd.f32 %v8015_v14, %v7687_v62  ;;  %v8016_v17 = vld [vmem:[#allocation36_spill] sm:$0xff] }
 0x95a   :  { %v3344_v35 = vadd.f32 %v8016_v17, %v7689_v23 }
 0x95c   :  { %4506 = vmatpush.bf16.msrb.mxu0 %v7408_v10  ;;  %4519 = vmatpush.bf16.msrb.mxu1 %v7413_v33 }
 0x95d   :  { %4532 = vmatpush.bf16.msrb.mxu2 %v7424_v48  ;;  %4545 = vmatpush.bf16.msrb.mxu3 %v7422_v27 }
 0x960   :  { %4507 = vmatpush.bf16.msrb.mxu0 %v7428_v0  ;;  %4520 = vmatpush.bf16.msrb.mxu1 %v7430_v44 }
 0x961   :  { %4533 = vmatpush.bf16.msrb.mxu2 %v7463_v61  ;;  %4546 = vmatpush.bf16.msrb.mxu3 %v7436_v52  ;;  %v8017_v52 = vld [vmem:[#allocation38_spill] sm:$0xff] }
 0x964   :  { %4508 = vmatpush.bf16.msrb.mxu0 %v7442_v58  ;;  %4521 = vmatpush.bf16.msrb.mxu1 %v7444_v8  ;;  %v3402_v58 = vadd.f32 %v8017_v52, %v7697_v16 }
 0x965   :  { %4534 = vmatpush.bf16.msrb.mxu2 %v7484_v45  ;;  %4547 = vmatpush.bf16.msrb.mxu3 %v7461_v39 }
 0x968   :  { %4509 = vmatpush.bf16.msrb.mxu0 %v7473_v7  ;;  %4522 = vmatpush.bf16.msrb.mxu1 %v7480_v22 }
 0x969   :  { %4535 = vmatpush.bf16.msrb.mxu2 %v7513_v3  ;;  %4548 = vmatpush.bf16.msrb.mxu3 %v7482_v41 }
 0x96c   :  { %4510 = vmatpush.bf16.msrb.mxu0 %v7505_v43  ;;  %4523 = vmatpush.bf16.msrb.mxu1 %v7511_v46 }
 0x96d   :  { %4536 = vmatpush.bf16.msrb.mxu2 %v7534_v13  ;;  %4549 = vmatpush.bf16.msrb.mxu3 %v7521_v6  ;;  %v8018_v13 = vld [vmem:[#allocation37_spill] sm:$0xff] }
 0x970   :  { %4511 = vmatpush.bf16.msrb.mxu0 %v7528_v31  ;;  %4524 = vmatpush.bf16.msrb.mxu1 %v7532_v53 }
 0x971   :  { %4537 = vmatpush.bf16.msrb.mxu2 %v7551_v11  ;;  %4550 = vmatpush.bf16.msrb.mxu3 %v7537_v2  ;;  %v3373_v2 = vadd.f32 %v8018_v13, %v8001_v59 }
 0x974   :  { %4512 = vmatpush.bf16.msrb.mxu0 %v7543_v5  ;;  %4525 = vmatpush.bf16.msrb.mxu1 %v7549_v20 }
 0x975   :  { %4538 = vmatpush.bf16.msrb.mxu2 %v7560_v57  ;;  %4551 = vmatpush.bf16.msrb.mxu3 %v7554_v51 }
 0x9d3   :  { %v4266_v10 = vpop.f32.mrf.mxu0  ;;  %v4279_v33 = vpop.f32.mrf.mxu1 }
 0x9d4   :  { %v4309_v27 = vadd.f32 %v4266_v10, %v3315_v15  ;;  %v4310_v48 = vadd.f32 %v4279_v33, %v3344_v35 }
 0x9d6   :  { %v6206_v0 = vmul.f32 -1.442695, %v4309_v27  ;;  %v6207_v44 = vmul.f32 -1.442695, %v4310_v48 }
 0x9d8   :  { %6837 = vpow2.f32 %v6206_v0  ;;  %v8020_v0 = vld [vmem:[#allocation40_spill] sm:$0xff] }
 0x9d9   :  { %6839 = vpow2.f32 %v6207_v44  ;;  %v3347_v44 = vadd.f32 %v8020_v0, %v7689_v23 }
 0x9da   :  { %v4292_v8 = vpop.f32.mrf.mxu2  ;;  %v4305_v39 = vpop.f32.mrf.mxu3 }
 0x9db   :  { %v4312_v61 = vadd.f32 %v4305_v39, %v3402_v58  ;;  %v4268_v7 = vpop.f32.mrf.mxu0  ;;  %v4281_v22 = vpop.f32.mrf.mxu1  ;;  %v4311_v11 = vadd.f32 %v4292_v8, %v3373_v2 }
 0x9dc   :  { %v8021_v22 = vld [vmem:[#allocation42_spill] sm:$0xff] }
 0x9dd   :  { %v6208_v41 = vmul.f32 -1.442695, %v4312_v61 }
 0x9de   :  { %v6838_v45 = vpop.eup %6837 }
 0x9df   :  { %v6840_v43 = vpop.eup %6839  ;;  %v4316_v46 = vadd.f32 1.0, %v6838_v45  ;;  %6841 = vpow2.f32 %v6208_v41  ;;  %v3405_v41 = vadd.f32 %v8021_v22, %v7697_v16  ;;  %v8023_v22 = vld [vmem:[#allocation43_spill] sm:$0xff] }
 0x9e0   :  { %v4335_v3 = vadd.f32 1.0, %v6840_v43 }
 0x9e1   :  { %6843 = vrcp.f32 %v4316_v46  ;;  %v4328_v63 = vand.u32 2147483648, %v4316_v46  ;;  %v4326_v56 = vand.u32 2147483647, %v4316_v46  ;;  %vm4322_vm14 = vweird.f32 %v4316_v46 }
 0x9e2   :  { %6845 = vrcp.f32 %v4335_v3  ;;  %v4294_v6 = vpop.f32.mrf.mxu2  ;;  %v4307_v31 = vpop.f32.mrf.mxu3  ;;  %v4347_v28 = vand.u32 2147483648, %v4335_v3  ;;  %v4345_v42 = vand.u32 2147483647, %v4335_v3  ;;  %vm4341_vm15 = vweird.f32 %v4335_v3 }
 0x9e3   :  { %v4329_v30 = vor.u32 1.1754944e-38, %v4328_v63  ;;  %vm4327_vm2 = vcmp.eq.f32.partialorder %v4326_v56, 8.507059e+37 }
 0x9e4   :  { %v4348_v40 = vor.u32 1.1754944e-38, %v4347_v28  ;;  %vm4346_vm3 = vcmp.eq.f32.partialorder %v4345_v42, 8.507059e+37 }
 0x9e5   :  { %v6842_v53 = vpop.eup %6841 }
 0x9e6   :  { %v4355_v5 = vadd.f32 1.0, %v6842_v53 }
 0x9e7   :  { %v6844_v20 = vpop.eup %6843 }
 0x9e8   :  { %v6846_v51 = vpop.eup %6845  ;;  %v4318_v57 = vmul.f32 %v6844_v20, %v4316_v46  ;;  %6847 = vrcp.f32 %v4355_v5  ;;  %vm4323_vm12 = vweird.f32 %v6844_v20  ;;  %v4367_v55 = vand.u32 2147483648, %v4355_v5 }
 0x9e9   :  { %v4337_v12 = vmul.f32 %v6846_v51, %v4335_v3  ;;  %6849 = vtanh.f32 %v4311_v11  ;;  %vm4342_vm13 = vweird.f32 %v6846_v51  ;;  %vm4324_vm0 = vmor %vm4322_vm14, %vm4323_vm12  ;;  %vm4361_vm5 = vweird.f32 %v4355_v5 }
 0x9ea   :  { %v4319_v49 = vsub.f32 1.0, %v4318_v57  ;;  %vm4343_vm1 = vmor %vm4341_vm15, %vm4342_vm13  ;;  %v4365_v14 = vand.u32 2147483647, %v4355_v5  ;;  %v4368_v17 = vor.u32 1.1754944e-38, %v4367_v55  ;;  %v8022_v57 = vld [vmem:[#allocation41_spill] sm:$0xff] }
 0x9eb   :  { %v4338_v19 = vsub.f32 1.0, %v4337_v12  ;;  %v3376_v12 = vadd.f32 %v8022_v57, %v8001_v59 }
 0x9ec   :  { %v4320_v29 = vmul.f32 %v6844_v20, %v4319_v49  ;;  %vm4366_vm7 = vcmp.eq.f32.partialorder %v4365_v14, 8.507059e+37 }
 0x9ed   :  { %v4339_v1 = vmul.f32 %v6846_v51, %v4338_v19 }
 0x9ee   :  { %v6848_v38 = vpop.eup %6847  ;;  %v4321_v50 = vadd.f32 %v6844_v20, %v4320_v29 }
 0x9ef   :  { %v4340_v36 = vadd.f32 %v6846_v51, %v4339_v1  ;;  %v4357_v37 = vmul.f32 %v6848_v38, %v4355_v5  ;;  %v6850_v32 = vpop.eup %6849  ;;  %vm4362_vm4 = vweird.f32 %v6848_v38 }
 0x9f0   :  { %v4325_v54 = vsel %vm4324_vm0, %v6844_v20, %v4321_v50  ;;  %vm4363_vm6 = vmor %vm4361_vm5, %vm4362_vm4 }
 0x9f1   :  { %v4330_v47 = vsel %vm4327_vm2, %v4329_v30, %v4325_v54  ;;  %v4344_v24 = vsel %vm4343_vm1, %v6846_v51, %v4340_v36  ;;  %v4358_v25 = vsub.f32 1.0, %v4357_v37 }
 0x9f2   :  { %v4349_v21 = vsel %vm4346_vm3, %v4348_v40, %v4344_v24  ;;  %v4372_v4 = vmul.f32 %v6850_v32, %v4330_v47 }
 0x9f3   :  { %v4371_v34 = vmul.f32 %v4349_v21, %v7879_v60  ;;  %v4359_v9 = vmul.f32 %v6848_v38, %v4358_v25  ;;  %v8019_v60 = vld [vmem:[#allocation39_spill] sm:$0xff] }
 0x9f4   :  { %v3318_v48 = vadd.f32 %v8019_v60, %v7687_v62 }
 0x9f5   :  { %v7923_v18 = vadd.f32 %v4372_v4, %v4371_v34  ;;  %v4360_v26 = vadd.f32 %v6848_v38, %v4359_v9 }
 0x9f7   :  { %6851 = vtanh.f32 %v7923_v18  ;;  %v4364_v15 = vsel %vm4363_vm6, %v6848_v38, %v4360_v26 }
 0x9f8   :  { %v4369_v10 = vsel %vm4366_vm7, %v4368_v17, %v4364_v15 }
 0x9fd   :  { %v6852_v35 = vpop.eup %6851 }
 0x9fe   :  { %v4375_v33 = vmul.f32 %v6852_v35, %v4369_v10 }
 0xa00   :  { %v4380_v27 = vpack.c.bf16 %v4375_v33, %v4375_v33 }
 0xa02   :  { %4389 = vmatmul.bf16.vlgmr.msra.gmra.mxu0 %v4380_v27  ;;  %4402 = vmatmul.bf16.vlgmr.msra.gmra.mxu1 %v4380_v27 }
 0xa03   :  { %4415 = vmatmul.bf16.vlgmr.msra.gmra.mxu2 %v4380_v27  ;;  %4428 = vmatmul.bf16.vlgmr.msra.gmra.mxu3 %v4380_v27 }
 0xa7f   :  { %v4390_v52 = vpop.f32.mrf.mxu0  ;;  %v4403_v58 = vpop.f32.mrf.mxu1 }
 0xa80   :  { %v4433_v8 = vadd.f32 %v4390_v52, %v3318_v48  ;;  %v4434_v39 = vadd.f32 %v4403_v58, %v3347_v44 }
 0xa82   :  { %v6209_v61 = vmul.f32 -1.442695, %v4433_v8  ;;  %v6210_v7 = vmul.f32 -1.442695, %v4434_v39  ;;  %v6613_v39 = vld [vmem:[#allocation15 + $0x30] sm:$0xff] }
 0xa84   :  { %6853 = vpow2.f32 %v6209_v61  ;;  %v6612_v61 = vld [vmem:[#allocation15 + $0x28] sm:$0xff] }
 0xa85   :  { %6855 = vpow2.f32 %v6210_v7  ;;  %v6611_v7 = vld [vmem:[#allocation15 + $0x20] sm:$0xff] }
 0xa86   :  { %v4416_v45 = vpop.f32.mrf.mxu2  ;;  %v4429_v43 = vpop.f32.mrf.mxu3 }
 0xa87   :  { %v4436_v46 = vadd.f32 %v4429_v43, %v3405_v41  ;;  %v4392_v3 = vpop.f32.mrf.mxu0  ;;  %v4405_v6 = vpop.f32.mrf.mxu1  ;;  %v4435_v63 = vadd.f32 %v4416_v45, %v3376_v12  ;;  %v3320_v41 = vadd.f32 %v8023_v22, %v7687_v62  ;;  %v8024_v45 = vld [vmem:[#allocation44_spill] sm:$0xff] }
 0xa88   :  { %v3349_v43 = vadd.f32 %v8024_v45, %v7689_v23 }
 0xa89   :  { %v6211_v31 = vmul.f32 -1.442695, %v4436_v46  ;;  %v6610_v46 = vld [vmem:[#allocation15 + $0x18] sm:$0xff] }
 0xa8a   :  { %v6854_v53 = vpop.eup %6853 }
 0xa8b   :  { %v6856_v13 = vpop.eup %6855  ;;  %v4440_v2 = vadd.f32 1.0, %v6854_v53  ;;  %6857 = vpow2.f32 %v6211_v31 }
 0xa8c   :  { %v4459_v5 = vadd.f32 1.0, %v6856_v13 }
 0xa8d   :  { %6859 = vrcp.f32 %v4440_v2  ;;  %v4452_v38 = vand.u32 2147483648, %v4440_v2  ;;  %v4450_v36 = vand.u32 2147483647, %v4440_v2  ;;  %vm4446_vm10 = vweird.f32 %v4440_v2 }
 0xa8e   :  { %6861 = vrcp.f32 %v4459_v5  ;;  %v4418_v20 = vpop.f32.mrf.mxu2  ;;  %v4431_v11 = vpop.f32.mrf.mxu3  ;;  %v4471_v50 = vand.u32 2147483648, %v4459_v5  ;;  %v4469_v40 = vand.u32 2147483647, %v4459_v5  ;;  %vm4465_vm11 = vweird.f32 %v4459_v5 }
 0xa8f   :  { %v4453_v47 = vor.u32 1.1754944e-38, %v4452_v38  ;;  %vm4451_vm14 = vcmp.eq.f32.partialorder %v4450_v36, 8.507059e+37  ;;  %v6608_v20 = vld [vmem:[#allocation15 + $0x8] sm:$0xff] }
 0xa90   :  { %v4472_v21 = vor.u32 1.1754944e-38, %v4471_v50  ;;  %vm4470_vm15 = vcmp.eq.f32.partialorder %v4469_v40, 8.507059e+37  ;;  %v8025_v11 = vld [vmem:[#allocation46_spill] sm:$0xff]  ;;  %v8026_v50 = vld [vmem:[#allocation45_spill] sm:$0xff] }
 0xa91   :  { %v6858_v51 = vpop.eup %6857 }
 0xa92   :  { %v4479_v49 = vadd.f32 1.0, %v6858_v51  ;;  %v3407_v51 = vadd.f32 %v8025_v11, %v7697_v16 }
 0xa93   :  { %v6860_v19 = vpop.eup %6859 }
 0xa94   :  { %v6862_v28 = vpop.eup %6861  ;;  %v4442_v29 = vmul.f32 %v6860_v19, %v4440_v2  ;;  %6863 = vrcp.f32 %v4479_v49  ;;  %vm4447_vm8 = vweird.f32 %v6860_v19  ;;  %v4491_v27 = vand.u32 2147483648, %v4479_v49 }
 0xa95   :  { %v4461_v56 = vmul.f32 %v6862_v28, %v4459_v5  ;;  %6865 = vtanh.f32 %v4435_v63  ;;  %vm4466_vm9 = vweird.f32 %v6862_v28  ;;  %vm4448_vm12 = vmor %vm4446_vm10, %vm4447_vm8  ;;  %vm4485_vm1 = vweird.f32 %v4479_v49  ;;  %v6609_v5 = vld [vmem:[#allocation15 + $0x10] sm:$0xff] }
 0xa96   :  { %v4443_v1 = vsub.f32 1.0, %v4442_v29  ;;  %vm4467_vm13 = vmor %vm4465_vm11, %vm4466_vm9  ;;  %v4489_v60 = vand.u32 2147483647, %v4479_v49  ;;  %v4492_v0 = vor.u32 1.1754944e-38, %v4491_v27 }
 0xa97   :  { %v4462_v42 = vsub.f32 1.0, %v4461_v56 }
 0xa98   :  { %v4444_v30 = vmul.f32 %v6860_v19, %v4443_v1  ;;  %vm4490_vm3 = vcmp.eq.f32.partialorder %v4489_v60, 8.507059e+37 }
 0xa99   :  { %v4463_v37 = vmul.f32 %v6862_v28, %v4462_v42 }
 0xa9a   :  { %v6864_v54 = vpop.eup %6863  ;;  %v4445_v32 = vadd.f32 %v6860_v19, %v4444_v30  ;;  %v3378_v30 = vadd.f32 %v8026_v50, %v8001_v59 }
 0xa9b   :  { %v4464_v24 = vadd.f32 %v6862_v28, %v4463_v37  ;;  %v4481_v25 = vmul.f32 %v6864_v54, %v4479_v49  ;;  %v6866_v34 = vpop.eup %6865  ;;  %vm4486_vm0 = vweird.f32 %v6864_v54 }
 0xa9c   :  { %v4449_v4 = vsel %vm4448_vm12, %v6860_v19, %v4445_v32  ;;  %vm4487_vm2 = vmor %vm4485_vm1, %vm4486_vm0  ;;  %v6607_v19 = vld [vmem:[#allocation15] sm:$0xff] }
 0xa9d   :  { %v4454_v9 = vsel %vm4451_vm14, %v4453_v47, %v4449_v4  ;;  %v4468_v26 = vsel %vm4467_vm13, %v6862_v28, %v4464_v24  ;;  %v4482_v55 = vsub.f32 1.0, %v4481_v25 }
 0xa9e   :  { %v4473_v14 = vsel %vm4470_vm15, %v4472_v21, %v4468_v26  ;;  %v4496_v15 = vmul.f32 %v6866_v34, %v4454_v9 }
 0xa9f   :  { %v4495_v17 = vmul.f32 %v4473_v14, %v7923_v18  ;;  %v4483_v35 = vmul.f32 %v6864_v54, %v4482_v55  ;;  %v6614_v18 = vld [vmem:[#allocation15 + $0x38] sm:$0xff] }
 0xaa0   :  { %4693 = vmatpush.bf16.msra.mxu0 %v6614_v18 }
 0xaa1   :  { %v7935_v10 = vadd.f32 %v4496_v15, %v4495_v17  ;;  %v4484_v33 = vadd.f32 %v6864_v54, %v4483_v35 }
 0xaa3   :  { %6867 = vtanh.f32 %v7935_v10  ;;  %v4488_v48 = vsel %vm4487_vm2, %v6864_v54, %v4484_v33 }
 0xaa4   :  { %v4493_v52 = vsel %vm4490_vm3, %v4492_v0, %v4488_v48  ;;  %4694 = vmatpush.bf16.msra.mxu0 %v6613_v39 }
 0xaa8   :  { %4695 = vmatpush.bf16.msra.mxu0 %v6612_v61 }
 0xaa9   :  { %v6868_v44 = vpop.eup %6867 }
 0xaaa   :  { %v4499_v58 = vmul.f32 %v6868_v44, %v4493_v52 }
 0xaac   :  { %v4504_v8 = vpack.c.bf16 %v4499_v58, %v4499_v58  ;;  %4696 = vmatpush.bf16.msra.mxu0 %v6611_v7 }
 0xaae   :  { %4513 = vmatmul.bf16.vlgmr.msrb.gmra.mxu0 %v4504_v8  ;;  %4526 = vmatmul.bf16.vlgmr.msrb.gmra.mxu1 %v4504_v8 }
 0xaaf   :  { %4539 = vmatmul.bf16.vlgmr.msrb.gmra.mxu2 %v4504_v8  ;;  %4552 = vmatmul.bf16.vlgmr.msrb.gmra.mxu3 %v4504_v8 }
 0xab0   :  { %4697 = vmatpush.bf16.msra.mxu0 %v6610_v46 }
 0xab4   :  { %4698 = vmatpush.bf16.msra.mxu0 %v6609_v5 }
 0xab8   :  { %4699 = vmatpush.bf16.msra.mxu0 %v6608_v20 }
 0xabc   :  { %4700 = vmatpush.bf16.msra.mxu0 %v6607_v19 }
 0xb2b   :  { %v4514_v3 = vpop.f32.mrf.mxu0  ;;  %v4527_v6 = vpop.f32.mrf.mxu1 }
 0xb2c   :  { %v4557_v31 = vadd.f32 %v4514_v3, %v3320_v41  ;;  %v4558_v53 = vadd.f32 %v4527_v6, %v3349_v43 }
 0xb2e   :  { %v6212_v13 = vmul.f32 -1.442695, %v4557_v31  ;;  %v6213_v2 = vmul.f32 -1.442695, %v4558_v53 }
 0xb30   :  { %6869 = vpow2.f32 %v6212_v13 }
 0xb31   :  { %6871 = vpow2.f32 %v6213_v2 }
 0xb32   :  { %v4540_v62 = vpop.f32.mrf.mxu2  ;;  %v4553_v57 = vpop.f32.mrf.mxu3 }
 0xb33   :  { %v4560_v12 = vadd.f32 %v4553_v57, %v3407_v51  ;;  %v4516_v23 = vpop.f32.mrf.mxu0  ;;  %v4529_v49 = vpop.f32.mrf.mxu1  ;;  %v4559_v40 = vadd.f32 %v4540_v62, %v3378_v30 }
 0xb35   :  { %v6214_v63 = vmul.f32 -1.442695, %v4560_v12 }
 0xb36   :  { %v6870_v28 = vpop.eup %6869 }
 0xb37   :  { %v6872_v29 = vpop.eup %6871  ;;  %v4564_v56 = vadd.f32 1.0, %v6870_v28  ;;  %6873 = vpow2.f32 %v6214_v63 }
 0xb38   :  { %v4583_v1 = vadd.f32 1.0, %v6872_v29 }
 0xb39   :  { %6875 = vrcp.f32 %v4564_v56  ;;  %v4576_v21 = vand.u32 2147483648, %v4564_v56  ;;  %v4574_v9 = vand.u32 2147483647, %v4564_v56  ;;  %vm4570_vm6 = vweird.f32 %v4564_v56 }
 0xb3a   :  { %6877 = vrcp.f32 %v4583_v1  ;;  %v4542_v42 = vpop.f32.mrf.mxu2  ;;  %v4555_v38 = vpop.f32.mrf.mxu3  ;;  %v4595_v4 = vand.u32 2147483648, %v4583_v1  ;;  %v4593_v55 = vand.u32 2147483647, %v4583_v1  ;;  %vm4589_vm7 = vweird.f32 %v4583_v1 }
 0xb3b   :  { %v4577_v15 = vor.u32 1.1754944e-38, %v4576_v21  ;;  %vm4575_vm10 = vcmp.eq.f32.partialorder %v4574_v9, 8.507059e+37 }
 0xb3c   :  { %v4596_v33 = vor.u32 1.1754944e-38, %v4595_v4  ;;  %vm4594_vm11 = vcmp.eq.f32.partialorder %v4593_v55, 8.507059e+37 }
 0xb3d   :  { %v6874_v16 = vpop.eup %6873 }
 0xb3e   :  { %v4603_v36 = vadd.f32 1.0, %v6874_v16 }
 0xb3f   :  { %v6876_v37 = vpop.eup %6875 }
 0xb40   :  { %v6878_v54 = vpop.eup %6877  ;;  %v4566_v32 = vmul.f32 %v6876_v37, %v4564_v56  ;;  %6879 = vrcp.f32 %v4603_v36  ;;  %vm4571_vm4 = vweird.f32 %v6876_v37  ;;  %v4615_v7 = vand.u32 2147483648, %v4603_v36 }
 0xb41   :  { %v4585_v47 = vmul.f32 %v6878_v54, %v4583_v1  ;;  %6881 = vtanh.f32 %v4559_v40  ;;  %vm4590_vm5 = vweird.f32 %v6878_v54  ;;  %vm4572_vm8 = vmor %vm4570_vm6, %vm4571_vm4  ;;  %vm4609_vm13 = vweird.f32 %v4603_v36 }
 0xb42   :  { %v4567_v24 = vsub.f32 1.0, %v4566_v32  ;;  %vm4591_vm9 = vmor %vm4589_vm7, %vm4590_vm5  ;;  %v4613_v22 = vand.u32 2147483647, %v4603_v36  ;;  %v4616_v45 = vor.u32 1.1754944e-38, %v4615_v7 }
 0xb43   :  { %v4586_v25 = vsub.f32 1.0, %v4585_v47 }
 0xb44   :  { %v4568_v34 = vmul.f32 %v6876_v37, %v4567_v24  ;;  %vm4614_vm15 = vcmp.eq.f32.partialorder %v4613_v22, 8.507059e+37 }
 0xb45   :  { %v4587_v26 = vmul.f32 %v6878_v54, %v4586_v25 }
 0xb46   :  { %v6880_v14 = vpop.eup %6879  ;;  %v4569_v59 = vadd.f32 %v6876_v37, %v4568_v34 }
 0xb47   :  { %v4588_v17 = vadd.f32 %v6878_v54, %v4587_v26  ;;  %v4605_v35 = vmul.f32 %v6880_v14, %v4603_v36  ;;  %v6882_v60 = vpop.eup %6881  ;;  %vm4610_vm12 = vweird.f32 %v6880_v14 }
 0xb48   :  { %v4573_v27 = vsel %vm4572_vm8, %v6876_v37, %v4569_v59  ;;  %vm4611_vm14 = vmor %vm4609_vm13, %vm4610_vm12 }
 0xb49   :  { %v4578_v48 = vsel %vm4575_vm10, %v4577_v15, %v4573_v27  ;;  %v4592_v0 = vsel %vm4591_vm9, %v6878_v54, %v4588_v17  ;;  %v4606_v44 = vsub.f32 1.0, %v4605_v35 }
 0xb4a   :  { %v4597_v52 = vsel %vm4594_vm11, %v4596_v33, %v4592_v0  ;;  %v4620_v58 = vmul.f32 %v6882_v60, %v4578_v48 }
 0xb4b   :  { %v4619_v8 = vmul.f32 %v4597_v52, %v7935_v10  ;;  %v4607_v18 = vmul.f32 %v6880_v14, %v4606_v44  ;;  %v6628_v10 = vld [vmem:[%s7961_s8] ss:$0 sm:$0xff] }
 0xb4d   :  { %v4621_v39 = vadd.f32 %v4620_v58, %v4619_v8  ;;  %v4608_v61 = vadd.f32 %v6880_v14, %v4607_v18 }
 0xb4f   :  { %6883 = vtanh.f32 %v4621_v39  ;;  %v4612_v41 = vsel %vm4611_vm14, %v6880_v14, %v4608_v61 }
 0xb50   :  { %v4617_v46 = vsel %vm4614_vm15, %v4616_v45, %v4612_v41 }
 0xb55   :  { %v6884_v43 = vpop.eup %6883 }
 0xb56   :  { %v4623_v3 = vmul.f32 %v6884_v43, %v4617_v46 }
 0xb58   :  { %v4624_v6 = vpack.c.bf16 %v4623_v3, %v4623_v3 }
 0xb5a   :  { %4701 = vmatmul.bf16.vlgmr.msra.gmra.mxu0 %v4624_v6 }
 0xbd7   :  { %v4702_v31 = vpop.f32.mrf.mxu0 }
 0xbd8   :  { %v4703_v53 = vadd.f32 %v6628_v10, %v4702_v31 }
 0xbda   :  { %4706 = vst [vmem:[#allocation16] sm:$0xff] %v4703_v53 }
 0xbdb   :  { %4717 = dma.vmem_to_hbm [thread:$0]  %s4713_s23, 128, %s4715_s25, [#allocation6]  }
 0xbdf   :  { %v4704_v13 = vpop.f32.mrf.mxu0 }
 0xbe0   :  { %7085 = dma.done.wait [#allocation6], 128  }
 0xbe1   :  { %7086 = vsyncadd [#allocation6], 4294967168 }
 0xbe2   :  { %4722 = vsyncpa [#allocation5], 1 }
 0xbe3   :  { %4723 = vsyncpa [#allocation8], 1 }
 0xbe4   :  { %4724 = vsyncpa [#allocation11], 1 }
 0xbe5   :  { %4725 = vsyncpa [#allocation14], 1 }
 0xbe6   :  { %4726 = vsyncpa [#allocation6], 1 }

</bundles_post_ra>
